<compile_context>
chip_gen: v6e
topology: v6e:2x2x1
jax: 0.10.0
libtpu: 0.0.40
codegen_flags: <defaults>
</compile_context>

<pallas_src>
import jax
import jax.numpy as jnp
from jax.experimental import pallas as pl
from jax.experimental.pallas import tpu as pltpu

# ----- model hyperparameters (small, consistent with the PyTorch module) -----
EMBED      = 32
HEADS      = 4
HEAD_DIM   = EMBED // HEADS
FWD_EXP    = 2
HIDDEN     = EMBED * FWD_EXP
NUM_LAYERS = 2
VOCAB      = 50
VOCAB_PAD  = 128          # lane-dense padding for embedding / fc_out (sliced back)
MAX_LEN    = 16
NEG_INF    = -1e20
LN_EPS     = 1e-5
INV_SQRT_E = 1.0 / (EMBED ** 0.5)   # tutorial scales by sqrt(embed_size), not head_dim

_WEIGHT_KEYS = (
    "word_emb_p", "fc_w_p", "fc_b_p",
    "sa_wq", "sa_wk", "sa_wv", "sa_wo", "sa_bo", "n0_g", "n0_b",
    "ca_wq", "ca_wk", "ca_wv", "ca_wo", "ca_bo", "n1_g", "n1_b",
    "ff_w1", "ff_b1", "ff_w2", "ff_b2", "n2_g", "n2_b",
)


# ---------------------- in-kernel helpers (traced inline) ----------------------

def _mm(a, b):
    """a @ b with bf16 MXU inputs and f32 accumulation."""
    return jax.lax.dot_general(
        a.astype(jnp.bfloat16), b.astype(jnp.bfloat16),
        (((1,), (0,)), ((), ())), preferred_element_type=jnp.float32)


def _mm_nt(a, b):
    """a @ b.T (contract last dims of both) with bf16 inputs, f32 accumulation."""
    return jax.lax.dot_general(
        a.astype(jnp.bfloat16), b.astype(jnp.bfloat16),
        (((1,), (1,)), ((), ())), preferred_element_type=jnp.float32)


def _add_layernorm(a, b, g, beta):
    x = a + b
    mean = jnp.mean(x, axis=-1, keepdims=True)
    var = jnp.mean(jnp.square(x - mean), axis=-1, keepdims=True)   # biased, like torch LN
    return (x - mean) * jax.lax.rsqrt(var + LN_EPS) * g + beta


def _attention(q_src, kv_src, mask, wq_bd, wk_bd, wv_bd, wo, bo):
    """SelfAttention(values=kv_src, keys=kv_src, queries=q_src, mask)."""
    q = _mm(q_src, wq_bd)          # (Lq, E)  block-diagonal per-head projection
    k = _mm(kv_src, wk_bd)         # (Lk, E)
    v = _mm(kv_src, wv_bd)         # (Lk, E)
    outs = []
    for h in range(HEADS):         # static unroll; slices stay in vregs/VMEM
        s = slice(h * HEAD_DIM, (h + 1) * HEAD_DIM)
        energy = _mm_nt(q[:, s], k[:, s])                  # (Lq, Lk) f32
        energy = jnp.where(mask > 0, energy, NEG_INF)      # masked_fill (pre-scale)
        energy = energy * INV_SQRT_E                       # / sqrt(embed_size)
        m = jnp.max(energy, axis=-1, keepdims=True)
        p = jnp.exp(energy - m)
        denom = jnp.sum(p, axis=-1, keepdims=True)
        attn = p * pl.reciprocal(denom, approx=True)       # EUP reciprocal
        outs.append(_mm(attn, v[:, s]))                    # (Lq, Hd)
    ctx = jnp.concatenate(outs, axis=-1)                   # (Lq, E)
    return _mm(ctx, wo) + bo                               # output projection


# ------------------------------ fused kernel ------------------------------

def _decoder_kernel(tok_ref, pos_ref, enc_ref, trg_ref, src_ref,
                    word_emb_ref, fc_w_ref, fc_b_ref,
                    sa_wq_ref, sa_wk_ref, sa_wv_ref, sa_wo_ref, sa_bo_ref,
                    n0_g_ref, n0_b_ref,
                    ca_wq_ref, ca_wk_ref, ca_wv_ref, ca_wo_ref, ca_bo_ref,
                    n1_g_ref, n1_b_ref,
                    ff_w1_ref, ff_b1_ref, ff_w2_ref, ff_b2_ref,
                    n2_g_ref, n2_b_ref,
                    out_ref):
    L = tok_ref.shape[0]

    # token embedding as an exact one-hot matmul (avoids gather), plus positions
    tok = tok_ref[...]                                           # (L, 1) int32
    cols = jax.lax.broadcasted_iota(jnp.int32, (L, VOCAB_PAD), 1)
    onehot = (cols == tok).astype(jnp.float32)                   # (L, VP)
    x = jnp.dot(onehot, word_emb_ref[...],
                preferred_element_type=jnp.float32) + pos_ref[...]
    # dropout -> identity (inference)

    enc = enc_ref[...]                                           # (Ls, E)
    trg_m = trg_ref[...]                                         # (L, L)
    src_m = src_ref[...]                                         # (1, Ls)

    for l in range(NUM_LAYERS):                                  # static unroll
        # DecoderBlock: masked self-attention + residual LayerNorm
        att = _attention(x, x, trg_m,
                         sa_wq_ref[l], sa_wk_ref[l], sa_wv_ref[l],
                         sa_wo_ref[l], sa_bo_ref[l])
        query = _add_layernorm(att, x, n0_g_ref[l], n0_b_ref[l])
        # Transformer_Block: cross-attention (K,V from encoder) + LN + FFN + LN
        att2 = _attention(query, enc, src_m,
                          ca_wq_ref[l], ca_wk_ref[l], ca_wv_ref[l],
                          ca_wo_ref[l], ca_bo_ref[l])
        x2 = _add_layernorm(att2, query, n1_g_ref[l], n1_b_ref[l])
        h = jnp.maximum(_mm(x2, ff_w1_ref[l]) + ff_b1_ref[l], 0.0)   # ReLU
        ff = _mm(h, ff_w2_ref[l]) + ff_b2_ref[l]
        x = _add_layernorm(ff, x2, n2_g_ref[l], n2_b_ref[l])

    # fc_out: vocab padded to 128 lanes -> unmasked stores; sliced in the wrapper
    out_ref[...] = _mm(x, fc_w_ref[...]) + fc_b_ref[...]


# ------------------------------ kernel wrapper ------------------------------

def _resident_spec(a):
    """Full-array block with constant index map: array stays resident in VMEM."""
    zeros = (0,) * a.ndim
    return pl.BlockSpec(a.shape, lambda b: zeros)


@jax.jit
def decoder_forward(packed, tokens, enc_out, src_mask, trg_mask):
    N, L = tokens.shape
    Ls = enc_out.shape[1]

    pos = packed["pos_emb"][:L]                             # (L, E)  static slice
    tok3 = tokens.reshape(N, L, 1).astype(jnp.int32)        # (N, L, 1)
    trg_m = trg_mask[:, 0].astype(jnp.float32)              # (N, L, L)  per batch
    src_m = src_mask[:, 0].astype(jnp.float32)              # (N, 1, Ls) per batch
    weights = tuple(packed[k] for k in _WEIGHT_KEYS)

    in_specs = [
        pl.BlockSpec((None, L, 1), lambda b: (b, 0, 0)),        # tokens
        _resident_spec(pos),                                    # positions
        pl.BlockSpec((None, Ls, EMBED), lambda b: (b, 0, 0)),   # encoder output
        pl.BlockSpec((None, L, L), lambda b: (b, 0, 0)),        # target mask
        pl.BlockSpec((None, 1, Ls), lambda b: (b, 0, 0)),       # source mask
    ] + [_resident_spec(w) for w in weights]

    out = pl.pallas_call(
        _decoder_kernel,
        out_shape=jax.ShapeDtypeStruct((N, L, VOCAB_PAD), jnp.float32),
        grid=(N,),
        in_specs=in_specs,
        out_specs=pl.BlockSpec((None, L, VOCAB_PAD), lambda b: (b, 0, 0)),
        compiler_params=pltpu.CompilerParams(
            dimension_semantics=("parallel",)),
    )(tok3, pos, enc_out.astype(jnp.float32), trg_m, src_m, *weights)

    return out[:, :, :VOCAB]


# ------------------ parameter init (per-head, PyTorch-like) ------------------

def init_params(key):
    keys = iter(jax.random.split(key, 256))

    def nrm(shape, scale=0.05):
        return (scale * jax.random.normal(next(keys), shape)).astype(jnp.float32)

    def attn_params():
        return {
            "wq": nrm((HEAD_DIM, HEAD_DIM)),
            "wk": nrm((HEAD_DIM, HEAD_DIM)),
            "wv": nrm((HEAD_DIM, HEAD_DIM)),
            "wo": nrm((EMBED, EMBED)),
            "bo": jnp.zeros((EMBED,), jnp.float32),
        }

    params = {
        "word_emb": nrm((VOCAB, EMBED)),
        "pos_emb": nrm((MAX_LEN, EMBED)),
        "layers": [],
        "fc_out_w": nrm((EMBED, VOCAB)),
        "fc_out_b": jnp.zeros((VOCAB,), jnp.float32),
    }
    for _ in range(NUM_LAYERS):
        params["layers"].append({
            "self_attn": attn_params(),
            "norm_g": jnp.ones((EMBED,), jnp.float32),
            "norm_b": jnp.zeros((EMBED,), jnp.float32),
            "cross_attn": attn_params(),
            "norm1_g": jnp.ones((EMBED,), jnp.float32),
            "norm1_b": jnp.zeros((EMBED,), jnp.float32),
            "ff_w1": nrm((EMBED, HIDDEN)),
            "ff_b1": jnp.zeros((HIDDEN,), jnp.float32),
            "ff_w2": nrm((HIDDEN, EMBED)),
            "ff_b2": jnp.zeros((EMBED,), jnp.float32),
            "norm2_g": jnp.ones((EMBED,), jnp.float32),
            "norm2_b": jnp.zeros((EMBED,), jnp.float32),
        })
    return params


def pack_params(params):
    """Fold per-head weights into block-diagonal (E,E), stack layers, pad vocab."""
    eye_h = jnp.eye(HEADS, dtype=jnp.float32)
    bd = lambda w: jnp.kron(eye_h, w)                        # (Hd,Hd) -> (E,E)
    stack = lambda fn: jnp.stack([fn(lp) for lp in params["layers"]])
    return {
        "pos_emb": params["pos_emb"],
        "word_emb_p": jnp.zeros((VOCAB_PAD, EMBED), jnp.float32)
                         .at[:VOCAB].set(params["word_emb"]),
        "fc_w_p": jnp.zeros((EMBED, VOCAB_PAD), jnp.float32)
                     .at[:, :VOCAB].set(params["fc_out_w"]),
        "fc_b_p": jnp.zeros((1, VOCAB_PAD), jnp.float32)
                     .at[:, :VOCAB].set(params["fc_out_b"]),
        "sa_wq": stack(lambda lp: bd(lp["self_attn"]["wq"])),
        "sa_wk": stack(lambda lp: bd(lp["self_attn"]["wk"])),
        "sa_wv": stack(lambda lp: bd(lp["self_attn"]["wv"])),
        "sa_wo": stack(lambda lp: lp["self_attn"]["wo"]),
        "sa_bo": stack(lambda lp: lp["self_attn"]["bo"].reshape(1, EMBED)),
        "n0_g": stack(lambda lp: lp["norm_g"].reshape(1, EMBED)),
        "n0_b": stack(lambda lp: lp["norm_b"].reshape(1, EMBED)),
        "ca_wq": stack(lambda lp: bd(lp["cross_attn"]["wq"])),
        "ca_wk": stack(lambda lp: bd(lp["cross_attn"]["wk"])),
        "ca_wv": stack(lambda lp: bd(lp["cross_attn"]["wv"])),
        "ca_wo": stack(lambda lp: lp["cross_attn"]["wo"]),
        "ca_bo": stack(lambda lp: lp["cross_attn"]["bo"].reshape(1, EMBED)),
        "n1_g": stack(lambda lp: lp["norm1_g"].reshape(1, EMBED)),
        "n1_b": stack(lambda lp: lp["norm1_b"].reshape(1, EMBED)),
        "ff_w1": stack(lambda lp: lp["ff_w1"]),
        "ff_b1": stack(lambda lp: lp["ff_b1"].reshape(1, HIDDEN)),
        "ff_w2": stack(lambda lp: lp["ff_w2"]),
        "ff_b2": stack(lambda lp: lp["ff_b2"].reshape(1, EMBED)),
        "n2_g": stack(lambda lp: lp["norm2_g"].reshape(1, EMBED)),
        "n2_b": stack(lambda lp: lp["norm2_b"].reshape(1, EMBED)),
    }


# --------------------- pure-JAX f32 reference (for checking) ---------------------

def _ref_attention(values, keys_, queries, mask, p):
    N, Lk, _ = keys_.shape
    Lv = values.shape[1]
    Lq = queries.shape[1]
    v = jnp.einsum("nlhd,de->nlhe", values.reshape(N, Lv, HEADS, HEAD_DIM), p["wv"])
    k = jnp.einsum("nlhd,de->nlhe", keys_.reshape(N, Lk, HEADS, HEAD_DIM), p["wk"])
    q = jnp.einsum("nlhd,de->nlhe", queries.reshape(N, Lq, HEADS, HEAD_DIM), p["wq"])
    energy = jnp.einsum("nqhd,nkhd->nhqk", q, k)
    energy = jnp.where(mask > 0, energy, NEG_INF)
    attn = jax.nn.softmax(energy * INV_SQRT_E, axis=-1)
    out = jnp.einsum("nhqk,nkhd->nqhd", attn, v).reshape(N, Lq, EMBED)
    return out @ p["wo"] + p["bo"]


def _ref_layernorm(x, g, b):
    mean = x.mean(-1, keepdims=True)
    var = ((x - mean) ** 2).mean(-1, keepdims=True)
    return (x - mean) / jnp.sqrt(var + LN_EPS) * g + b


def decoder_forward_ref(params, tokens, enc_out, src_mask, trg_mask):
    N, L = tokens.shape
    x = params["word_emb"][tokens] + params["pos_emb"][:L][None]
    for lp in params["layers"]:
        att = _ref_attention(x, x, x, trg_mask, lp["self_attn"])
        query = _ref_layernorm(att + x, lp["norm_g"], lp["norm_b"])
        att2 = _ref_attention(enc_out, enc_out, query, src_mask, lp["cross_attn"])
        x2 = _ref_layernorm(att2 + query, lp["norm1_g"], lp["norm1_b"])
        ff = jnp.maximum(x2 @ lp["ff_w1"] + lp["ff_b1"], 0.0) @ lp["ff_w2"] + lp["ff_b2"]
        x = _ref_layernorm(ff + x2, lp["norm2_g"], lp["norm2_b"])
    return x @ params["fc_out_w"] + params["fc_out_b"]


# ------------------------------------ main ------------------------------------

if __name__ == "__main__":
    key = jax.random.PRNGKey(0)
    kp, kt, ke = jax.random.split(key, 3)

    N, L, LS = 2, 8, 8
    params = init_params(kp)
    packed = pack_params(params)

    tokens = jax.random.randint(kt, (N, L), 0, VOCAB, dtype=jnp.int32)
    enc_out = jax.random.normal(ke, (N, LS, EMBED), jnp.float32)

    # PyTorch-style masks: causal target mask, all-ones source mask
    trg_mask = jnp.broadcast_to(
        jnp.tril(jnp.ones((L, L), jnp.float32))[None, None], (N, 1, L, L))
    src_mask = jnp.ones((N, 1, 1, LS), jnp.float32)

    out = decoder_forward(packed, tokens, enc_out, src_mask, trg_mask)
    out = jax.block_until_ready(out)
    assert out.shape == (N, L, VOCAB)
    assert bool(jnp.all(jnp.isfinite(out)))

    # sanity check vs. pure-f32 reference (kernel uses bf16 MXU inputs -> loose tol)
    ref = decoder_forward_ref(params, tokens, enc_out, src_mask, trg_mask)
    max_err = float(jnp.max(jnp.abs(out - ref)))
    assert max_err < 1e-1, f"kernel deviates from f32 reference: max_err={max_err}"

    print("KERNEL_OK")
</pallas_src>

<mosaic_0001>
module attributes {stable_mosaic.version = 11 : i64} {
  func.func @_decoder_kernel(%arg0: i32, %arg1: memref<1x8x1xi32, #tpu.memory_space<vmem>>, %arg2: memref<8x32xf32, #tpu.memory_space<vmem>>, %arg3: memref<1x8x32xf32, #tpu.memory_space<vmem>>, %arg4: memref<1x8x8xf32, #tpu.memory_space<vmem>>, %arg5: memref<1x1x8xf32, #tpu.memory_space<vmem>>, %arg6: memref<128x32xf32, #tpu.memory_space<vmem>>, %arg7: memref<32x128xf32, #tpu.memory_space<vmem>>, %arg8: memref<1x128xf32, #tpu.memory_space<vmem>>, %arg9: memref<2x32x32xf32, #tpu.memory_space<vmem>>, %arg10: memref<2x32x32xf32, #tpu.memory_space<vmem>>, %arg11: memref<2x32x32xf32, #tpu.memory_space<vmem>>, %arg12: memref<2x32x32xf32, #tpu.memory_space<vmem>>, %arg13: memref<2x1x32xf32, #tpu.memory_space<vmem>>, %arg14: memref<2x1x32xf32, #tpu.memory_space<vmem>>, %arg15: memref<2x1x32xf32, #tpu.memory_space<vmem>>, %arg16: memref<2x32x32xf32, #tpu.memory_space<vmem>>, %arg17: memref<2x32x32xf32, #tpu.memory_space<vmem>>, %arg18: memref<2x32x32xf32, #tpu.memory_space<vmem>>, %arg19: memref<2x32x32xf32, #tpu.memory_space<vmem>>, %arg20: memref<2x1x32xf32, #tpu.memory_space<vmem>>, %arg21: memref<2x1x32xf32, #tpu.memory_space<vmem>>, %arg22: memref<2x1x32xf32, #tpu.memory_space<vmem>>, %arg23: memref<2x32x64xf32, #tpu.memory_space<vmem>>, %arg24: memref<2x1x64xf32, #tpu.memory_space<vmem>>, %arg25: memref<2x64x32xf32, #tpu.memory_space<vmem>>, %arg26: memref<2x1x32xf32, #tpu.memory_space<vmem>>, %arg27: memref<2x1x32xf32, #tpu.memory_space<vmem>>, %arg28: memref<2x1x32xf32, #tpu.memory_space<vmem>>, %arg29: memref<1x8x128xf32, #tpu.memory_space<vmem>>) attributes {dimension_semantics = [#tpu.dimension_semantics<parallel>], iteration_bounds = array<i64: 2>, scalar_prefetch = 0 : i64, scratch_operands = 0 : i64, tpu.core_type = #tpu.core_type<tc>, window_params = [{transform_indices = @transform_0, window_bounds = array<i64: 1, 8, 1>}, {pipeline_mode = #tpu.pipeline_mode<synchronous>, transform_indices = @transform_1, window_bounds = array<i64: 8, 32>}, {transform_indices = @transform_2, window_bounds = array<i64: 1, 8, 32>}, {transform_indices = @transform_3, window_bounds = array<i64: 1, 8, 8>}, {transform_indices = @transform_4, window_bounds = array<i64: 1, 1, 8>}, {pipeline_mode = #tpu.pipeline_mode<synchronous>, transform_indices = @transform_5, window_bounds = array<i64: 128, 32>}, {pipeline_mode = #tpu.pipeline_mode<synchronous>, transform_indices = @transform_6, window_bounds = array<i64: 32, 128>}, {pipeline_mode = #tpu.pipeline_mode<synchronous>, transform_indices = @transform_7, window_bounds = array<i64: 1, 128>}, {pipeline_mode = #tpu.pipeline_mode<synchronous>, transform_indices = @transform_8, window_bounds = array<i64: 2, 32, 32>}, {pipeline_mode = #tpu.pipeline_mode<synchronous>, transform_indices = @transform_9, window_bounds = array<i64: 2, 32, 32>}, {pipeline_mode = #tpu.pipeline_mode<synchronous>, transform_indices = @transform_10, window_bounds = array<i64: 2, 32, 32>}, {pipeline_mode = #tpu.pipeline_mode<synchronous>, transform_indices = @transform_11, window_bounds = array<i64: 2, 32, 32>}, {pipeline_mode = #tpu.pipeline_mode<synchronous>, transform_indices = @transform_12, window_bounds = array<i64: 2, 1, 32>}, {pipeline_mode = #tpu.pipeline_mode<synchronous>, transform_indices = @transform_13, window_bounds = array<i64: 2, 1, 32>}, {pipeline_mode = #tpu.pipeline_mode<synchronous>, transform_indices = @transform_14, window_bounds = array<i64: 2, 1, 32>}, {pipeline_mode = #tpu.pipeline_mode<synchronous>, transform_indices = @transform_15, window_bounds = array<i64: 2, 32, 32>}, {pipeline_mode = #tpu.pipeline_mode<synchronous>, transform_indices = @transform_16, window_bounds = array<i64: 2, 32, 32>}, {pipeline_mode = #tpu.pipeline_mode<synchronous>, transform_indices = @transform_17, window_bounds = array<i64: 2, 32, 32>}, {pipeline_mode = #tpu.pipeline_mode<synchronous>, transform_indices = @transform_18, window_bounds = array<i64: 2, 32, 32>}, {pipeline_mode = #tpu.pipeline_mode<synchronous>, transform_indices = @transform_19, window_bounds = array<i64: 2, 1, 32>}, {pipeline_mode = #tpu.pipeline_mode<synchronous>, transform_indices = @transform_20, window_bounds = array<i64: 2, 1, 32>}, {pipeline_mode = #tpu.pipeline_mode<synchronous>, transform_indices = @transform_21, window_bounds = array<i64: 2, 1, 32>}, {pipeline_mode = #tpu.pipeline_mode<synchronous>, transform_indices = @transform_22, window_bounds = array<i64: 2, 32, 64>}, {pipeline_mode = #tpu.pipeline_mode<synchronous>, transform_indices = @transform_23, window_bounds = array<i64: 2, 1, 64>}, {pipeline_mode = #tpu.pipeline_mode<synchronous>, transform_indices = @transform_24, window_bounds = array<i64: 2, 64, 32>}, {pipeline_mode = #tpu.pipeline_mode<synchronous>, transform_indices = @transform_25, window_bounds = array<i64: 2, 1, 32>}, {pipeline_mode = #tpu.pipeline_mode<synchronous>, transform_indices = @transform_26, window_bounds = array<i64: 2, 1, 32>}, {pipeline_mode = #tpu.pipeline_mode<synchronous>, transform_indices = @transform_27, window_bounds = array<i64: 2, 1, 32>}, {transform_indices = @transform_28, window_bounds = array<i64: 1, 8, 128>}]} {
    %c0 = arith.constant 0 : index
    %c0_0 = arith.constant 0 : index
    %c0_1 = arith.constant 0 : index
    %0 = vector.load %arg1[%c0, %c0_0, %c0_1] : memref<1x8x1xi32, #tpu.memory_space<vmem>>, vector<1x8x1xi32>
    %1 = vector.shape_cast %0 : vector<1x8x1xi32> to vector<8x1xi32>
    %2 = tpu.iota {dimensions = array<i32: 1>} : vector<8x128xi32>
    %3 = vector.broadcast %1 : vector<8x1xi32> to vector<8x128xi32>
    %4 = arith.cmpi eq, %2, %3 : vector<8x128xi32>
    %5 = arith.extui %4 : vector<8x128xi1> to vector<8x128xi32>
    %6 = arith.sitofp %5 : vector<8x128xi32> to vector<8x128xf32>
    %c0_2 = arith.constant 0 : index
    %c0_3 = arith.constant 0 : index
    %7 = vector.load %arg6[%c0_2, %c0_3] : memref<128x32xf32, #tpu.memory_space<vmem>>, vector<128x32xf32>
    %cst = arith.constant dense<0.000000e+00> : vector<8x32xf32>
    %8 = tpu.matmul %6, %7, %cst {dimension_numbers = #tpu.dot_dimension_numbers<[1], [0], [0], [1], [0, 0, 1, 1], [], []>} : vector<8x128xf32>, vector<128x32xf32>, vector<8x32xf32> -> vector<8x32xf32>
    %c0_4 = arith.constant 0 : index
    %c0_5 = arith.constant 0 : index
    %9 = vector.load %arg2[%c0_4, %c0_5] : memref<8x32xf32, #tpu.memory_space<vmem>>, vector<8x32xf32>
    %10 = arith.addf %8, %9 : vector<8x32xf32>
    %c0_6 = arith.constant 0 : index
    %c0_7 = arith.constant 0 : index
    %c0_8 = arith.constant 0 : index
    %11 = vector.load %arg3[%c0_6, %c0_7, %c0_8] : memref<1x8x32xf32, #tpu.memory_space<vmem>>, vector<1x8x32xf32>
    %12 = vector.shape_cast %11 : vector<1x8x32xf32> to vector<8x32xf32>
    %c0_9 = arith.constant 0 : index
    %c0_10 = arith.constant 0 : index
    %c0_11 = arith.constant 0 : index
    %13 = vector.load %arg4[%c0_9, %c0_10, %c0_11] : memref<1x8x8xf32, #tpu.memory_space<vmem>>, vector<1x8x8xf32>
    %14 = vector.shape_cast %13 : vector<1x8x8xf32> to vector<8x8xf32>
    %c0_12 = arith.constant 0 : index
    %c0_13 = arith.constant 0 : index
    %c0_14 = arith.constant 0 : index
    %15 = vector.load %arg5[%c0_12, %c0_13, %c0_14] : memref<1x1x8xf32, #tpu.memory_space<vmem>>, vector<1x1x8xf32>
    %16 = vector.shape_cast %15 : vector<1x1x8xf32> to vector<1x8xf32>
    %c0_15 = arith.constant 0 : index
    %c0_16 = arith.constant 0 : index
    %c0_17 = arith.constant 0 : index
    %17 = vector.load %arg9[%c0_15, %c0_16, %c0_17] : memref<2x32x32xf32, #tpu.memory_space<vmem>>, vector<1x32x32xf32>
    %18 = vector.shape_cast %17 : vector<1x32x32xf32> to vector<32x32xf32>
    %c0_18 = arith.constant 0 : index
    %c0_19 = arith.constant 0 : index
    %c0_20 = arith.constant 0 : index
    %19 = vector.load %arg10[%c0_18, %c0_19, %c0_20] : memref<2x32x32xf32, #tpu.memory_space<vmem>>, vector<1x32x32xf32>
    %20 = vector.shape_cast %19 : vector<1x32x32xf32> to vector<32x32xf32>
    %c0_21 = arith.constant 0 : index
    %c0_22 = arith.constant 0 : index
    %c0_23 = arith.constant 0 : index
    %21 = vector.load %arg11[%c0_21, %c0_22, %c0_23] : memref<2x32x32xf32, #tpu.memory_space<vmem>>, vector<1x32x32xf32>
    %22 = vector.shape_cast %21 : vector<1x32x32xf32> to vector<32x32xf32>
    %c0_24 = arith.constant 0 : index
    %c0_25 = arith.constant 0 : index
    %c0_26 = arith.constant 0 : index
    %23 = vector.load %arg12[%c0_24, %c0_25, %c0_26] : memref<2x32x32xf32, #tpu.memory_space<vmem>>, vector<1x32x32xf32>
    %24 = vector.shape_cast %23 : vector<1x32x32xf32> to vector<32x32xf32>
    %c0_27 = arith.constant 0 : index
    %c0_28 = arith.constant 0 : index
    %c0_29 = arith.constant 0 : index
    %25 = vector.load %arg13[%c0_27, %c0_28, %c0_29] : memref<2x1x32xf32, #tpu.memory_space<vmem>>, vector<1x1x32xf32>
    %26 = vector.shape_cast %25 : vector<1x1x32xf32> to vector<1x32xf32>
    %27 = arith.truncf %10 : vector<8x32xf32> to vector<8x32xbf16>
    %28 = arith.truncf %18 : vector<32x32xf32> to vector<32x32xbf16>
    %cst_30 = arith.constant dense<0.000000e+00> : vector<8x32xf32>
    %29 = tpu.matmul %27, %28, %cst_30 {dimension_numbers = #tpu.dot_dimension_numbers<[1], [0], [0], [1], [0, 0, 1, 1], [], []>} : vector<8x32xbf16>, vector<32x32xbf16>, vector<8x32xf32> -> vector<8x32xf32>
    %30 = arith.truncf %10 : vector<8x32xf32> to vector<8x32xbf16>
    %31 = arith.truncf %20 : vector<32x32xf32> to vector<32x32xbf16>
    %cst_31 = arith.constant dense<0.000000e+00> : vector<8x32xf32>
    %32 = tpu.matmul %30, %31, %cst_31 {dimension_numbers = #tpu.dot_dimension_numbers<[1], [0], [0], [1], [0, 0, 1, 1], [], []>} : vector<8x32xbf16>, vector<32x32xbf16>, vector<8x32xf32> -> vector<8x32xf32>
    %33 = arith.truncf %10 : vector<8x32xf32> to vector<8x32xbf16>
    %34 = arith.truncf %22 : vector<32x32xf32> to vector<32x32xbf16>
    %cst_32 = arith.constant dense<0.000000e+00> : vector<8x32xf32>
    %35 = tpu.matmul %33, %34, %cst_32 {dimension_numbers = #tpu.dot_dimension_numbers<[1], [0], [0], [1], [0, 0, 1, 1], [], []>} : vector<8x32xbf16>, vector<32x32xbf16>, vector<8x32xf32> -> vector<8x32xf32>
    %36 = vector.extract_strided_slice %29 {offsets = [0, 0], sizes = [8, 8], strides = [1, 1]} : vector<8x32xf32> to vector<8x8xf32>
    %37 = vector.extract_strided_slice %32 {offsets = [0, 0], sizes = [8, 8], strides = [1, 1]} : vector<8x32xf32> to vector<8x8xf32>
    %38 = arith.truncf %36 : vector<8x8xf32> to vector<8x8xbf16>
    %39 = arith.truncf %37 : vector<8x8xf32> to vector<8x8xbf16>
    %cst_33 = arith.constant dense<0.000000e+00> : vector<8x8xf32>
    %40 = tpu.matmul %38, %39, %cst_33 {dimension_numbers = #tpu.dot_dimension_numbers<[1], [1], [0], [0], [0, 0, 1, 0], [], []>} : vector<8x8xbf16>, vector<8x8xbf16>, vector<8x8xf32> -> vector<8x8xf32>
    %cst_34 = arith.constant 0.000000e+00 : f32
    %41 = vector.broadcast %cst_34 : f32 to vector<8x8xf32>
    %42 = arith.cmpf ogt, %14, %41 : vector<8x8xf32>
    %cst_35 = arith.constant -1.000000e+20 : f32
    %43 = vector.broadcast %cst_35 : f32 to vector<8x8xf32>
    %44 = arith.select %42, %40, %43 : vector<8x8xi1>, vector<8x8xf32>
    %cst_36 = arith.constant 0.176776692 : f32
    %45 = vector.broadcast %cst_36 : f32 to vector<8x8xf32>
    %46 = arith.mulf %44, %45 : vector<8x8xf32>
    %cst_37 = arith.constant dense<0xFF800000> : vector<8xf32>
    %47 = vector.multi_reduction <maximumf>, %46, %cst_37 [1] : vector<8x8xf32> to vector<8xf32>
    %48 = vector.shape_cast %47 : vector<8xf32> to vector<8x1xf32>
    %49 = vector.broadcast %48 : vector<8x1xf32> to vector<8x8xf32>
    %50 = arith.subf %46, %49 : vector<8x8xf32>
    %51 = math.exp %50 : vector<8x8xf32>
    %cst_38 = arith.constant dense<0.000000e+00> : vector<8xf32>
    %52 = vector.multi_reduction <add>, %51, %cst_38 [1] : vector<8x8xf32> to vector<8xf32>
    %53 = vector.shape_cast %52 : vector<8xf32> to vector<8x1xf32>
    %54 = tpu.reciprocal %53 {approx = true} : vector<8x1xf32> -> vector<8x1xf32>
    %55 = vector.broadcast %54 : vector<8x1xf32> to vector<8x8xf32>
    %56 = arith.mulf %51, %55 : vector<8x8xf32>
    %57 = vector.extract_strided_slice %35 {offsets = [0, 0], sizes = [8, 8], strides = [1, 1]} : vector<8x32xf32> to vector<8x8xf32>
    %58 = arith.truncf %56 : vector<8x8xf32> to vector<8x8xbf16>
    %59 = arith.truncf %57 : vector<8x8xf32> to vector<8x8xbf16>
    %cst_39 = arith.constant dense<0.000000e+00> : vector<8x8xf32>
    %60 = tpu.matmul %58, %59, %cst_39 {dimension_numbers = #tpu.dot_dimension_numbers<[1], [0], [0], [1], [0, 0, 1, 1], [], []>} : vector<8x8xbf16>, vector<8x8xbf16>, vector<8x8xf32> -> vector<8x8xf32>
    %61 = vector.extract_strided_slice %29 {offsets = [0, 8], sizes = [8, 8], strides = [1, 1]} : vector<8x32xf32> to vector<8x8xf32>
    %62 = vector.extract_strided_slice %32 {offsets = [0, 8], sizes = [8, 8], strides = [1, 1]} : vector<8x32xf32> to vector<8x8xf32>
    %63 = arith.truncf %61 : vector<8x8xf32> to vector<8x8xbf16>
    %64 = arith.truncf %62 : vector<8x8xf32> to vector<8x8xbf16>
    %cst_40 = arith.constant dense<0.000000e+00> : vector<8x8xf32>
    %65 = tpu.matmul %63, %64, %cst_40 {dimension_numbers = #tpu.dot_dimension_numbers<[1], [1], [0], [0], [0, 0, 1, 0], [], []>} : vector<8x8xbf16>, vector<8x8xbf16>, vector<8x8xf32> -> vector<8x8xf32>
    %cst_41 = arith.constant 0.000000e+00 : f32
    %66 = vector.broadcast %cst_41 : f32 to vector<8x8xf32>
    %67 = arith.cmpf ogt, %14, %66 : vector<8x8xf32>
    %cst_42 = arith.constant -1.000000e+20 : f32
    %68 = vector.broadcast %cst_42 : f32 to vector<8x8xf32>
    %69 = arith.select %67, %65, %68 : vector<8x8xi1>, vector<8x8xf32>
    %cst_43 = arith.constant 0.176776692 : f32
    %70 = vector.broadcast %cst_43 : f32 to vector<8x8xf32>
    %71 = arith.mulf %69, %70 : vector<8x8xf32>
    %cst_44 = arith.constant dense<0xFF800000> : vector<8xf32>
    %72 = vector.multi_reduction <maximumf>, %71, %cst_44 [1] : vector<8x8xf32> to vector<8xf32>
    %73 = vector.shape_cast %72 : vector<8xf32> to vector<8x1xf32>
    %74 = vector.broadcast %73 : vector<8x1xf32> to vector<8x8xf32>
    %75 = arith.subf %71, %74 : vector<8x8xf32>
    %76 = math.exp %75 : vector<8x8xf32>
    %cst_45 = arith.constant dense<0.000000e+00> : vector<8xf32>
    %77 = vector.multi_reduction <add>, %76, %cst_45 [1] : vector<8x8xf32> to vector<8xf32>
    %78 = vector.shape_cast %77 : vector<8xf32> to vector<8x1xf32>
    %79 = tpu.reciprocal %78 {approx = true} : vector<8x1xf32> -> vector<8x1xf32>
    %80 = vector.broadcast %79 : vector<8x1xf32> to vector<8x8xf32>
    %81 = arith.mulf %76, %80 : vector<8x8xf32>
    %82 = vector.extract_strided_slice %35 {offsets = [0, 8], sizes = [8, 8], strides = [1, 1]} : vector<8x32xf32> to vector<8x8xf32>
    %83 = arith.truncf %81 : vector<8x8xf32> to vector<8x8xbf16>
    %84 = arith.truncf %82 : vector<8x8xf32> to vector<8x8xbf16>
    %cst_46 = arith.constant dense<0.000000e+00> : vector<8x8xf32>
    %85 = tpu.matmul %83, %84, %cst_46 {dimension_numbers = #tpu.dot_dimension_numbers<[1], [0], [0], [1], [0, 0, 1, 1], [], []>} : vector<8x8xbf16>, vector<8x8xbf16>, vector<8x8xf32> -> vector<8x8xf32>
    %86 = vector.extract_strided_slice %29 {offsets = [0, 16], sizes = [8, 8], strides = [1, 1]} : vector<8x32xf32> to vector<8x8xf32>
    %87 = vector.extract_strided_slice %32 {offsets = [0, 16], sizes = [8, 8], strides = [1, 1]} : vector<8x32xf32> to vector<8x8xf32>
    %88 = arith.truncf %86 : vector<8x8xf32> to vector<8x8xbf16>
    %89 = arith.truncf %87 : vector<8x8xf32> to vector<8x8xbf16>
    %cst_47 = arith.constant dense<0.000000e+00> : vector<8x8xf32>
    %90 = tpu.matmul %88, %89, %cst_47 {dimension_numbers = #tpu.dot_dimension_numbers<[1], [1], [0], [0], [0, 0, 1, 0], [], []>} : vector<8x8xbf16>, vector<8x8xbf16>, vector<8x8xf32> -> vector<8x8xf32>
    %cst_48 = arith.constant 0.000000e+00 : f32
    %91 = vector.broadcast %cst_48 : f32 to vector<8x8xf32>
    %92 = arith.cmpf ogt, %14, %91 : vector<8x8xf32>
    %cst_49 = arith.constant -1.000000e+20 : f32
    %93 = vector.broadcast %cst_49 : f32 to vector<8x8xf32>
    %94 = arith.select %92, %90, %93 : vector<8x8xi1>, vector<8x8xf32>
    %cst_50 = arith.constant 0.176776692 : f32
    %95 = vector.broadcast %cst_50 : f32 to vector<8x8xf32>
    %96 = arith.mulf %94, %95 : vector<8x8xf32>
    %cst_51 = arith.constant dense<0xFF800000> : vector<8xf32>
    %97 = vector.multi_reduction <maximumf>, %96, %cst_51 [1] : vector<8x8xf32> to vector<8xf32>
    %98 = vector.shape_cast %97 : vector<8xf32> to vector<8x1xf32>
    %99 = vector.broadcast %98 : vector<8x1xf32> to vector<8x8xf32>
    %100 = arith.subf %96, %99 : vector<8x8xf32>
    %101 = math.exp %100 : vector<8x8xf32>
    %cst_52 = arith.constant dense<0.000000e+00> : vector<8xf32>
    %102 = vector.multi_reduction <add>, %101, %cst_52 [1] : vector<8x8xf32> to vector<8xf32>
    %103 = vector.shape_cast %102 : vector<8xf32> to vector<8x1xf32>
    %104 = tpu.reciprocal %103 {approx = true} : vector<8x1xf32> -> vector<8x1xf32>
    %105 = vector.broadcast %104 : vector<8x1xf32> to vector<8x8xf32>
    %106 = arith.mulf %101, %105 : vector<8x8xf32>
    %107 = vector.extract_strided_slice %35 {offsets = [0, 16], sizes = [8, 8], strides = [1, 1]} : vector<8x32xf32> to vector<8x8xf32>
    %108 = arith.truncf %106 : vector<8x8xf32> to vector<8x8xbf16>
    %109 = arith.truncf %107 : vector<8x8xf32> to vector<8x8xbf16>
    %cst_53 = arith.constant dense<0.000000e+00> : vector<8x8xf32>
    %110 = tpu.matmul %108, %109, %cst_53 {dimension_numbers = #tpu.dot_dimension_numbers<[1], [0], [0], [1], [0, 0, 1, 1], [], []>} : vector<8x8xbf16>, vector<8x8xbf16>, vector<8x8xf32> -> vector<8x8xf32>
    %111 = vector.extract_strided_slice %29 {offsets = [0, 24], sizes = [8, 8], strides = [1, 1]} : vector<8x32xf32> to vector<8x8xf32>
    %112 = vector.extract_strided_slice %32 {offsets = [0, 24], sizes = [8, 8], strides = [1, 1]} : vector<8x32xf32> to vector<8x8xf32>
    %113 = arith.truncf %111 : vector<8x8xf32> to vector<8x8xbf16>
    %114 = arith.truncf %112 : vector<8x8xf32> to vector<8x8xbf16>
    %cst_54 = arith.constant dense<0.000000e+00> : vector<8x8xf32>
    %115 = tpu.matmul %113, %114, %cst_54 {dimension_numbers = #tpu.dot_dimension_numbers<[1], [1], [0], [0], [0, 0, 1, 0], [], []>} : vector<8x8xbf16>, vector<8x8xbf16>, vector<8x8xf32> -> vector<8x8xf32>
    %cst_55 = arith.constant 0.000000e+00 : f32
    %116 = vector.broadcast %cst_55 : f32 to vector<8x8xf32>
    %117 = arith.cmpf ogt, %14, %116 : vector<8x8xf32>
    %cst_56 = arith.constant -1.000000e+20 : f32
    %118 = vector.broadcast %cst_56 : f32 to vector<8x8xf32>
    %119 = arith.select %117, %115, %118 : vector<8x8xi1>, vector<8x8xf32>
    %cst_57 = arith.constant 0.176776692 : f32
    %120 = vector.broadcast %cst_57 : f32 to vector<8x8xf32>
    %121 = arith.mulf %119, %120 : vector<8x8xf32>
    %cst_58 = arith.constant dense<0xFF800000> : vector<8xf32>
    %122 = vector.multi_reduction <maximumf>, %121, %cst_58 [1] : vector<8x8xf32> to vector<8xf32>
    %123 = vector.shape_cast %122 : vector<8xf32> to vector<8x1xf32>
    %124 = vector.broadcast %123 : vector<8x1xf32> to vector<8x8xf32>
    %125 = arith.subf %121, %124 : vector<8x8xf32>
    %126 = math.exp %125 : vector<8x8xf32>
    %cst_59 = arith.constant dense<0.000000e+00> : vector<8xf32>
    %127 = vector.multi_reduction <add>, %126, %cst_59 [1] : vector<8x8xf32> to vector<8xf32>
    %128 = vector.shape_cast %127 : vector<8xf32> to vector<8x1xf32>
    %129 = tpu.reciprocal %128 {approx = true} : vector<8x1xf32> -> vector<8x1xf32>
    %130 = vector.broadcast %129 : vector<8x1xf32> to vector<8x8xf32>
    %131 = arith.mulf %126, %130 : vector<8x8xf32>
    %132 = vector.extract_strided_slice %35 {offsets = [0, 24], sizes = [8, 8], strides = [1, 1]} : vector<8x32xf32> to vector<8x8xf32>
    %133 = arith.truncf %131 : vector<8x8xf32> to vector<8x8xbf16>
    %134 = arith.truncf %132 : vector<8x8xf32> to vector<8x8xbf16>
    %cst_60 = arith.constant dense<0.000000e+00> : vector<8x8xf32>
    %135 = tpu.matmul %133, %134, %cst_60 {dimension_numbers = #tpu.dot_dimension_numbers<[1], [0], [0], [1], [0, 0, 1, 1], [], []>} : vector<8x8xbf16>, vector<8x8xbf16>, vector<8x8xf32> -> vector<8x8xf32>
    %136 = tpu.concatenate %60, %85, %110, %135 in 1 : vector<8x8xf32>, vector<8x8xf32>, vector<8x8xf32>, vector<8x8xf32> -> vector<8x32xf32>
    %137 = arith.truncf %136 : vector<8x32xf32> to vector<8x32xbf16>
    %138 = arith.truncf %24 : vector<32x32xf32> to vector<32x32xbf16>
    %cst_61 = arith.constant dense<0.000000e+00> : vector<8x32xf32>
    %139 = tpu.matmul %137, %138, %cst_61 {dimension_numbers = #tpu.dot_dimension_numbers<[1], [0], [0], [1], [0, 0, 1, 1], [], []>} : vector<8x32xbf16>, vector<32x32xbf16>, vector<8x32xf32> -> vector<8x32xf32>
    %140 = vector.broadcast %26 : vector<1x32xf32> to vector<8x32xf32>
    %141 = arith.addf %139, %140 : vector<8x32xf32>
    %c0_62 = arith.constant 0 : index
    %c0_63 = arith.constant 0 : index
    %c0_64 = arith.constant 0 : index
    %142 = vector.load %arg14[%c0_62, %c0_63, %c0_64] : memref<2x1x32xf32, #tpu.memory_space<vmem>>, vector<1x1x32xf32>
    %143 = vector.shape_cast %142 : vector<1x1x32xf32> to vector<1x32xf32>
    %c0_65 = arith.constant 0 : index
    %c0_66 = arith.constant 0 : index
    %c0_67 = arith.constant 0 : index
    %144 = vector.load %arg15[%c0_65, %c0_66, %c0_67] : memref<2x1x32xf32, #tpu.memory_space<vmem>>, vector<1x1x32xf32>
    %145 = vector.shape_cast %144 : vector<1x1x32xf32> to vector<1x32xf32>
    %146 = arith.addf %141, %10 : vector<8x32xf32>
    %cst_68 = arith.constant dense<0.000000e+00> : vector<8xf32>
    %147 = vector.multi_reduction <add>, %146, %cst_68 [1] : vector<8x32xf32> to vector<8xf32>
    %148 = vector.shape_cast %147 : vector<8xf32> to vector<8x1xf32>
    %cst_69 = arith.constant 3.200000e+01 : f32
    %149 = vector.broadcast %cst_69 : f32 to vector<8x1xf32>
    %150 = arith.divf %148, %149 : vector<8x1xf32>
    %151 = vector.broadcast %150 : vector<8x1xf32> to vector<8x32xf32>
    %152 = arith.subf %146, %151 : vector<8x32xf32>
    %153 = arith.mulf %152, %152 : vector<8x32xf32>
    %cst_70 = arith.constant dense<0.000000e+00> : vector<8xf32>
    %154 = vector.multi_reduction <add>, %153, %cst_70 [1] : vector<8x32xf32> to vector<8xf32>
    %155 = vector.shape_cast %154 : vector<8xf32> to vector<8x1xf32>
    %cst_71 = arith.constant 3.200000e+01 : f32
    %156 = vector.broadcast %cst_71 : f32 to vector<8x1xf32>
    %157 = arith.divf %155, %156 : vector<8x1xf32>
    %158 = vector.broadcast %150 : vector<8x1xf32> to vector<8x32xf32>
    %159 = arith.subf %146, %158 : vector<8x32xf32>
    %cst_72 = arith.constant 9.99999974E-6 : f32
    %160 = vector.broadcast %cst_72 : f32 to vector<8x1xf32>
    %161 = arith.addf %157, %160 : vector<8x1xf32>
    %162 = math.rsqrt %161 : vector<8x1xf32>
    %163 = vector.broadcast %162 : vector<8x1xf32> to vector<8x32xf32>
    %164 = arith.mulf %159, %163 : vector<8x32xf32>
    %165 = vector.broadcast %143 : vector<1x32xf32> to vector<8x32xf32>
    %166 = arith.mulf %164, %165 : vector<8x32xf32>
    %167 = vector.broadcast %145 : vector<1x32xf32> to vector<8x32xf32>
    %168 = arith.addf %166, %167 : vector<8x32xf32>
    %c0_73 = arith.constant 0 : index
    %c0_74 = arith.constant 0 : index
    %c0_75 = arith.constant 0 : index
    %169 = vector.load %arg16[%c0_73, %c0_74, %c0_75] : memref<2x32x32xf32, #tpu.memory_space<vmem>>, vector<1x32x32xf32>
    %170 = vector.shape_cast %169 : vector<1x32x32xf32> to vector<32x32xf32>
    %c0_76 = arith.constant 0 : index
    %c0_77 = arith.constant 0 : index
    %c0_78 = arith.constant 0 : index
    %171 = vector.load %arg17[%c0_76, %c0_77, %c0_78] : memref<2x32x32xf32, #tpu.memory_space<vmem>>, vector<1x32x32xf32>
    %172 = vector.shape_cast %171 : vector<1x32x32xf32> to vector<32x32xf32>
    %c0_79 = arith.constant 0 : index
    %c0_80 = arith.constant 0 : index
    %c0_81 = arith.constant 0 : index
    %173 = vector.load %arg18[%c0_79, %c0_80, %c0_81] : memref<2x32x32xf32, #tpu.memory_space<vmem>>, vector<1x32x32xf32>
    %174 = vector.shape_cast %173 : vector<1x32x32xf32> to vector<32x32xf32>
    %c0_82 = arith.constant 0 : index
    %c0_83 = arith.constant 0 : index
    %c0_84 = arith.constant 0 : index
    %175 = vector.load %arg19[%c0_82, %c0_83, %c0_84] : memref<2x32x32xf32, #tpu.memory_space<vmem>>, vector<1x32x32xf32>
    %176 = vector.shape_cast %175 : vector<1x32x32xf32> to vector<32x32xf32>
    %c0_85 = arith.constant 0 : index
    %c0_86 = arith.constant 0 : index
    %c0_87 = arith.constant 0 : index
    %177 = vector.load %arg20[%c0_85, %c0_86, %c0_87] : memref<2x1x32xf32, #tpu.memory_space<vmem>>, vector<1x1x32xf32>
    %178 = vector.shape_cast %177 : vector<1x1x32xf32> to vector<1x32xf32>
    %179 = arith.truncf %168 : vector<8x32xf32> to vector<8x32xbf16>
    %180 = arith.truncf %170 : vector<32x32xf32> to vector<32x32xbf16>
    %cst_88 = arith.constant dense<0.000000e+00> : vector<8x32xf32>
    %181 = tpu.matmul %179, %180, %cst_88 {dimension_numbers = #tpu.dot_dimension_numbers<[1], [0], [0], [1], [0, 0, 1, 1], [], []>} : vector<8x32xbf16>, vector<32x32xbf16>, vector<8x32xf32> -> vector<8x32xf32>
    %182 = arith.truncf %12 : vector<8x32xf32> to vector<8x32xbf16>
    %183 = arith.truncf %172 : vector<32x32xf32> to vector<32x32xbf16>
    %cst_89 = arith.constant dense<0.000000e+00> : vector<8x32xf32>
    %184 = tpu.matmul %182, %183, %cst_89 {dimension_numbers = #tpu.dot_dimension_numbers<[1], [0], [0], [1], [0, 0, 1, 1], [], []>} : vector<8x32xbf16>, vector<32x32xbf16>, vector<8x32xf32> -> vector<8x32xf32>
    %185 = arith.truncf %12 : vector<8x32xf32> to vector<8x32xbf16>
    %186 = arith.truncf %174 : vector<32x32xf32> to vector<32x32xbf16>
    %cst_90 = arith.constant dense<0.000000e+00> : vector<8x32xf32>
    %187 = tpu.matmul %185, %186, %cst_90 {dimension_numbers = #tpu.dot_dimension_numbers<[1], [0], [0], [1], [0, 0, 1, 1], [], []>} : vector<8x32xbf16>, vector<32x32xbf16>, vector<8x32xf32> -> vector<8x32xf32>
    %188 = vector.extract_strided_slice %181 {offsets = [0, 0], sizes = [8, 8], strides = [1, 1]} : vector<8x32xf32> to vector<8x8xf32>
    %189 = vector.extract_strided_slice %184 {offsets = [0, 0], sizes = [8, 8], strides = [1, 1]} : vector<8x32xf32> to vector<8x8xf32>
    %190 = arith.truncf %188 : vector<8x8xf32> to vector<8x8xbf16>
    %191 = arith.truncf %189 : vector<8x8xf32> to vector<8x8xbf16>
    %cst_91 = arith.constant dense<0.000000e+00> : vector<8x8xf32>
    %192 = tpu.matmul %190, %191, %cst_91 {dimension_numbers = #tpu.dot_dimension_numbers<[1], [1], [0], [0], [0, 0, 1, 0], [], []>} : vector<8x8xbf16>, vector<8x8xbf16>, vector<8x8xf32> -> vector<8x8xf32>
    %cst_92 = arith.constant 0.000000e+00 : f32
    %193 = vector.broadcast %cst_92 : f32 to vector<1x8xf32>
    %194 = arith.cmpf ogt, %16, %193 : vector<1x8xf32>
    %cst_93 = arith.constant -1.000000e+20 : f32
    %195 = vector.shape_cast %194 : vector<1x8xi1> to vector<1x8xi1>
    %196 = vector.broadcast %195 : vector<1x8xi1> to vector<8x8xi1>
    %197 = vector.broadcast %cst_93 : f32 to vector<8x8xf32>
    %198 = arith.select %196, %192, %197 : vector<8x8xi1>, vector<8x8xf32>
    %cst_94 = arith.constant 0.176776692 : f32
    %199 = vector.broadcast %cst_94 : f32 to vector<8x8xf32>
    %200 = arith.mulf %198, %199 : vector<8x8xf32>
    %cst_95 = arith.constant dense<0xFF800000> : vector<8xf32>
    %201 = vector.multi_reduction <maximumf>, %200, %cst_95 [1] : vector<8x8xf32> to vector<8xf32>
    %202 = vector.shape_cast %201 : vector<8xf32> to vector<8x1xf32>
    %203 = vector.broadcast %202 : vector<8x1xf32> to vector<8x8xf32>
    %204 = arith.subf %200, %203 : vector<8x8xf32>
    %205 = math.exp %204 : vector<8x8xf32>
    %cst_96 = arith.constant dense<0.000000e+00> : vector<8xf32>
    %206 = vector.multi_reduction <add>, %205, %cst_96 [1] : vector<8x8xf32> to vector<8xf32>
    %207 = vector.shape_cast %206 : vector<8xf32> to vector<8x1xf32>
    %208 = tpu.reciprocal %207 {approx = true} : vector<8x1xf32> -> vector<8x1xf32>
    %209 = vector.broadcast %208 : vector<8x1xf32> to vector<8x8xf32>
    %210 = arith.mulf %205, %209 : vector<8x8xf32>
    %211 = vector.extract_strided_slice %187 {offsets = [0, 0], sizes = [8, 8], strides = [1, 1]} : vector<8x32xf32> to vector<8x8xf32>
    %212 = arith.truncf %210 : vector<8x8xf32> to vector<8x8xbf16>
    %213 = arith.truncf %211 : vector<8x8xf32> to vector<8x8xbf16>
    %cst_97 = arith.constant dense<0.000000e+00> : vector<8x8xf32>
    %214 = tpu.matmul %212, %213, %cst_97 {dimension_numbers = #tpu.dot_dimension_numbers<[1], [0], [0], [1], [0, 0, 1, 1], [], []>} : vector<8x8xbf16>, vector<8x8xbf16>, vector<8x8xf32> -> vector<8x8xf32>
    %215 = vector.extract_strided_slice %181 {offsets = [0, 8], sizes = [8, 8], strides = [1, 1]} : vector<8x32xf32> to vector<8x8xf32>
    %216 = vector.extract_strided_slice %184 {offsets = [0, 8], sizes = [8, 8], strides = [1, 1]} : vector<8x32xf32> to vector<8x8xf32>
    %217 = arith.truncf %215 : vector<8x8xf32> to vector<8x8xbf16>
    %218 = arith.truncf %216 : vector<8x8xf32> to vector<8x8xbf16>
    %cst_98 = arith.constant dense<0.000000e+00> : vector<8x8xf32>
    %219 = tpu.matmul %217, %218, %cst_98 {dimension_numbers = #tpu.dot_dimension_numbers<[1], [1], [0], [0], [0, 0, 1, 0], [], []>} : vector<8x8xbf16>, vector<8x8xbf16>, vector<8x8xf32> -> vector<8x8xf32>
    %cst_99 = arith.constant 0.000000e+00 : f32
    %220 = vector.broadcast %cst_99 : f32 to vector<1x8xf32>
    %221 = arith.cmpf ogt, %16, %220 : vector<1x8xf32>
    %cst_100 = arith.constant -1.000000e+20 : f32
    %222 = vector.shape_cast %221 : vector<1x8xi1> to vector<1x8xi1>
    %223 = vector.broadcast %222 : vector<1x8xi1> to vector<8x8xi1>
    %224 = vector.broadcast %cst_100 : f32 to vector<8x8xf32>
    %225 = arith.select %223, %219, %224 : vector<8x8xi1>, vector<8x8xf32>
    %cst_101 = arith.constant 0.176776692 : f32
    %226 = vector.broadcast %cst_101 : f32 to vector<8x8xf32>
    %227 = arith.mulf %225, %226 : vector<8x8xf32>
    %cst_102 = arith.constant dense<0xFF800000> : vector<8xf32>
    %228 = vector.multi_reduction <maximumf>, %227, %cst_102 [1] : vector<8x8xf32> to vector<8xf32>
    %229 = vector.shape_cast %228 : vector<8xf32> to vector<8x1xf32>
    %230 = vector.broadcast %229 : vector<8x1xf32> to vector<8x8xf32>
    %231 = arith.subf %227, %230 : vector<8x8xf32>
    %232 = math.exp %231 : vector<8x8xf32>
    %cst_103 = arith.constant dense<0.000000e+00> : vector<8xf32>
    %233 = vector.multi_reduction <add>, %232, %cst_103 [1] : vector<8x8xf32> to vector<8xf32>
    %234 = vector.shape_cast %233 : vector<8xf32> to vector<8x1xf32>
    %235 = tpu.reciprocal %234 {approx = true} : vector<8x1xf32> -> vector<8x1xf32>
    %236 = vector.broadcast %235 : vector<8x1xf32> to vector<8x8xf32>
    %237 = arith.mulf %232, %236 : vector<8x8xf32>
    %238 = vector.extract_strided_slice %187 {offsets = [0, 8], sizes = [8, 8], strides = [1, 1]} : vector<8x32xf32> to vector<8x8xf32>
    %239 = arith.truncf %237 : vector<8x8xf32> to vector<8x8xbf16>
    %240 = arith.truncf %238 : vector<8x8xf32> to vector<8x8xbf16>
    %cst_104 = arith.constant dense<0.000000e+00> : vector<8x8xf32>
    %241 = tpu.matmul %239, %240, %cst_104 {dimension_numbers = #tpu.dot_dimension_numbers<[1], [0], [0], [1], [0, 0, 1, 1], [], []>} : vector<8x8xbf16>, vector<8x8xbf16>, vector<8x8xf32> -> vector<8x8xf32>
    %242 = vector.extract_strided_slice %181 {offsets = [0, 16], sizes = [8, 8], strides = [1, 1]} : vector<8x32xf32> to vector<8x8xf32>
    %243 = vector.extract_strided_slice %184 {offsets = [0, 16], sizes = [8, 8], strides = [1, 1]} : vector<8x32xf32> to vector<8x8xf32>
    %244 = arith.truncf %242 : vector<8x8xf32> to vector<8x8xbf16>
    %245 = arith.truncf %243 : vector<8x8xf32> to vector<8x8xbf16>
    %cst_105 = arith.constant dense<0.000000e+00> : vector<8x8xf32>
    %246 = tpu.matmul %244, %245, %cst_105 {dimension_numbers = #tpu.dot_dimension_numbers<[1], [1], [0], [0], [0, 0, 1, 0], [], []>} : vector<8x8xbf16>, vector<8x8xbf16>, vector<8x8xf32> -> vector<8x8xf32>
    %cst_106 = arith.constant 0.000000e+00 : f32
    %247 = vector.broadcast %cst_106 : f32 to vector<1x8xf32>
    %248 = arith.cmpf ogt, %16, %247 : vector<1x8xf32>
    %cst_107 = arith.constant -1.000000e+20 : f32
    %249 = vector.shape_cast %248 : vector<1x8xi1> to vector<1x8xi1>
    %250 = vector.broadcast %249 : vector<1x8xi1> to vector<8x8xi1>
    %251 = vector.broadcast %cst_107 : f32 to vector<8x8xf32>
    %252 = arith.select %250, %246, %251 : vector<8x8xi1>, vector<8x8xf32>
    %cst_108 = arith.constant 0.176776692 : f32
    %253 = vector.broadcast %cst_108 : f32 to vector<8x8xf32>
    %254 = arith.mulf %252, %253 : vector<8x8xf32>
    %cst_109 = arith.constant dense<0xFF800000> : vector<8xf32>
    %255 = vector.multi_reduction <maximumf>, %254, %cst_109 [1] : vector<8x8xf32> to vector<8xf32>
    %256 = vector.shape_cast %255 : vector<8xf32> to vector<8x1xf32>
    %257 = vector.broadcast %256 : vector<8x1xf32> to vector<8x8xf32>
    %258 = arith.subf %254, %257 : vector<8x8xf32>
    %259 = math.exp %258 : vector<8x8xf32>
    %cst_110 = arith.constant dense<0.000000e+00> : vector<8xf32>
    %260 = vector.multi_reduction <add>, %259, %cst_110 [1] : vector<8x8xf32> to vector<8xf32>
    %261 = vector.shape_cast %260 : vector<8xf32> to vector<8x1xf32>
    %262 = tpu.reciprocal %261 {approx = true} : vector<8x1xf32> -> vector<8x1xf32>
    %263 = vector.broadcast %262 : vector<8x1xf32> to vector<8x8xf32>
    %264 = arith.mulf %259, %263 : vector<8x8xf32>
    %265 = vector.extract_strided_slice %187 {offsets = [0, 16], sizes = [8, 8], strides = [1, 1]} : vector<8x32xf32> to vector<8x8xf32>
    %266 = arith.truncf %264 : vector<8x8xf32> to vector<8x8xbf16>
    %267 = arith.truncf %265 : vector<8x8xf32> to vector<8x8xbf16>
    %cst_111 = arith.constant dense<0.000000e+00> : vector<8x8xf32>
    %268 = tpu.matmul %266, %267, %cst_111 {dimension_numbers = #tpu.dot_dimension_numbers<[1], [0], [0], [1], [0, 0, 1, 1], [], []>} : vector<8x8xbf16>, vector<8x8xbf16>, vector<8x8xf32> -> vector<8x8xf32>
    %269 = vector.extract_strided_slice %181 {offsets = [0, 24], sizes = [8, 8], strides = [1, 1]} : vector<8x32xf32> to vector<8x8xf32>
    %270 = vector.extract_strided_slice %184 {offsets = [0, 24], sizes = [8, 8], strides = [1, 1]} : vector<8x32xf32> to vector<8x8xf32>
    %271 = arith.truncf %269 : vector<8x8xf32> to vector<8x8xbf16>
    %272 = arith.truncf %270 : vector<8x8xf32> to vector<8x8xbf16>
    %cst_112 = arith.constant dense<0.000000e+00> : vector<8x8xf32>
    %273 = tpu.matmul %271, %272, %cst_112 {dimension_numbers = #tpu.dot_dimension_numbers<[1], [1], [0], [0], [0, 0, 1, 0], [], []>} : vector<8x8xbf16>, vector<8x8xbf16>, vector<8x8xf32> -> vector<8x8xf32>
    %cst_113 = arith.constant 0.000000e+00 : f32
    %274 = vector.broadcast %cst_113 : f32 to vector<1x8xf32>
    %275 = arith.cmpf ogt, %16, %274 : vector<1x8xf32>
    %cst_114 = arith.constant -1.000000e+20 : f32
    %276 = vector.shape_cast %275 : vector<1x8xi1> to vector<1x8xi1>
    %277 = vector.broadcast %276 : vector<1x8xi1> to vector<8x8xi1>
    %278 = vector.broadcast %cst_114 : f32 to vector<8x8xf32>
    %279 = arith.select %277, %273, %278 : vector<8x8xi1>, vector<8x8xf32>
    %cst_115 = arith.constant 0.176776692 : f32
    %280 = vector.broadcast %cst_115 : f32 to vector<8x8xf32>
    %281 = arith.mulf %279, %280 : vector<8x8xf32>
    %cst_116 = arith.constant dense<0xFF800000> : vector<8xf32>
    %282 = vector.multi_reduction <maximumf>, %281, %cst_116 [1] : vector<8x8xf32> to vector<8xf32>
    %283 = vector.shape_cast %282 : vector<8xf32> to vector<8x1xf32>
    %284 = vector.broadcast %283 : vector<8x1xf32> to vector<8x8xf32>
    %285 = arith.subf %281, %284 : vector<8x8xf32>
    %286 = math.exp %285 : vector<8x8xf32>
    %cst_117 = arith.constant dense<0.000000e+00> : vector<8xf32>
    %287 = vector.multi_reduction <add>, %286, %cst_117 [1] : vector<8x8xf32> to vector<8xf32>
    %288 = vector.shape_cast %287 : vector<8xf32> to vector<8x1xf32>
    %289 = tpu.reciprocal %288 {approx = true} : vector<8x1xf32> -> vector<8x1xf32>
    %290 = vector.broadcast %289 : vector<8x1xf32> to vector<8x8xf32>
    %291 = arith.mulf %286, %290 : vector<8x8xf32>
    %292 = vector.extract_strided_slice %187 {offsets = [0, 24], sizes = [8, 8], strides = [1, 1]} : vector<8x32xf32> to vector<8x8xf32>
    %293 = arith.truncf %291 : vector<8x8xf32> to vector<8x8xbf16>
    %294 = arith.truncf %292 : vector<8x8xf32> to vector<8x8xbf16>
    %cst_118 = arith.constant dense<0.000000e+00> : vector<8x8xf32>
    %295 = tpu.matmul %293, %294, %cst_118 {dimension_numbers = #tpu.dot_dimension_numbers<[1], [0], [0], [1], [0, 0, 1, 1], [], []>} : vector<8x8xbf16>, vector<8x8xbf16>, vector<8x8xf32> -> vector<8x8xf32>
    %296 = tpu.concatenate %214, %241, %268, %295 in 1 : vector<8x8xf32>, vector<8x8xf32>, vector<8x8xf32>, vector<8x8xf32> -> vector<8x32xf32>
    %297 = arith.truncf %296 : vector<8x32xf32> to vector<8x32xbf16>
    %298 = arith.truncf %176 : vector<32x32xf32> to vector<32x32xbf16>
    %cst_119 = arith.constant dense<0.000000e+00> : vector<8x32xf32>
    %299 = tpu.matmul %297, %298, %cst_119 {dimension_numbers = #tpu.dot_dimension_numbers<[1], [0], [0], [1], [0, 0, 1, 1], [], []>} : vector<8x32xbf16>, vector<32x32xbf16>, vector<8x32xf32> -> vector<8x32xf32>
    %300 = vector.broadcast %178 : vector<1x32xf32> to vector<8x32xf32>
    %301 = arith.addf %299, %300 : vector<8x32xf32>
    %c0_120 = arith.constant 0 : index
    %c0_121 = arith.constant 0 : index
    %c0_122 = arith.constant 0 : index
    %302 = vector.load %arg21[%c0_120, %c0_121, %c0_122] : memref<2x1x32xf32, #tpu.memory_space<vmem>>, vector<1x1x32xf32>
    %303 = vector.shape_cast %302 : vector<1x1x32xf32> to vector<1x32xf32>
    %c0_123 = arith.constant 0 : index
    %c0_124 = arith.constant 0 : index
    %c0_125 = arith.constant 0 : index
    %304 = vector.load %arg22[%c0_123, %c0_124, %c0_125] : memref<2x1x32xf32, #tpu.memory_space<vmem>>, vector<1x1x32xf32>
    %305 = vector.shape_cast %304 : vector<1x1x32xf32> to vector<1x32xf32>
    %306 = arith.addf %301, %168 : vector<8x32xf32>
    %cst_126 = arith.constant dense<0.000000e+00> : vector<8xf32>
    %307 = vector.multi_reduction <add>, %306, %cst_126 [1] : vector<8x32xf32> to vector<8xf32>
    %308 = vector.shape_cast %307 : vector<8xf32> to vector<8x1xf32>
    %cst_127 = arith.constant 3.200000e+01 : f32
    %309 = vector.broadcast %cst_127 : f32 to vector<8x1xf32>
    %310 = arith.divf %308, %309 : vector<8x1xf32>
    %311 = vector.broadcast %310 : vector<8x1xf32> to vector<8x32xf32>
    %312 = arith.subf %306, %311 : vector<8x32xf32>
    %313 = arith.mulf %312, %312 : vector<8x32xf32>
    %cst_128 = arith.constant dense<0.000000e+00> : vector<8xf32>
    %314 = vector.multi_reduction <add>, %313, %cst_128 [1] : vector<8x32xf32> to vector<8xf32>
    %315 = vector.shape_cast %314 : vector<8xf32> to vector<8x1xf32>
    %cst_129 = arith.constant 3.200000e+01 : f32
    %316 = vector.broadcast %cst_129 : f32 to vector<8x1xf32>
    %317 = arith.divf %315, %316 : vector<8x1xf32>
    %318 = vector.broadcast %310 : vector<8x1xf32> to vector<8x32xf32>
    %319 = arith.subf %306, %318 : vector<8x32xf32>
    %cst_130 = arith.constant 9.99999974E-6 : f32
    %320 = vector.broadcast %cst_130 : f32 to vector<8x1xf32>
    %321 = arith.addf %317, %320 : vector<8x1xf32>
    %322 = math.rsqrt %321 : vector<8x1xf32>
    %323 = vector.broadcast %322 : vector<8x1xf32> to vector<8x32xf32>
    %324 = arith.mulf %319, %323 : vector<8x32xf32>
    %325 = vector.broadcast %303 : vector<1x32xf32> to vector<8x32xf32>
    %326 = arith.mulf %324, %325 : vector<8x32xf32>
    %327 = vector.broadcast %305 : vector<1x32xf32> to vector<8x32xf32>
    %328 = arith.addf %326, %327 : vector<8x32xf32>
    %c0_131 = arith.constant 0 : index
    %c0_132 = arith.constant 0 : index
    %c0_133 = arith.constant 0 : index
    %329 = vector.load %arg23[%c0_131, %c0_132, %c0_133] : memref<2x32x64xf32, #tpu.memory_space<vmem>>, vector<1x32x64xf32>
    %330 = vector.shape_cast %329 : vector<1x32x64xf32> to vector<32x64xf32>
    %331 = arith.truncf %328 : vector<8x32xf32> to vector<8x32xbf16>
    %332 = arith.truncf %330 : vector<32x64xf32> to vector<32x64xbf16>
    %cst_134 = arith.constant dense<0.000000e+00> : vector<8x64xf32>
    %333 = tpu.matmul %331, %332, %cst_134 {dimension_numbers = #tpu.dot_dimension_numbers<[1], [0], [0], [1], [0, 0, 1, 1], [], []>} : vector<8x32xbf16>, vector<32x64xbf16>, vector<8x64xf32> -> vector<8x64xf32>
    %c0_135 = arith.constant 0 : index
    %c0_136 = arith.constant 0 : index
    %c0_137 = arith.constant 0 : index
    %334 = vector.load %arg24[%c0_135, %c0_136, %c0_137] : memref<2x1x64xf32, #tpu.memory_space<vmem>>, vector<1x1x64xf32>
    %335 = vector.shape_cast %334 : vector<1x1x64xf32> to vector<1x64xf32>
    %336 = vector.broadcast %335 : vector<1x64xf32> to vector<8x64xf32>
    %337 = arith.addf %333, %336 : vector<8x64xf32>
    %cst_138 = arith.constant 0.000000e+00 : f32
    %338 = vector.broadcast %cst_138 : f32 to vector<8x64xf32>
    %339 = arith.maximumf %337, %338 : vector<8x64xf32>
    %c0_139 = arith.constant 0 : index
    %c0_140 = arith.constant 0 : index
    %c0_141 = arith.constant 0 : index
    %340 = vector.load %arg25[%c0_139, %c0_140, %c0_141] : memref<2x64x32xf32, #tpu.memory_space<vmem>>, vector<1x64x32xf32>
    %341 = vector.shape_cast %340 : vector<1x64x32xf32> to vector<64x32xf32>
    %342 = arith.truncf %339 : vector<8x64xf32> to vector<8x64xbf16>
    %343 = arith.truncf %341 : vector<64x32xf32> to vector<64x32xbf16>
    %cst_142 = arith.constant dense<0.000000e+00> : vector<8x32xf32>
    %344 = tpu.matmul %342, %343, %cst_142 {dimension_numbers = #tpu.dot_dimension_numbers<[1], [0], [0], [1], [0, 0, 1, 1], [], []>} : vector<8x64xbf16>, vector<64x32xbf16>, vector<8x32xf32> -> vector<8x32xf32>
    %c0_143 = arith.constant 0 : index
    %c0_144 = arith.constant 0 : index
    %c0_145 = arith.constant 0 : index
    %345 = vector.load %arg26[%c0_143, %c0_144, %c0_145] : memref<2x1x32xf32, #tpu.memory_space<vmem>>, vector<1x1x32xf32>
    %346 = vector.shape_cast %345 : vector<1x1x32xf32> to vector<1x32xf32>
    %347 = vector.broadcast %346 : vector<1x32xf32> to vector<8x32xf32>
    %348 = arith.addf %344, %347 : vector<8x32xf32>
    %c0_146 = arith.constant 0 : index
    %c0_147 = arith.constant 0 : index
    %c0_148 = arith.constant 0 : index
    %349 = vector.load %arg27[%c0_146, %c0_147, %c0_148] : memref<2x1x32xf32, #tpu.memory_space<vmem>>, vector<1x1x32xf32>
    %350 = vector.shape_cast %349 : vector<1x1x32xf32> to vector<1x32xf32>
    %c0_149 = arith.constant 0 : index
    %c0_150 = arith.constant 0 : index
    %c0_151 = arith.constant 0 : index
    %351 = vector.load %arg28[%c0_149, %c0_150, %c0_151] : memref<2x1x32xf32, #tpu.memory_space<vmem>>, vector<1x1x32xf32>
    %352 = vector.shape_cast %351 : vector<1x1x32xf32> to vector<1x32xf32>
    %353 = arith.addf %348, %328 : vector<8x32xf32>
    %cst_152 = arith.constant dense<0.000000e+00> : vector<8xf32>
    %354 = vector.multi_reduction <add>, %353, %cst_152 [1] : vector<8x32xf32> to vector<8xf32>
    %355 = vector.shape_cast %354 : vector<8xf32> to vector<8x1xf32>
    %cst_153 = arith.constant 3.200000e+01 : f32
    %356 = vector.broadcast %cst_153 : f32 to vector<8x1xf32>
    %357 = arith.divf %355, %356 : vector<8x1xf32>
    %358 = vector.broadcast %357 : vector<8x1xf32> to vector<8x32xf32>
    %359 = arith.subf %353, %358 : vector<8x32xf32>
    %360 = arith.mulf %359, %359 : vector<8x32xf32>
    %cst_154 = arith.constant dense<0.000000e+00> : vector<8xf32>
    %361 = vector.multi_reduction <add>, %360, %cst_154 [1] : vector<8x32xf32> to vector<8xf32>
    %362 = vector.shape_cast %361 : vector<8xf32> to vector<8x1xf32>
    %cst_155 = arith.constant 3.200000e+01 : f32
    %363 = vector.broadcast %cst_155 : f32 to vector<8x1xf32>
    %364 = arith.divf %362, %363 : vector<8x1xf32>
    %365 = vector.broadcast %357 : vector<8x1xf32> to vector<8x32xf32>
    %366 = arith.subf %353, %365 : vector<8x32xf32>
    %cst_156 = arith.constant 9.99999974E-6 : f32
    %367 = vector.broadcast %cst_156 : f32 to vector<8x1xf32>
    %368 = arith.addf %364, %367 : vector<8x1xf32>
    %369 = math.rsqrt %368 : vector<8x1xf32>
    %370 = vector.broadcast %369 : vector<8x1xf32> to vector<8x32xf32>
    %371 = arith.mulf %366, %370 : vector<8x32xf32>
    %372 = vector.broadcast %350 : vector<1x32xf32> to vector<8x32xf32>
    %373 = arith.mulf %371, %372 : vector<8x32xf32>
    %374 = vector.broadcast %352 : vector<1x32xf32> to vector<8x32xf32>
    %375 = arith.addf %373, %374 : vector<8x32xf32>
    %c1 = arith.constant 1 : index
    %c0_157 = arith.constant 0 : index
    %c0_158 = arith.constant 0 : index
    %376 = vector.load %arg9[%c1, %c0_157, %c0_158] : memref<2x32x32xf32, #tpu.memory_space<vmem>>, vector<1x32x32xf32>
    %377 = vector.shape_cast %376 : vector<1x32x32xf32> to vector<32x32xf32>
    %c1_159 = arith.constant 1 : index
    %c0_160 = arith.constant 0 : index
    %c0_161 = arith.constant 0 : index
    %378 = vector.load %arg10[%c1_159, %c0_160, %c0_161] : memref<2x32x32xf32, #tpu.memory_space<vmem>>, vector<1x32x32xf32>
    %379 = vector.shape_cast %378 : vector<1x32x32xf32> to vector<32x32xf32>
    %c1_162 = arith.constant 1 : index
    %c0_163 = arith.constant 0 : index
    %c0_164 = arith.constant 0 : index
    %380 = vector.load %arg11[%c1_162, %c0_163, %c0_164] : memref<2x32x32xf32, #tpu.memory_space<vmem>>, vector<1x32x32xf32>
    %381 = vector.shape_cast %380 : vector<1x32x32xf32> to vector<32x32xf32>
    %c1_165 = arith.constant 1 : index
    %c0_166 = arith.constant 0 : index
    %c0_167 = arith.constant 0 : index
    %382 = vector.load %arg12[%c1_165, %c0_166, %c0_167] : memref<2x32x32xf32, #tpu.memory_space<vmem>>, vector<1x32x32xf32>
    %383 = vector.shape_cast %382 : vector<1x32x32xf32> to vector<32x32xf32>
    %c1_168 = arith.constant 1 : index
    %c0_169 = arith.constant 0 : index
    %c0_170 = arith.constant 0 : index
    %384 = vector.load %arg13[%c1_168, %c0_169, %c0_170] : memref<2x1x32xf32, #tpu.memory_space<vmem>>, vector<1x1x32xf32>
    %385 = vector.shape_cast %384 : vector<1x1x32xf32> to vector<1x32xf32>
    %386 = arith.truncf %375 : vector<8x32xf32> to vector<8x32xbf16>
    %387 = arith.truncf %377 : vector<32x32xf32> to vector<32x32xbf16>
    %cst_171 = arith.constant dense<0.000000e+00> : vector<8x32xf32>
    %388 = tpu.matmul %386, %387, %cst_171 {dimension_numbers = #tpu.dot_dimension_numbers<[1], [0], [0], [1], [0, 0, 1, 1], [], []>} : vector<8x32xbf16>, vector<32x32xbf16>, vector<8x32xf32> -> vector<8x32xf32>
    %389 = arith.truncf %375 : vector<8x32xf32> to vector<8x32xbf16>
    %390 = arith.truncf %379 : vector<32x32xf32> to vector<32x32xbf16>
    %cst_172 = arith.constant dense<0.000000e+00> : vector<8x32xf32>
    %391 = tpu.matmul %389, %390, %cst_172 {dimension_numbers = #tpu.dot_dimension_numbers<[1], [0], [0], [1], [0, 0, 1, 1], [], []>} : vector<8x32xbf16>, vector<32x32xbf16>, vector<8x32xf32> -> vector<8x32xf32>
    %392 = arith.truncf %375 : vector<8x32xf32> to vector<8x32xbf16>
    %393 = arith.truncf %381 : vector<32x32xf32> to vector<32x32xbf16>
    %cst_173 = arith.constant dense<0.000000e+00> : vector<8x32xf32>
    %394 = tpu.matmul %392, %393, %cst_173 {dimension_numbers = #tpu.dot_dimension_numbers<[1], [0], [0], [1], [0, 0, 1, 1], [], []>} : vector<8x32xbf16>, vector<32x32xbf16>, vector<8x32xf32> -> vector<8x32xf32>
    %395 = vector.extract_strided_slice %388 {offsets = [0, 0], sizes = [8, 8], strides = [1, 1]} : vector<8x32xf32> to vector<8x8xf32>
    %396 = vector.extract_strided_slice %391 {offsets = [0, 0], sizes = [8, 8], strides = [1, 1]} : vector<8x32xf32> to vector<8x8xf32>
    %397 = arith.truncf %395 : vector<8x8xf32> to vector<8x8xbf16>
    %398 = arith.truncf %396 : vector<8x8xf32> to vector<8x8xbf16>
    %cst_174 = arith.constant dense<0.000000e+00> : vector<8x8xf32>
    %399 = tpu.matmul %397, %398, %cst_174 {dimension_numbers = #tpu.dot_dimension_numbers<[1], [1], [0], [0], [0, 0, 1, 0], [], []>} : vector<8x8xbf16>, vector<8x8xbf16>, vector<8x8xf32> -> vector<8x8xf32>
    %cst_175 = arith.constant 0.000000e+00 : f32
    %400 = vector.broadcast %cst_175 : f32 to vector<8x8xf32>
    %401 = arith.cmpf ogt, %14, %400 : vector<8x8xf32>
    %cst_176 = arith.constant -1.000000e+20 : f32
    %402 = vector.broadcast %cst_176 : f32 to vector<8x8xf32>
    %403 = arith.select %401, %399, %402 : vector<8x8xi1>, vector<8x8xf32>
    %cst_177 = arith.constant 0.176776692 : f32
    %404 = vector.broadcast %cst_177 : f32 to vector<8x8xf32>
    %405 = arith.mulf %403, %404 : vector<8x8xf32>
    %cst_178 = arith.constant dense<0xFF800000> : vector<8xf32>
    %406 = vector.multi_reduction <maximumf>, %405, %cst_178 [1] : vector<8x8xf32> to vector<8xf32>
    %407 = vector.shape_cast %406 : vector<8xf32> to vector<8x1xf32>
    %408 = vector.broadcast %407 : vector<8x1xf32> to vector<8x8xf32>
    %409 = arith.subf %405, %408 : vector<8x8xf32>
    %410 = math.exp %409 : vector<8x8xf32>
    %cst_179 = arith.constant dense<0.000000e+00> : vector<8xf32>
    %411 = vector.multi_reduction <add>, %410, %cst_179 [1] : vector<8x8xf32> to vector<8xf32>
    %412 = vector.shape_cast %411 : vector<8xf32> to vector<8x1xf32>
    %413 = tpu.reciprocal %412 {approx = true} : vector<8x1xf32> -> vector<8x1xf32>
    %414 = vector.broadcast %413 : vector<8x1xf32> to vector<8x8xf32>
    %415 = arith.mulf %410, %414 : vector<8x8xf32>
    %416 = vector.extract_strided_slice %394 {offsets = [0, 0], sizes = [8, 8], strides = [1, 1]} : vector<8x32xf32> to vector<8x8xf32>
    %417 = arith.truncf %415 : vector<8x8xf32> to vector<8x8xbf16>
    %418 = arith.truncf %416 : vector<8x8xf32> to vector<8x8xbf16>
    %cst_180 = arith.constant dense<0.000000e+00> : vector<8x8xf32>
    %419 = tpu.matmul %417, %418, %cst_180 {dimension_numbers = #tpu.dot_dimension_numbers<[1], [0], [0], [1], [0, 0, 1, 1], [], []>} : vector<8x8xbf16>, vector<8x8xbf16>, vector<8x8xf32> -> vector<8x8xf32>
    %420 = vector.extract_strided_slice %388 {offsets = [0, 8], sizes = [8, 8], strides = [1, 1]} : vector<8x32xf32> to vector<8x8xf32>
    %421 = vector.extract_strided_slice %391 {offsets = [0, 8], sizes = [8, 8], strides = [1, 1]} : vector<8x32xf32> to vector<8x8xf32>
    %422 = arith.truncf %420 : vector<8x8xf32> to vector<8x8xbf16>
    %423 = arith.truncf %421 : vector<8x8xf32> to vector<8x8xbf16>
    %cst_181 = arith.constant dense<0.000000e+00> : vector<8x8xf32>
    %424 = tpu.matmul %422, %423, %cst_181 {dimension_numbers = #tpu.dot_dimension_numbers<[1], [1], [0], [0], [0, 0, 1, 0], [], []>} : vector<8x8xbf16>, vector<8x8xbf16>, vector<8x8xf32> -> vector<8x8xf32>
    %cst_182 = arith.constant 0.000000e+00 : f32
    %425 = vector.broadcast %cst_182 : f32 to vector<8x8xf32>
    %426 = arith.cmpf ogt, %14, %425 : vector<8x8xf32>
    %cst_183 = arith.constant -1.000000e+20 : f32
    %427 = vector.broadcast %cst_183 : f32 to vector<8x8xf32>
    %428 = arith.select %426, %424, %427 : vector<8x8xi1>, vector<8x8xf32>
    %cst_184 = arith.constant 0.176776692 : f32
    %429 = vector.broadcast %cst_184 : f32 to vector<8x8xf32>
    %430 = arith.mulf %428, %429 : vector<8x8xf32>
    %cst_185 = arith.constant dense<0xFF800000> : vector<8xf32>
    %431 = vector.multi_reduction <maximumf>, %430, %cst_185 [1] : vector<8x8xf32> to vector<8xf32>
    %432 = vector.shape_cast %431 : vector<8xf32> to vector<8x1xf32>
    %433 = vector.broadcast %432 : vector<8x1xf32> to vector<8x8xf32>
    %434 = arith.subf %430, %433 : vector<8x8xf32>
    %435 = math.exp %434 : vector<8x8xf32>
    %cst_186 = arith.constant dense<0.000000e+00> : vector<8xf32>
    %436 = vector.multi_reduction <add>, %435, %cst_186 [1] : vector<8x8xf32> to vector<8xf32>
    %437 = vector.shape_cast %436 : vector<8xf32> to vector<8x1xf32>
    %438 = tpu.reciprocal %437 {approx = true} : vector<8x1xf32> -> vector<8x1xf32>
    %439 = vector.broadcast %438 : vector<8x1xf32> to vector<8x8xf32>
    %440 = arith.mulf %435, %439 : vector<8x8xf32>
    %441 = vector.extract_strided_slice %394 {offsets = [0, 8], sizes = [8, 8], strides = [1, 1]} : vector<8x32xf32> to vector<8x8xf32>
    %442 = arith.truncf %440 : vector<8x8xf32> to vector<8x8xbf16>
    %443 = arith.truncf %441 : vector<8x8xf32> to vector<8x8xbf16>
    %cst_187 = arith.constant dense<0.000000e+00> : vector<8x8xf32>
    %444 = tpu.matmul %442, %443, %cst_187 {dimension_numbers = #tpu.dot_dimension_numbers<[1], [0], [0], [1], [0, 0, 1, 1], [], []>} : vector<8x8xbf16>, vector<8x8xbf16>, vector<8x8xf32> -> vector<8x8xf32>
    %445 = vector.extract_strided_slice %388 {offsets = [0, 16], sizes = [8, 8], strides = [1, 1]} : vector<8x32xf32> to vector<8x8xf32>
    %446 = vector.extract_strided_slice %391 {offsets = [0, 16], sizes = [8, 8], strides = [1, 1]} : vector<8x32xf32> to vector<8x8xf32>
    %447 = arith.truncf %445 : vector<8x8xf32> to vector<8x8xbf16>
    %448 = arith.truncf %446 : vector<8x8xf32> to vector<8x8xbf16>
    %cst_188 = arith.constant dense<0.000000e+00> : vector<8x8xf32>
    %449 = tpu.matmul %447, %448, %cst_188 {dimension_numbers = #tpu.dot_dimension_numbers<[1], [1], [0], [0], [0, 0, 1, 0], [], []>} : vector<8x8xbf16>, vector<8x8xbf16>, vector<8x8xf32> -> vector<8x8xf32>
    %cst_189 = arith.constant 0.000000e+00 : f32
    %450 = vector.broadcast %cst_189 : f32 to vector<8x8xf32>
    %451 = arith.cmpf ogt, %14, %450 : vector<8x8xf32>
    %cst_190 = arith.constant -1.000000e+20 : f32
    %452 = vector.broadcast %cst_190 : f32 to vector<8x8xf32>
    %453 = arith.select %451, %449, %452 : vector<8x8xi1>, vector<8x8xf32>
    %cst_191 = arith.constant 0.176776692 : f32
    %454 = vector.broadcast %cst_191 : f32 to vector<8x8xf32>
    %455 = arith.mulf %453, %454 : vector<8x8xf32>
    %cst_192 = arith.constant dense<0xFF800000> : vector<8xf32>
    %456 = vector.multi_reduction <maximumf>, %455, %cst_192 [1] : vector<8x8xf32> to vector<8xf32>
    %457 = vector.shape_cast %456 : vector<8xf32> to vector<8x1xf32>
    %458 = vector.broadcast %457 : vector<8x1xf32> to vector<8x8xf32>
    %459 = arith.subf %455, %458 : vector<8x8xf32>
    %460 = math.exp %459 : vector<8x8xf32>
    %cst_193 = arith.constant dense<0.000000e+00> : vector<8xf32>
    %461 = vector.multi_reduction <add>, %460, %cst_193 [1] : vector<8x8xf32> to vector<8xf32>
    %462 = vector.shape_cast %461 : vector<8xf32> to vector<8x1xf32>
    %463 = tpu.reciprocal %462 {approx = true} : vector<8x1xf32> -> vector<8x1xf32>
    %464 = vector.broadcast %463 : vector<8x1xf32> to vector<8x8xf32>
    %465 = arith.mulf %460, %464 : vector<8x8xf32>
    %466 = vector.extract_strided_slice %394 {offsets = [0, 16], sizes = [8, 8], strides = [1, 1]} : vector<8x32xf32> to vector<8x8xf32>
    %467 = arith.truncf %465 : vector<8x8xf32> to vector<8x8xbf16>
    %468 = arith.truncf %466 : vector<8x8xf32> to vector<8x8xbf16>
    %cst_194 = arith.constant dense<0.000000e+00> : vector<8x8xf32>
    %469 = tpu.matmul %467, %468, %cst_194 {dimension_numbers = #tpu.dot_dimension_numbers<[1], [0], [0], [1], [0, 0, 1, 1], [], []>} : vector<8x8xbf16>, vector<8x8xbf16>, vector<8x8xf32> -> vector<8x8xf32>
    %470 = vector.extract_strided_slice %388 {offsets = [0, 24], sizes = [8, 8], strides = [1, 1]} : vector<8x32xf32> to vector<8x8xf32>
    %471 = vector.extract_strided_slice %391 {offsets = [0, 24], sizes = [8, 8], strides = [1, 1]} : vector<8x32xf32> to vector<8x8xf32>
    %472 = arith.truncf %470 : vector<8x8xf32> to vector<8x8xbf16>
    %473 = arith.truncf %471 : vector<8x8xf32> to vector<8x8xbf16>
    %cst_195 = arith.constant dense<0.000000e+00> : vector<8x8xf32>
    %474 = tpu.matmul %472, %473, %cst_195 {dimension_numbers = #tpu.dot_dimension_numbers<[1], [1], [0], [0], [0, 0, 1, 0], [], []>} : vector<8x8xbf16>, vector<8x8xbf16>, vector<8x8xf32> -> vector<8x8xf32>
    %cst_196 = arith.constant 0.000000e+00 : f32
    %475 = vector.broadcast %cst_196 : f32 to vector<8x8xf32>
    %476 = arith.cmpf ogt, %14, %475 : vector<8x8xf32>
    %cst_197 = arith.constant -1.000000e+20 : f32
    %477 = vector.broadcast %cst_197 : f32 to vector<8x8xf32>
    %478 = arith.select %476, %474, %477 : vector<8x8xi1>, vector<8x8xf32>
    %cst_198 = arith.constant 0.176776692 : f32
    %479 = vector.broadcast %cst_198 : f32 to vector<8x8xf32>
    %480 = arith.mulf %478, %479 : vector<8x8xf32>
    %cst_199 = arith.constant dense<0xFF800000> : vector<8xf32>
    %481 = vector.multi_reduction <maximumf>, %480, %cst_199 [1] : vector<8x8xf32> to vector<8xf32>
    %482 = vector.shape_cast %481 : vector<8xf32> to vector<8x1xf32>
    %483 = vector.broadcast %482 : vector<8x1xf32> to vector<8x8xf32>
    %484 = arith.subf %480, %483 : vector<8x8xf32>
    %485 = math.exp %484 : vector<8x8xf32>
    %cst_200 = arith.constant dense<0.000000e+00> : vector<8xf32>
    %486 = vector.multi_reduction <add>, %485, %cst_200 [1] : vector<8x8xf32> to vector<8xf32>
    %487 = vector.shape_cast %486 : vector<8xf32> to vector<8x1xf32>
    %488 = tpu.reciprocal %487 {approx = true} : vector<8x1xf32> -> vector<8x1xf32>
    %489 = vector.broadcast %488 : vector<8x1xf32> to vector<8x8xf32>
    %490 = arith.mulf %485, %489 : vector<8x8xf32>
    %491 = vector.extract_strided_slice %394 {offsets = [0, 24], sizes = [8, 8], strides = [1, 1]} : vector<8x32xf32> to vector<8x8xf32>
    %492 = arith.truncf %490 : vector<8x8xf32> to vector<8x8xbf16>
    %493 = arith.truncf %491 : vector<8x8xf32> to vector<8x8xbf16>
    %cst_201 = arith.constant dense<0.000000e+00> : vector<8x8xf32>
    %494 = tpu.matmul %492, %493, %cst_201 {dimension_numbers = #tpu.dot_dimension_numbers<[1], [0], [0], [1], [0, 0, 1, 1], [], []>} : vector<8x8xbf16>, vector<8x8xbf16>, vector<8x8xf32> -> vector<8x8xf32>
    %495 = tpu.concatenate %419, %444, %469, %494 in 1 : vector<8x8xf32>, vector<8x8xf32>, vector<8x8xf32>, vector<8x8xf32> -> vector<8x32xf32>
    %496 = arith.truncf %495 : vector<8x32xf32> to vector<8x32xbf16>
    %497 = arith.truncf %383 : vector<32x32xf32> to vector<32x32xbf16>
    %cst_202 = arith.constant dense<0.000000e+00> : vector<8x32xf32>
    %498 = tpu.matmul %496, %497, %cst_202 {dimension_numbers = #tpu.dot_dimension_numbers<[1], [0], [0], [1], [0, 0, 1, 1], [], []>} : vector<8x32xbf16>, vector<32x32xbf16>, vector<8x32xf32> -> vector<8x32xf32>
    %499 = vector.broadcast %385 : vector<1x32xf32> to vector<8x32xf32>
    %500 = arith.addf %498, %499 : vector<8x32xf32>
    %c1_203 = arith.constant 1 : index
    %c0_204 = arith.constant 0 : index
    %c0_205 = arith.constant 0 : index
    %501 = vector.load %arg14[%c1_203, %c0_204, %c0_205] : memref<2x1x32xf32, #tpu.memory_space<vmem>>, vector<1x1x32xf32>
    %502 = vector.shape_cast %501 : vector<1x1x32xf32> to vector<1x32xf32>
    %c1_206 = arith.constant 1 : index
    %c0_207 = arith.constant 0 : index
    %c0_208 = arith.constant 0 : index
    %503 = vector.load %arg15[%c1_206, %c0_207, %c0_208] : memref<2x1x32xf32, #tpu.memory_space<vmem>>, vector<1x1x32xf32>
    %504 = vector.shape_cast %503 : vector<1x1x32xf32> to vector<1x32xf32>
    %505 = arith.addf %500, %375 : vector<8x32xf32>
    %cst_209 = arith.constant dense<0.000000e+00> : vector<8xf32>
    %506 = vector.multi_reduction <add>, %505, %cst_209 [1] : vector<8x32xf32> to vector<8xf32>
    %507 = vector.shape_cast %506 : vector<8xf32> to vector<8x1xf32>
    %cst_210 = arith.constant 3.200000e+01 : f32
    %508 = vector.broadcast %cst_210 : f32 to vector<8x1xf32>
    %509 = arith.divf %507, %508 : vector<8x1xf32>
    %510 = vector.broadcast %509 : vector<8x1xf32> to vector<8x32xf32>
    %511 = arith.subf %505, %510 : vector<8x32xf32>
    %512 = arith.mulf %511, %511 : vector<8x32xf32>
    %cst_211 = arith.constant dense<0.000000e+00> : vector<8xf32>
    %513 = vector.multi_reduction <add>, %512, %cst_211 [1] : vector<8x32xf32> to vector<8xf32>
    %514 = vector.shape_cast %513 : vector<8xf32> to vector<8x1xf32>
    %cst_212 = arith.constant 3.200000e+01 : f32
    %515 = vector.broadcast %cst_212 : f32 to vector<8x1xf32>
    %516 = arith.divf %514, %515 : vector<8x1xf32>
    %517 = vector.broadcast %509 : vector<8x1xf32> to vector<8x32xf32>
    %518 = arith.subf %505, %517 : vector<8x32xf32>
    %cst_213 = arith.constant 9.99999974E-6 : f32
    %519 = vector.broadcast %cst_213 : f32 to vector<8x1xf32>
    %520 = arith.addf %516, %519 : vector<8x1xf32>
    %521 = math.rsqrt %520 : vector<8x1xf32>
    %522 = vector.broadcast %521 : vector<8x1xf32> to vector<8x32xf32>
    %523 = arith.mulf %518, %522 : vector<8x32xf32>
    %524 = vector.broadcast %502 : vector<1x32xf32> to vector<8x32xf32>
    %525 = arith.mulf %523, %524 : vector<8x32xf32>
    %526 = vector.broadcast %504 : vector<1x32xf32> to vector<8x32xf32>
    %527 = arith.addf %525, %526 : vector<8x32xf32>
    %c1_214 = arith.constant 1 : index
    %c0_215 = arith.constant 0 : index
    %c0_216 = arith.constant 0 : index
    %528 = vector.load %arg16[%c1_214, %c0_215, %c0_216] : memref<2x32x32xf32, #tpu.memory_space<vmem>>, vector<1x32x32xf32>
    %529 = vector.shape_cast %528 : vector<1x32x32xf32> to vector<32x32xf32>
    %c1_217 = arith.constant 1 : index
    %c0_218 = arith.constant 0 : index
    %c0_219 = arith.constant 0 : index
    %530 = vector.load %arg17[%c1_217, %c0_218, %c0_219] : memref<2x32x32xf32, #tpu.memory_space<vmem>>, vector<1x32x32xf32>
    %531 = vector.shape_cast %530 : vector<1x32x32xf32> to vector<32x32xf32>
    %c1_220 = arith.constant 1 : index
    %c0_221 = arith.constant 0 : index
    %c0_222 = arith.constant 0 : index
    %532 = vector.load %arg18[%c1_220, %c0_221, %c0_222] : memref<2x32x32xf32, #tpu.memory_space<vmem>>, vector<1x32x32xf32>
    %533 = vector.shape_cast %532 : vector<1x32x32xf32> to vector<32x32xf32>
    %c1_223 = arith.constant 1 : index
    %c0_224 = arith.constant 0 : index
    %c0_225 = arith.constant 0 : index
    %534 = vector.load %arg19[%c1_223, %c0_224, %c0_225] : memref<2x32x32xf32, #tpu.memory_space<vmem>>, vector<1x32x32xf32>
    %535 = vector.shape_cast %534 : vector<1x32x32xf32> to vector<32x32xf32>
    %c1_226 = arith.constant 1 : index
    %c0_227 = arith.constant 0 : index
    %c0_228 = arith.constant 0 : index
    %536 = vector.load %arg20[%c1_226, %c0_227, %c0_228] : memref<2x1x32xf32, #tpu.memory_space<vmem>>, vector<1x1x32xf32>
    %537 = vector.shape_cast %536 : vector<1x1x32xf32> to vector<1x32xf32>
    %538 = arith.truncf %527 : vector<8x32xf32> to vector<8x32xbf16>
    %539 = arith.truncf %529 : vector<32x32xf32> to vector<32x32xbf16>
    %cst_229 = arith.constant dense<0.000000e+00> : vector<8x32xf32>
    %540 = tpu.matmul %538, %539, %cst_229 {dimension_numbers = #tpu.dot_dimension_numbers<[1], [0], [0], [1], [0, 0, 1, 1], [], []>} : vector<8x32xbf16>, vector<32x32xbf16>, vector<8x32xf32> -> vector<8x32xf32>
    %541 = arith.truncf %12 : vector<8x32xf32> to vector<8x32xbf16>
    %542 = arith.truncf %531 : vector<32x32xf32> to vector<32x32xbf16>
    %cst_230 = arith.constant dense<0.000000e+00> : vector<8x32xf32>
    %543 = tpu.matmul %541, %542, %cst_230 {dimension_numbers = #tpu.dot_dimension_numbers<[1], [0], [0], [1], [0, 0, 1, 1], [], []>} : vector<8x32xbf16>, vector<32x32xbf16>, vector<8x32xf32> -> vector<8x32xf32>
    %544 = arith.truncf %12 : vector<8x32xf32> to vector<8x32xbf16>
    %545 = arith.truncf %533 : vector<32x32xf32> to vector<32x32xbf16>
    %cst_231 = arith.constant dense<0.000000e+00> : vector<8x32xf32>
    %546 = tpu.matmul %544, %545, %cst_231 {dimension_numbers = #tpu.dot_dimension_numbers<[1], [0], [0], [1], [0, 0, 1, 1], [], []>} : vector<8x32xbf16>, vector<32x32xbf16>, vector<8x32xf32> -> vector<8x32xf32>
    %547 = vector.extract_strided_slice %540 {offsets = [0, 0], sizes = [8, 8], strides = [1, 1]} : vector<8x32xf32> to vector<8x8xf32>
    %548 = vector.extract_strided_slice %543 {offsets = [0, 0], sizes = [8, 8], strides = [1, 1]} : vector<8x32xf32> to vector<8x8xf32>
    %549 = arith.truncf %547 : vector<8x8xf32> to vector<8x8xbf16>
    %550 = arith.truncf %548 : vector<8x8xf32> to vector<8x8xbf16>
    %cst_232 = arith.constant dense<0.000000e+00> : vector<8x8xf32>
    %551 = tpu.matmul %549, %550, %cst_232 {dimension_numbers = #tpu.dot_dimension_numbers<[1], [1], [0], [0], [0, 0, 1, 0], [], []>} : vector<8x8xbf16>, vector<8x8xbf16>, vector<8x8xf32> -> vector<8x8xf32>
    %cst_233 = arith.constant 0.000000e+00 : f32
    %552 = vector.broadcast %cst_233 : f32 to vector<1x8xf32>
    %553 = arith.cmpf ogt, %16, %552 : vector<1x8xf32>
    %cst_234 = arith.constant -1.000000e+20 : f32
    %554 = vector.shape_cast %553 : vector<1x8xi1> to vector<1x8xi1>
    %555 = vector.broadcast %554 : vector<1x8xi1> to vector<8x8xi1>
    %556 = vector.broadcast %cst_234 : f32 to vector<8x8xf32>
    %557 = arith.select %555, %551, %556 : vector<8x8xi1>, vector<8x8xf32>
    %cst_235 = arith.constant 0.176776692 : f32
    %558 = vector.broadcast %cst_235 : f32 to vector<8x8xf32>
    %559 = arith.mulf %557, %558 : vector<8x8xf32>
    %cst_236 = arith.constant dense<0xFF800000> : vector<8xf32>
    %560 = vector.multi_reduction <maximumf>, %559, %cst_236 [1] : vector<8x8xf32> to vector<8xf32>
    %561 = vector.shape_cast %560 : vector<8xf32> to vector<8x1xf32>
    %562 = vector.broadcast %561 : vector<8x1xf32> to vector<8x8xf32>
    %563 = arith.subf %559, %562 : vector<8x8xf32>
    %564 = math.exp %563 : vector<8x8xf32>
    %cst_237 = arith.constant dense<0.000000e+00> : vector<8xf32>
    %565 = vector.multi_reduction <add>, %564, %cst_237 [1] : vector<8x8xf32> to vector<8xf32>
    %566 = vector.shape_cast %565 : vector<8xf32> to vector<8x1xf32>
    %567 = tpu.reciprocal %566 {approx = true} : vector<8x1xf32> -> vector<8x1xf32>
    %568 = vector.broadcast %567 : vector<8x1xf32> to vector<8x8xf32>
    %569 = arith.mulf %564, %568 : vector<8x8xf32>
    %570 = vector.extract_strided_slice %546 {offsets = [0, 0], sizes = [8, 8], strides = [1, 1]} : vector<8x32xf32> to vector<8x8xf32>
    %571 = arith.truncf %569 : vector<8x8xf32> to vector<8x8xbf16>
    %572 = arith.truncf %570 : vector<8x8xf32> to vector<8x8xbf16>
    %cst_238 = arith.constant dense<0.000000e+00> : vector<8x8xf32>
    %573 = tpu.matmul %571, %572, %cst_238 {dimension_numbers = #tpu.dot_dimension_numbers<[1], [0], [0], [1], [0, 0, 1, 1], [], []>} : vector<8x8xbf16>, vector<8x8xbf16>, vector<8x8xf32> -> vector<8x8xf32>
    %574 = vector.extract_strided_slice %540 {offsets = [0, 8], sizes = [8, 8], strides = [1, 1]} : vector<8x32xf32> to vector<8x8xf32>
    %575 = vector.extract_strided_slice %543 {offsets = [0, 8], sizes = [8, 8], strides = [1, 1]} : vector<8x32xf32> to vector<8x8xf32>
    %576 = arith.truncf %574 : vector<8x8xf32> to vector<8x8xbf16>
    %577 = arith.truncf %575 : vector<8x8xf32> to vector<8x8xbf16>
    %cst_239 = arith.constant dense<0.000000e+00> : vector<8x8xf32>
    %578 = tpu.matmul %576, %577, %cst_239 {dimension_numbers = #tpu.dot_dimension_numbers<[1], [1], [0], [0], [0, 0, 1, 0], [], []>} : vector<8x8xbf16>, vector<8x8xbf16>, vector<8x8xf32> -> vector<8x8xf32>
    %cst_240 = arith.constant 0.000000e+00 : f32
    %579 = vector.broadcast %cst_240 : f32 to vector<1x8xf32>
    %580 = arith.cmpf ogt, %16, %579 : vector<1x8xf32>
    %cst_241 = arith.constant -1.000000e+20 : f32
    %581 = vector.shape_cast %580 : vector<1x8xi1> to vector<1x8xi1>
    %582 = vector.broadcast %581 : vector<1x8xi1> to vector<8x8xi1>
    %583 = vector.broadcast %cst_241 : f32 to vector<8x8xf32>
    %584 = arith.select %582, %578, %583 : vector<8x8xi1>, vector<8x8xf32>
    %cst_242 = arith.constant 0.176776692 : f32
    %585 = vector.broadcast %cst_242 : f32 to vector<8x8xf32>
    %586 = arith.mulf %584, %585 : vector<8x8xf32>
    %cst_243 = arith.constant dense<0xFF800000> : vector<8xf32>
    %587 = vector.multi_reduction <maximumf>, %586, %cst_243 [1] : vector<8x8xf32> to vector<8xf32>
    %588 = vector.shape_cast %587 : vector<8xf32> to vector<8x1xf32>
    %589 = vector.broadcast %588 : vector<8x1xf32> to vector<8x8xf32>
    %590 = arith.subf %586, %589 : vector<8x8xf32>
    %591 = math.exp %590 : vector<8x8xf32>
    %cst_244 = arith.constant dense<0.000000e+00> : vector<8xf32>
    %592 = vector.multi_reduction <add>, %591, %cst_244 [1] : vector<8x8xf32> to vector<8xf32>
    %593 = vector.shape_cast %592 : vector<8xf32> to vector<8x1xf32>
    %594 = tpu.reciprocal %593 {approx = true} : vector<8x1xf32> -> vector<8x1xf32>
    %595 = vector.broadcast %594 : vector<8x1xf32> to vector<8x8xf32>
    %596 = arith.mulf %591, %595 : vector<8x8xf32>
    %597 = vector.extract_strided_slice %546 {offsets = [0, 8], sizes = [8, 8], strides = [1, 1]} : vector<8x32xf32> to vector<8x8xf32>
    %598 = arith.truncf %596 : vector<8x8xf32> to vector<8x8xbf16>
    %599 = arith.truncf %597 : vector<8x8xf32> to vector<8x8xbf16>
    %cst_245 = arith.constant dense<0.000000e+00> : vector<8x8xf32>
    %600 = tpu.matmul %598, %599, %cst_245 {dimension_numbers = #tpu.dot_dimension_numbers<[1], [0], [0], [1], [0, 0, 1, 1], [], []>} : vector<8x8xbf16>, vector<8x8xbf16>, vector<8x8xf32> -> vector<8x8xf32>
    %601 = vector.extract_strided_slice %540 {offsets = [0, 16], sizes = [8, 8], strides = [1, 1]} : vector<8x32xf32> to vector<8x8xf32>
    %602 = vector.extract_strided_slice %543 {offsets = [0, 16], sizes = [8, 8], strides = [1, 1]} : vector<8x32xf32> to vector<8x8xf32>
    %603 = arith.truncf %601 : vector<8x8xf32> to vector<8x8xbf16>
    %604 = arith.truncf %602 : vector<8x8xf32> to vector<8x8xbf16>
    %cst_246 = arith.constant dense<0.000000e+00> : vector<8x8xf32>
    %605 = tpu.matmul %603, %604, %cst_246 {dimension_numbers = #tpu.dot_dimension_numbers<[1], [1], [0], [0], [0, 0, 1, 0], [], []>} : vector<8x8xbf16>, vector<8x8xbf16>, vector<8x8xf32> -> vector<8x8xf32>
    %cst_247 = arith.constant 0.000000e+00 : f32
    %606 = vector.broadcast %cst_247 : f32 to vector<1x8xf32>
    %607 = arith.cmpf ogt, %16, %606 : vector<1x8xf32>
    %cst_248 = arith.constant -1.000000e+20 : f32
    %608 = vector.shape_cast %607 : vector<1x8xi1> to vector<1x8xi1>
    %609 = vector.broadcast %608 : vector<1x8xi1> to vector<8x8xi1>
    %610 = vector.broadcast %cst_248 : f32 to vector<8x8xf32>
    %611 = arith.select %609, %605, %610 : vector<8x8xi1>, vector<8x8xf32>
    %cst_249 = arith.constant 0.176776692 : f32
    %612 = vector.broadcast %cst_249 : f32 to vector<8x8xf32>
    %613 = arith.mulf %611, %612 : vector<8x8xf32>
    %cst_250 = arith.constant dense<0xFF800000> : vector<8xf32>
    %614 = vector.multi_reduction <maximumf>, %613, %cst_250 [1] : vector<8x8xf32> to vector<8xf32>
    %615 = vector.shape_cast %614 : vector<8xf32> to vector<8x1xf32>
    %616 = vector.broadcast %615 : vector<8x1xf32> to vector<8x8xf32>
    %617 = arith.subf %613, %616 : vector<8x8xf32>
    %618 = math.exp %617 : vector<8x8xf32>
    %cst_251 = arith.constant dense<0.000000e+00> : vector<8xf32>
    %619 = vector.multi_reduction <add>, %618, %cst_251 [1] : vector<8x8xf32> to vector<8xf32>
    %620 = vector.shape_cast %619 : vector<8xf32> to vector<8x1xf32>
    %621 = tpu.reciprocal %620 {approx = true} : vector<8x1xf32> -> vector<8x1xf32>
    %622 = vector.broadcast %621 : vector<8x1xf32> to vector<8x8xf32>
    %623 = arith.mulf %618, %622 : vector<8x8xf32>
    %624 = vector.extract_strided_slice %546 {offsets = [0, 16], sizes = [8, 8], strides = [1, 1]} : vector<8x32xf32> to vector<8x8xf32>
    %625 = arith.truncf %623 : vector<8x8xf32> to vector<8x8xbf16>
    %626 = arith.truncf %624 : vector<8x8xf32> to vector<8x8xbf16>
    %cst_252 = arith.constant dense<0.000000e+00> : vector<8x8xf32>
    %627 = tpu.matmul %625, %626, %cst_252 {dimension_numbers = #tpu.dot_dimension_numbers<[1], [0], [0], [1], [0, 0, 1, 1], [], []>} : vector<8x8xbf16>, vector<8x8xbf16>, vector<8x8xf32> -> vector<8x8xf32>
    %628 = vector.extract_strided_slice %540 {offsets = [0, 24], sizes = [8, 8], strides = [1, 1]} : vector<8x32xf32> to vector<8x8xf32>
    %629 = vector.extract_strided_slice %543 {offsets = [0, 24], sizes = [8, 8], strides = [1, 1]} : vector<8x32xf32> to vector<8x8xf32>
    %630 = arith.truncf %628 : vector<8x8xf32> to vector<8x8xbf16>
    %631 = arith.truncf %629 : vector<8x8xf32> to vector<8x8xbf16>
    %cst_253 = arith.constant dense<0.000000e+00> : vector<8x8xf32>
    %632 = tpu.matmul %630, %631, %cst_253 {dimension_numbers = #tpu.dot_dimension_numbers<[1], [1], [0], [0], [0, 0, 1, 0], [], []>} : vector<8x8xbf16>, vector<8x8xbf16>, vector<8x8xf32> -> vector<8x8xf32>
    %cst_254 = arith.constant 0.000000e+00 : f32
    %633 = vector.broadcast %cst_254 : f32 to vector<1x8xf32>
    %634 = arith.cmpf ogt, %16, %633 : vector<1x8xf32>
    %cst_255 = arith.constant -1.000000e+20 : f32
    %635 = vector.shape_cast %634 : vector<1x8xi1> to vector<1x8xi1>
    %636 = vector.broadcast %635 : vector<1x8xi1> to vector<8x8xi1>
    %637 = vector.broadcast %cst_255 : f32 to vector<8x8xf32>
    %638 = arith.select %636, %632, %637 : vector<8x8xi1>, vector<8x8xf32>
    %cst_256 = arith.constant 0.176776692 : f32
    %639 = vector.broadcast %cst_256 : f32 to vector<8x8xf32>
    %640 = arith.mulf %638, %639 : vector<8x8xf32>
    %cst_257 = arith.constant dense<0xFF800000> : vector<8xf32>
    %641 = vector.multi_reduction <maximumf>, %640, %cst_257 [1] : vector<8x8xf32> to vector<8xf32>
    %642 = vector.shape_cast %641 : vector<8xf32> to vector<8x1xf32>
    %643 = vector.broadcast %642 : vector<8x1xf32> to vector<8x8xf32>
    %644 = arith.subf %640, %643 : vector<8x8xf32>
    %645 = math.exp %644 : vector<8x8xf32>
    %cst_258 = arith.constant dense<0.000000e+00> : vector<8xf32>
    %646 = vector.multi_reduction <add>, %645, %cst_258 [1] : vector<8x8xf32> to vector<8xf32>
    %647 = vector.shape_cast %646 : vector<8xf32> to vector<8x1xf32>
    %648 = tpu.reciprocal %647 {approx = true} : vector<8x1xf32> -> vector<8x1xf32>
    %649 = vector.broadcast %648 : vector<8x1xf32> to vector<8x8xf32>
    %650 = arith.mulf %645, %649 : vector<8x8xf32>
    %651 = vector.extract_strided_slice %546 {offsets = [0, 24], sizes = [8, 8], strides = [1, 1]} : vector<8x32xf32> to vector<8x8xf32>
    %652 = arith.truncf %650 : vector<8x8xf32> to vector<8x8xbf16>
    %653 = arith.truncf %651 : vector<8x8xf32> to vector<8x8xbf16>
    %cst_259 = arith.constant dense<0.000000e+00> : vector<8x8xf32>
    %654 = tpu.matmul %652, %653, %cst_259 {dimension_numbers = #tpu.dot_dimension_numbers<[1], [0], [0], [1], [0, 0, 1, 1], [], []>} : vector<8x8xbf16>, vector<8x8xbf16>, vector<8x8xf32> -> vector<8x8xf32>
    %655 = tpu.concatenate %573, %600, %627, %654 in 1 : vector<8x8xf32>, vector<8x8xf32>, vector<8x8xf32>, vector<8x8xf32> -> vector<8x32xf32>
    %656 = arith.truncf %655 : vector<8x32xf32> to vector<8x32xbf16>
    %657 = arith.truncf %535 : vector<32x32xf32> to vector<32x32xbf16>
    %cst_260 = arith.constant dense<0.000000e+00> : vector<8x32xf32>
    %658 = tpu.matmul %656, %657, %cst_260 {dimension_numbers = #tpu.dot_dimension_numbers<[1], [0], [0], [1], [0, 0, 1, 1], [], []>} : vector<8x32xbf16>, vector<32x32xbf16>, vector<8x32xf32> -> vector<8x32xf32>
    %659 = vector.broadcast %537 : vector<1x32xf32> to vector<8x32xf32>
    %660 = arith.addf %658, %659 : vector<8x32xf32>
    %c1_261 = arith.constant 1 : index
    %c0_262 = arith.constant 0 : index
    %c0_263 = arith.constant 0 : index
    %661 = vector.load %arg21[%c1_261, %c0_262, %c0_263] : memref<2x1x32xf32, #tpu.memory_space<vmem>>, vector<1x1x32xf32>
    %662 = vector.shape_cast %661 : vector<1x1x32xf32> to vector<1x32xf32>
    %c1_264 = arith.constant 1 : index
    %c0_265 = arith.constant 0 : index
    %c0_266 = arith.constant 0 : index
    %663 = vector.load %arg22[%c1_264, %c0_265, %c0_266] : memref<2x1x32xf32, #tpu.memory_space<vmem>>, vector<1x1x32xf32>
    %664 = vector.shape_cast %663 : vector<1x1x32xf32> to vector<1x32xf32>
    %665 = arith.addf %660, %527 : vector<8x32xf32>
    %cst_267 = arith.constant dense<0.000000e+00> : vector<8xf32>
    %666 = vector.multi_reduction <add>, %665, %cst_267 [1] : vector<8x32xf32> to vector<8xf32>
    %667 = vector.shape_cast %666 : vector<8xf32> to vector<8x1xf32>
    %cst_268 = arith.constant 3.200000e+01 : f32
    %668 = vector.broadcast %cst_268 : f32 to vector<8x1xf32>
    %669 = arith.divf %667, %668 : vector<8x1xf32>
    %670 = vector.broadcast %669 : vector<8x1xf32> to vector<8x32xf32>
    %671 = arith.subf %665, %670 : vector<8x32xf32>
    %672 = arith.mulf %671, %671 : vector<8x32xf32>
    %cst_269 = arith.constant dense<0.000000e+00> : vector<8xf32>
    %673 = vector.multi_reduction <add>, %672, %cst_269 [1] : vector<8x32xf32> to vector<8xf32>
    %674 = vector.shape_cast %673 : vector<8xf32> to vector<8x1xf32>
    %cst_270 = arith.constant 3.200000e+01 : f32
    %675 = vector.broadcast %cst_270 : f32 to vector<8x1xf32>
    %676 = arith.divf %674, %675 : vector<8x1xf32>
    %677 = vector.broadcast %669 : vector<8x1xf32> to vector<8x32xf32>
    %678 = arith.subf %665, %677 : vector<8x32xf32>
    %cst_271 = arith.constant 9.99999974E-6 : f32
    %679 = vector.broadcast %cst_271 : f32 to vector<8x1xf32>
    %680 = arith.addf %676, %679 : vector<8x1xf32>
    %681 = math.rsqrt %680 : vector<8x1xf32>
    %682 = vector.broadcast %681 : vector<8x1xf32> to vector<8x32xf32>
    %683 = arith.mulf %678, %682 : vector<8x32xf32>
    %684 = vector.broadcast %662 : vector<1x32xf32> to vector<8x32xf32>
    %685 = arith.mulf %683, %684 : vector<8x32xf32>
    %686 = vector.broadcast %664 : vector<1x32xf32> to vector<8x32xf32>
    %687 = arith.addf %685, %686 : vector<8x32xf32>
    %c1_272 = arith.constant 1 : index
    %c0_273 = arith.constant 0 : index
    %c0_274 = arith.constant 0 : index
    %688 = vector.load %arg23[%c1_272, %c0_273, %c0_274] : memref<2x32x64xf32, #tpu.memory_space<vmem>>, vector<1x32x64xf32>
    %689 = vector.shape_cast %688 : vector<1x32x64xf32> to vector<32x64xf32>
    %690 = arith.truncf %687 : vector<8x32xf32> to vector<8x32xbf16>
    %691 = arith.truncf %689 : vector<32x64xf32> to vector<32x64xbf16>
    %cst_275 = arith.constant dense<0.000000e+00> : vector<8x64xf32>
    %692 = tpu.matmul %690, %691, %cst_275 {dimension_numbers = #tpu.dot_dimension_numbers<[1], [0], [0], [1], [0, 0, 1, 1], [], []>} : vector<8x32xbf16>, vector<32x64xbf16>, vector<8x64xf32> -> vector<8x64xf32>
    %c1_276 = arith.constant 1 : index
    %c0_277 = arith.constant 0 : index
    %c0_278 = arith.constant 0 : index
    %693 = vector.load %arg24[%c1_276, %c0_277, %c0_278] : memref<2x1x64xf32, #tpu.memory_space<vmem>>, vector<1x1x64xf32>
    %694 = vector.shape_cast %693 : vector<1x1x64xf32> to vector<1x64xf32>
    %695 = vector.broadcast %694 : vector<1x64xf32> to vector<8x64xf32>
    %696 = arith.addf %692, %695 : vector<8x64xf32>
    %cst_279 = arith.constant 0.000000e+00 : f32
    %697 = vector.broadcast %cst_279 : f32 to vector<8x64xf32>
    %698 = arith.maximumf %696, %697 : vector<8x64xf32>
    %c1_280 = arith.constant 1 : index
    %c0_281 = arith.constant 0 : index
    %c0_282 = arith.constant 0 : index
    %699 = vector.load %arg25[%c1_280, %c0_281, %c0_282] : memref<2x64x32xf32, #tpu.memory_space<vmem>>, vector<1x64x32xf32>
    %700 = vector.shape_cast %699 : vector<1x64x32xf32> to vector<64x32xf32>
    %701 = arith.truncf %698 : vector<8x64xf32> to vector<8x64xbf16>
    %702 = arith.truncf %700 : vector<64x32xf32> to vector<64x32xbf16>
    %cst_283 = arith.constant dense<0.000000e+00> : vector<8x32xf32>
    %703 = tpu.matmul %701, %702, %cst_283 {dimension_numbers = #tpu.dot_dimension_numbers<[1], [0], [0], [1], [0, 0, 1, 1], [], []>} : vector<8x64xbf16>, vector<64x32xbf16>, vector<8x32xf32> -> vector<8x32xf32>
    %c1_284 = arith.constant 1 : index
    %c0_285 = arith.constant 0 : index
    %c0_286 = arith.constant 0 : index
    %704 = vector.load %arg26[%c1_284, %c0_285, %c0_286] : memref<2x1x32xf32, #tpu.memory_space<vmem>>, vector<1x1x32xf32>
    %705 = vector.shape_cast %704 : vector<1x1x32xf32> to vector<1x32xf32>
    %706 = vector.broadcast %705 : vector<1x32xf32> to vector<8x32xf32>
    %707 = arith.addf %703, %706 : vector<8x32xf32>
    %c1_287 = arith.constant 1 : index
    %c0_288 = arith.constant 0 : index
    %c0_289 = arith.constant 0 : index
    %708 = vector.load %arg27[%c1_287, %c0_288, %c0_289] : memref<2x1x32xf32, #tpu.memory_space<vmem>>, vector<1x1x32xf32>
    %709 = vector.shape_cast %708 : vector<1x1x32xf32> to vector<1x32xf32>
    %c1_290 = arith.constant 1 : index
    %c0_291 = arith.constant 0 : index
    %c0_292 = arith.constant 0 : index
    %710 = vector.load %arg28[%c1_290, %c0_291, %c0_292] : memref<2x1x32xf32, #tpu.memory_space<vmem>>, vector<1x1x32xf32>
    %711 = vector.shape_cast %710 : vector<1x1x32xf32> to vector<1x32xf32>
    %712 = arith.addf %707, %687 : vector<8x32xf32>
    %cst_293 = arith.constant dense<0.000000e+00> : vector<8xf32>
    %713 = vector.multi_reduction <add>, %712, %cst_293 [1] : vector<8x32xf32> to vector<8xf32>
    %714 = vector.shape_cast %713 : vector<8xf32> to vector<8x1xf32>
    %cst_294 = arith.constant 3.200000e+01 : f32
    %715 = vector.broadcast %cst_294 : f32 to vector<8x1xf32>
    %716 = arith.divf %714, %715 : vector<8x1xf32>
    %717 = vector.broadcast %716 : vector<8x1xf32> to vector<8x32xf32>
    %718 = arith.subf %712, %717 : vector<8x32xf32>
    %719 = arith.mulf %718, %718 : vector<8x32xf32>
    %cst_295 = arith.constant dense<0.000000e+00> : vector<8xf32>
    %720 = vector.multi_reduction <add>, %719, %cst_295 [1] : vector<8x32xf32> to vector<8xf32>
    %721 = vector.shape_cast %720 : vector<8xf32> to vector<8x1xf32>
    %cst_296 = arith.constant 3.200000e+01 : f32
    %722 = vector.broadcast %cst_296 : f32 to vector<8x1xf32>
    %723 = arith.divf %721, %722 : vector<8x1xf32>
    %724 = vector.broadcast %716 : vector<8x1xf32> to vector<8x32xf32>
    %725 = arith.subf %712, %724 : vector<8x32xf32>
    %cst_297 = arith.constant 9.99999974E-6 : f32
    %726 = vector.broadcast %cst_297 : f32 to vector<8x1xf32>
    %727 = arith.addf %723, %726 : vector<8x1xf32>
    %728 = math.rsqrt %727 : vector<8x1xf32>
    %729 = vector.broadcast %728 : vector<8x1xf32> to vector<8x32xf32>
    %730 = arith.mulf %725, %729 : vector<8x32xf32>
    %731 = vector.broadcast %709 : vector<1x32xf32> to vector<8x32xf32>
    %732 = arith.mulf %730, %731 : vector<8x32xf32>
    %733 = vector.broadcast %711 : vector<1x32xf32> to vector<8x32xf32>
    %734 = arith.addf %732, %733 : vector<8x32xf32>
    %c0_298 = arith.constant 0 : index
    %c0_299 = arith.constant 0 : index
    %735 = vector.load %arg7[%c0_298, %c0_299] : memref<32x128xf32, #tpu.memory_space<vmem>>, vector<32x128xf32>
    %736 = arith.truncf %734 : vector<8x32xf32> to vector<8x32xbf16>
    %737 = arith.truncf %735 : vector<32x128xf32> to vector<32x128xbf16>
    %cst_300 = arith.constant dense<0.000000e+00> : vector<8x128xf32>
    %738 = tpu.matmul %736, %737, %cst_300 {dimension_numbers = #tpu.dot_dimension_numbers<[1], [0], [0], [1], [0, 0, 1, 1], [], []>} : vector<8x32xbf16>, vector<32x128xbf16>, vector<8x128xf32> -> vector<8x128xf32>
    %c0_301 = arith.constant 0 : index
    %c0_302 = arith.constant 0 : index
    %739 = vector.load %arg8[%c0_301, %c0_302] : memref<1x128xf32, #tpu.memory_space<vmem>>, vector<1x128xf32>
    %740 = vector.broadcast %739 : vector<1x128xf32> to vector<8x128xf32>
    %741 = arith.addf %738, %740 : vector<8x128xf32>
    %c0_303 = arith.constant 0 : index
    %c0_304 = arith.constant 0 : index
    %c0_305 = arith.constant 0 : index
    %742 = vector.load %arg29[%c0_303, %c0_304, %c0_305] : memref<1x8x128xf32, #tpu.memory_space<vmem>>, vector<1x8x128xf32>
    %743 = vector.shape_cast %742 : vector<1x8x128xf32> to vector<8x128xf32>
    %744 = vector.shape_cast %741 : vector<8x128xf32> to vector<1x8x128xf32>
    tpu.vector_store %arg29[%c0_303, %c0_304, %c0_305], %744 {strides = array<i32>} : memref<1x8x128xf32, #tpu.memory_space<vmem>>, vector<1x8x128xf32>,
    return
  }
  func.func @transform_0(%arg0: i32) -> (i32, i32, i32) {
    %c0_i32 = arith.constant 0 : i32
    %c0_i32_0 = arith.constant 0 : i32
    %c0_i32_1 = arith.constant 0 : i32
    return %arg0, %c0_i32, %c0_i32_0 : i32, i32, i32
  }
  func.func @transform_1(%arg0: i32) -> (i32, i32) {
    %c0_i32 = arith.constant 0 : i32
    %c0_i32_0 = arith.constant 0 : i32
    %c0_i32_1 = arith.constant 0 : i32
    return %c0_i32, %c0_i32_0 : i32, i32
  }
  func.func @transform_2(%arg0: i32) -> (i32, i32, i32) {
    %c0_i32 = arith.constant 0 : i32
    %c0_i32_0 = arith.constant 0 : i32
    %c0_i32_1 = arith.constant 0 : i32
    return %arg0, %c0_i32, %c0_i32_0 : i32, i32, i32
  }
  func.func @transform_3(%arg0: i32) -> (i32, i32, i32) {
    %c0_i32 = arith.constant 0 : i32
    %c0_i32_0 = arith.constant 0 : i32
    %c0_i32_1 = arith.constant 0 : i32
    return %arg0, %c0_i32, %c0_i32_0 : i32, i32, i32
  }
  func.func @transform_4(%arg0: i32) -> (i32, i32, i32) {
    %c0_i32 = arith.constant 0 : i32
    %c0_i32_0 = arith.constant 0 : i32
    %c0_i32_1 = arith.constant 0 : i32
    return %arg0, %c0_i32, %c0_i32_0 : i32, i32, i32
  }
  func.func @transform_5(%arg0: i32) -> (i32, i32) {
    %c0_i32 = arith.constant 0 : i32
    %c0_i32_0 = arith.constant 0 : i32
    %c0_i32_1 = arith.constant 0 : i32
    return %c0_i32, %c0_i32_0 : i32, i32
  }
  func.func @transform_6(%arg0: i32) -> (i32, i32) {
    %c0_i32 = arith.constant 0 : i32
    %c0_i32_0 = arith.constant 0 : i32
    %c0_i32_1 = arith.constant 0 : i32
    return %c0_i32, %c0_i32_0 : i32, i32
  }
  func.func @transform_7(%arg0: i32) -> (i32, i32) {
    %c0_i32 = arith.constant 0 : i32
    %c0_i32_0 = arith.constant 0 : i32
    %c0_i32_1 = arith.constant 0 : i32
    return %c0_i32, %c0_i32_0 : i32, i32
  }
  func.func @transform_8(%arg0: i32) -> (i32, i32, i32) {
    %c0_i32 = arith.constant 0 : i32
    %c0_i32_0 = arith.constant 0 : i32
    %c0_i32_1 = arith.constant 0 : i32
    %c0_i32_2 = arith.constant 0 : i32
    return %c0_i32, %c0_i32_0, %c0_i32_1 : i32, i32, i32
  }
  func.func @transform_9(%arg0: i32) -> (i32, i32, i32) {
    %c0_i32 = arith.constant 0 : i32
    %c0_i32_0 = arith.constant 0 : i32
    %c0_i32_1 = arith.constant 0 : i32
    %c0_i32_2 = arith.constant 0 : i32
    return %c0_i32, %c0_i32_0, %c0_i32_1 : i32, i32, i32
  }
  func.func @transform_10(%arg0: i32) -> (i32, i32, i32) {
    %c0_i32 = arith.constant 0 : i32
    %c0_i32_0 = arith.constant 0 : i32
    %c0_i32_1 = arith.constant 0 : i32
    %c0_i32_2 = arith.constant 0 : i32
    return %c0_i32, %c0_i32_0, %c0_i32_1 : i32, i32, i32
  }
  func.func @transform_11(%arg0: i32) -> (i32, i32, i32) {
    %c0_i32 = arith.constant 0 : i32
    %c0_i32_0 = arith.constant 0 : i32
    %c0_i32_1 = arith.constant 0 : i32
    %c0_i32_2 = arith.constant 0 : i32
    return %c0_i32, %c0_i32_0, %c0_i32_1 : i32, i32, i32
  }
  func.func @transform_12(%arg0: i32) -> (i32, i32, i32) {
    %c0_i32 = arith.constant 0 : i32
    %c0_i32_0 = arith.constant 0 : i32
    %c0_i32_1 = arith.constant 0 : i32
    %c0_i32_2 = arith.constant 0 : i32
    return %c0_i32, %c0_i32_0, %c0_i32_1 : i32, i32, i32
  }
  func.func @transform_13(%arg0: i32) -> (i32, i32, i32) {
    %c0_i32 = arith.constant 0 : i32
    %c0_i32_0 = arith.constant 0 : i32
    %c0_i32_1 = arith.constant 0 : i32
    %c0_i32_2 = arith.constant 0 : i32
    return %c0_i32, %c0_i32_0, %c0_i32_1 : i32, i32, i32
  }
  func.func @transform_14(%arg0: i32) -> (i32, i32, i32) {
    %c0_i32 = arith.constant 0 : i32
    %c0_i32_0 = arith.constant 0 : i32
    %c0_i32_1 = arith.constant 0 : i32
    %c0_i32_2 = arith.constant 0 : i32
    return %c0_i32, %c0_i32_0, %c0_i32_1 : i32, i32, i32
  }
  func.func @transform_15(%arg0: i32) -> (i32, i32, i32) {
    %c0_i32 = arith.constant 0 : i32
    %c0_i32_0 = arith.constant 0 : i32
    %c0_i32_1 = arith.constant 0 : i32
    %c0_i32_2 = arith.constant 0 : i32
    return %c0_i32, %c0_i32_0, %c0_i32_1 : i32, i32, i32
  }
  func.func @transform_16(%arg0: i32) -> (i32, i32, i32) {
    %c0_i32 = arith.constant 0 : i32
    %c0_i32_0 = arith.constant 0 : i32
    %c0_i32_1 = arith.constant 0 : i32
    %c0_i32_2 = arith.constant 0 : i32
    return %c0_i32, %c0_i32_0, %c0_i32_1 : i32, i32, i32
  }
  func.func @transform_17(%arg0: i32) -> (i32, i32, i32) {
    %c0_i32 = arith.constant 0 : i32
    %c0_i32_0 = arith.constant 0 : i32
    %c0_i32_1 = arith.constant 0 : i32
    %c0_i32_2 = arith.constant 0 : i32
    return %c0_i32, %c0_i32_0, %c0_i32_1 : i32, i32, i32
  }
  func.func @transform_18(%arg0: i32) -> (i32, i32, i32) {
    %c0_i32 = arith.constant 0 : i32
    %c0_i32_0 = arith.constant 0 : i32
    %c0_i32_1 = arith.constant 0 : i32
    %c0_i32_2 = arith.constant 0 : i32
    return %c0_i32, %c0_i32_0, %c0_i32_1 : i32, i32, i32
  }
  func.func @transform_19(%arg0: i32) -> (i32, i32, i32) {
    %c0_i32 = arith.constant 0 : i32
    %c0_i32_0 = arith.constant 0 : i32
    %c0_i32_1 = arith.constant 0 : i32
    %c0_i32_2 = arith.constant 0 : i32
    return %c0_i32, %c0_i32_0, %c0_i32_1 : i32, i32, i32
  }
  func.func @transform_20(%arg0: i32) -> (i32, i32, i32) {
    %c0_i32 = arith.constant 0 : i32
    %c0_i32_0 = arith.constant 0 : i32
    %c0_i32_1 = arith.constant 0 : i32
    %c0_i32_2 = arith.constant 0 : i32
    return %c0_i32, %c0_i32_0, %c0_i32_1 : i32, i32, i32
  }
  func.func @transform_21(%arg0: i32) -> (i32, i32, i32) {
    %c0_i32 = arith.constant 0 : i32
    %c0_i32_0 = arith.constant 0 : i32
    %c0_i32_1 = arith.constant 0 : i32
    %c0_i32_2 = arith.constant 0 : i32
    return %c0_i32, %c0_i32_0, %c0_i32_1 : i32, i32, i32
  }
  func.func @transform_22(%arg0: i32) -> (i32, i32, i32) {
    %c0_i32 = arith.constant 0 : i32
    %c0_i32_0 = arith.constant 0 : i32
    %c0_i32_1 = arith.constant 0 : i32
    %c0_i32_2 = arith.constant 0 : i32
    return %c0_i32, %c0_i32_0, %c0_i32_1 : i32, i32, i32
  }
  func.func @transform_23(%arg0: i32) -> (i32, i32, i32) {
    %c0_i32 = arith.constant 0 : i32
    %c0_i32_0 = arith.constant 0 : i32
    %c0_i32_1 = arith.constant 0 : i32
    %c0_i32_2 = arith.constant 0 : i32
    return %c0_i32, %c0_i32_0, %c0_i32_1 : i32, i32, i32
  }
  func.func @transform_24(%arg0: i32) -> (i32, i32, i32) {
    %c0_i32 = arith.constant 0 : i32
    %c0_i32_0 = arith.constant 0 : i32
    %c0_i32_1 = arith.constant 0 : i32
    %c0_i32_2 = arith.constant 0 : i32
    return %c0_i32, %c0_i32_0, %c0_i32_1 : i32, i32, i32
  }
  func.func @transform_25(%arg0: i32) -> (i32, i32, i32) {
    %c0_i32 = arith.constant 0 : i32
    %c0_i32_0 = arith.constant 0 : i32
    %c0_i32_1 = arith.constant 0 : i32
    %c0_i32_2 = arith.constant 0 : i32
    return %c0_i32, %c0_i32_0, %c0_i32_1 : i32, i32, i32
  }
  func.func @transform_26(%arg0: i32) -> (i32, i32, i32) {
    %c0_i32 = arith.constant 0 : i32
    %c0_i32_0 = arith.constant 0 : i32
    %c0_i32_1 = arith.constant 0 : i32
    %c0_i32_2 = arith.constant 0 : i32
    return %c0_i32, %c0_i32_0, %c0_i32_1 : i32, i32, i32
  }
  func.func @transform_27(%arg0: i32) -> (i32, i32, i32) {
    %c0_i32 = arith.constant 0 : i32
    %c0_i32_0 = arith.constant 0 : i32
    %c0_i32_1 = arith.constant 0 : i32
    %c0_i32_2 = arith.constant 0 : i32
    return %c0_i32, %c0_i32_0, %c0_i32_1 : i32, i32, i32
  }
  func.func @transform_28(%arg0: i32) -> (i32, i32, i32) {
    %c0_i32 = arith.constant 0 : i32
    %c0_i32_0 = arith.constant 0 : i32
    %c0_i32_1 = arith.constant 0 : i32
    return %arg0, %c0_i32, %c0_i32_0 : i32, i32, i32
  }
}

</mosaic_0001>

<bundles_post_ra>
// kernel: decoder_forward.1
= control target key start
LH: loop header
LB: loop body
LE: loop exit
PB: predicated region body
PF: predicated region fallthrough
CT: control target
= control target key end

     0   :  { %s7521_s0 = inlined_call_operand.vmem [shape: s32[2,8,1], index: 0, kind: input, shape index: {}]   ;;  %s7522_s1 = inlined_call_operand.vmem [shape: f32[8,32], index: 1, kind: input, shape index: {}]   ;;  %s7523_s2 = inlined_call_operand.vmem [shape: f32[2,8,32], index: 2, kind: input, shape index: {}]   ;;  %s7524_s3 = inlined_call_operand.hbm [shape: f32[2,8,8], index: 3, kind: input, shape index: {}]   ;;  %s7525_s4 = inlined_call_operand.hbm [shape: f32[2,1,8], index: 4, kind: input, shape index: {}]   ;;  %s7526_s5 = inlined_call_operand.vmem [shape: f32[128,32], index: 5, kind: input, shape index: {}]   ;;  %s7527_s6 = inlined_call_operand.hbm [shape: f32[32,128], index: 6, kind: input, shape index: {}]   ;;  %s7528_s7 = inlined_call_operand.hbm [shape: f32[1,128], index: 7, kind: input, shape index: {}]   ;;  %s7529_s8 = inlined_call_operand.vmem [shape: f32[2,32,32], index: 8, kind: input, shape index: {}]   ;;  %s7530_s9 = inlined_call_operand.vmem [shape: f32[2,32,32], index: 9, kind: input, shape index: {}]   ;;  %s7531_s10 = inlined_call_operand.vmem [shape: f32[2,32,32], index: 10, kind: input, shape index: {}]   ;;  %s7532_s11 = inlined_call_operand.vmem [shape: f32[2,32,32], index: 11, kind: input, shape index: {}]   ;;  %s7533_s12 = inlined_call_operand.hbm [shape: f32[2,1,32], index: 12, kind: input, shape index: {}]   ;;  %s7534_s13 = inlined_call_operand.hbm [shape: f32[2,1,32], index: 13, kind: input, shape index: {}]   ;;  %s7535_s14 = inlined_call_operand.hbm [shape: f32[2,1,32], index: 14, kind: input, shape index: {}]   ;;  %s7536_s15 = inlined_call_operand.vmem [shape: f32[2,32,32], index: 15, kind: input, shape index: {}]   ;;  %s7537_s16 = inlined_call_operand.vmem [shape: f32[2,32,32], index: 16, kind: input, shape index: {}]   ;;  %s7538_s17 = inlined_call_operand.hbm [shape: f32[2,32,32], index: 17, kind: input, shape index: {}]   ;;  %s7539_s18 = inlined_call_operand.hbm [shape: f32[2,32,32], index: 18, kind: input, shape index: {}]   ;;  %s7540_s19 = inlined_call_operand.hbm [shape: f32[2,1,32], index: 19, kind: input, shape index: {}]   ;;  %s7541_s20 = inlined_call_operand.hbm [shape: f32[2,1,32], index: 20, kind: input, shape index: {}]   ;;  %s7542_s21 = inlined_call_operand.hbm [shape: f32[2,1,32], index: 21, kind: input, shape index: {}]   ;;  %s7543_s22 = inlined_call_operand.hbm [shape: f32[2,32,64], index: 22, kind: input, shape index: {}]   ;;  %s7544_s23 = inlined_call_operand.hbm [shape: f32[2,1,64], index: 23, kind: input, shape index: {}]   ;;  %s7545_s24 = inlined_call_operand.vmem [shape: f32[2,64,32], index: 24, kind: input, shape index: {}]   ;;  %s7546_s25 = inlined_call_operand.hbm [shape: f32[2,1,32], index: 25, kind: input, shape index: {}]   ;;  %s7547_s26 = inlined_call_operand.hbm [shape: f32[2,1,32], index: 26, kind: input, shape index: {}]   ;;  %s7548_s27 = inlined_call_operand.hbm [shape: f32[2,1,32], index: 27, kind: input, shape index: {}]   ;;  %s7549_s28 = inlined_call_operand.hbm [shape: f32[2,8,128], index: 28, kind: output, shape index: {}]  }
   0x1   :  { %7590 = sst [smem:[#allocation46_spill]] %s7521_s0 }
   0x2   :  { %7591 = sst [smem:[#allocation47_spill]] %s7522_s1 }
   0x3   :  { %7592 = sst [smem:[#allocation48_spill]] %s7523_s2 }
   0x4   :  { %7593 = sst [smem:[#allocation49_spill]] %s7524_s3 }
   0x5   :  { %7594 = sst [smem:[#allocation50_spill]] %s7525_s4 }
   0x6   :  { %7595 = sst [smem:[#allocation51_spill]] %s7526_s5 }
   0x7   :  { %7596 = sst [smem:[#allocation52_spill]] %s7527_s6 }
   0x8   :  { %7597 = sst [smem:[#allocation53_spill]] %s7528_s7 }
   0x9   :  { %7598 = sst [smem:[#allocation54_spill]] %s7529_s8 }
   0xa   :  { %7599 = sst [smem:[#allocation55_spill]] %s7530_s9 }
   0xb   :  { %7600 = sst [smem:[#allocation56_spill]] %s7531_s10 }
   0xc   :  { %7601 = sst [smem:[#allocation57_spill]] %s7532_s11 }
   0xd   :  { %7602 = sst [smem:[#allocation58_spill]] %s7533_s12 }
   0xe   :  { %7603 = sst [smem:[#allocation59_spill]] %s7534_s13 }
   0xf   :  { %7604 = sst [smem:[#allocation60_spill]] %s7535_s14 }
  0x10   :  { %7605 = sst [smem:[#allocation61_spill]] %s7536_s15 }
  0x11   :  { %7606 = sst [smem:[#allocation62_spill]] %s7537_s16 }
  0x12   :  { %7607 = sst [smem:[#allocation63_spill]] %s7538_s17 }
  0x13   :  { %7608 = sst [smem:[#allocation64_spill]] %s7539_s18 }
  0x14   :  { %7609 = sst [smem:[#allocation65_spill]] %s7540_s19 }
  0x15   :  { %7610 = sst [smem:[#allocation66_spill]] %s7541_s20 }
  0x16   :  { %7611 = sst [smem:[#allocation67_spill]] %s7542_s21 }
  0x17   :  { %7612 = sst [smem:[#allocation68_spill]] %s7543_s22 }
  0x18   :  { %7613 = sst [smem:[#allocation69_spill]] %s7544_s23 }
  0x19   :  { %7614 = sst [smem:[#allocation70_spill]] %s7545_s24 }
  0x1a   :  { %7615 = sst [smem:[#allocation71_spill]] %s7546_s25 }
  0x1b   :  { %7616 = sst [smem:[#allocation72_spill]] %s7547_s26 }
  0x1c   :  { %7617 = sst [smem:[#allocation73_spill]] %s7548_s27 }
  0x1d   :  { %7618 = sst [smem:[#allocation74_spill]] %s7549_s28 }
  0x1e   :  { %33 = vsyncpa [#allocation3], 0 }
  0x1f   :  { %35 = vsyncpa [#allocation3 + $0x1], 0 }
  0x20   :  { %36 = vsyncpa [#allocation6], 0 }
  0x21   :  { %38 = vsyncpa [#allocation6 + $0x1], 0 }
  0x22   :  { %39 = vsyncpa [#allocation9], 0 }
  0x23   :  { %40 = vsyncpa [#allocation12], 0 }
  0x24   :  { %41 = vsyncpa [#allocation15], 0 }
  0x25   :  { %42 = vsyncpa [#allocation18], 0 }
  0x26   :  { %43 = vsyncpa [#allocation21], 0 }
  0x27   :  { %44 = vsyncpa [#allocation24], 0 }
  0x28   :  { %45 = vsyncpa [#allocation27], 0 }
  0x29   :  { %46 = vsyncpa [#allocation4], 0 }
  0x2a   :  { %48 = vsyncpa [#allocation4 + $0x1], 0  ;;  %s6403_s8 = smov 0   ;;  %s6405_s5 = smov 0  }
  0x2b   :  { %s6407_s9 = smov 0   ;;  %s6409_s30 = smov 0  }
  0x2c LB: > { %7619 = sst [smem:[#allocation41_spill]] %s6216_s5  ;;  %s6226_s3 = smov [#allocation7]   ;;  %s6224_s30 = sphi %s6409_s30, %s7698_s30   ;;  %s6220_s9 = sphi %s6407_s9, %s7697_s9   ;;  %s6216_s5 = sphi %s6405_s5, %s7696_s5   ;;  %s6212_s8 = sphi %s6403_s8, %s7695_s8  }
  0x2d   : > { %7620 = sst [smem:[#allocation42_spill]] %s6220_s9  ;;  %s711_s6 = sshll.u32 %s6226_s3, 4  ;;  %s712_s6 = int_to_ptr.vmem [resolvable:$true] %s711_s6 }
  0x2e   : > { %s6424_s10 = sadd.s32 4294967295, %s6224_s30   ;;  %p4682_p0 = scmp.ge.s32.totalorder %s6224_s30, 1 }
  0x2f   : > { %7621 = sst [smem:[#allocation43_spill]] %s6424_s10  ;;  %p7565_p1 = scmp.eq.s32.totalorder %s6424_s10, 0 }
  0x30   : > { %p693_p2 = scmp.lt.s32.totalorder %s6224_s30, 3  ;;  %s6227_s11 = smov [#allocation8]  }
  0x31   : > { %s725_s29 = sshll.u32 %s6227_s11, 4  ;;  %s6228_s7 = smov [#allocation11]   ;;  %s726_s29 = int_to_ptr.vmem [resolvable:$true] %s725_s29 }
  0x32   : > { %p6429_p3 = pnand %p4682_p0, %p693_p2  ;;  %s760_s12 = sshll.u32 %s6228_s7, 4  ;;  %s761_s12 = int_to_ptr.vmem [resolvable:$true] %s760_s12 }
  0x33   : > { %s5689_s4 = scalar_lea.vmem %s712_s6, 512  ;;  %p5697_p11 = scmp.lt.s32.totalorder %s712_s6, %s712_s6 }
  0x34   : > { %s7622_s0 = scalar_select %p6429_p3, 1, 0 }
  0x35   : > { %p5451_p5 = pneg %p6429_p3  ;;  %p5690_p8 = scmp.ne.s32.totalorder %s712_s6, %s5689_s4 }
  0x36   : > { %7623 = sst [smem:[#allocation44_spill]] %s7622_s0  ;;  %p5698_p12 = scmp.lt.s32.totalorder %s5689_s4, %s5689_s4 }
  0x37   : > { %p6438_p6 = pnand %p5451_p5, %p7565_p1 }
  0x38   : > { %p5699_p13 = por %p5698_p12, %p5697_p11 }
  0x39   : > { %p6444_p7 = pneg %p6438_p6 }
  0x3b   : > { %p5692_p9 = pnand %p5690_p8, %p6444_p7 }
  0x3d   : > { %p5693_p10 = pneg %p5692_p9 }
  0x3f   : > { %p5700_p0 = pnand %p5699_p13, %p5693_p10 }
  0x41   : > { %5703 = shalt.err (!%p5700_p0)
}
  0x42   : > { %s7567_s3 = smov 128   ;;  %s6230_s11 = smov 8  }
  0x43   : > { %s7626_s24 = sld [smem:[#allocation52_spill]]  ;;  %s5715_s15 = scalar_lea.vmem %s726_s29, 16 }
  0x44   : > { %p5716_p2 = scmp.ne.s32.totalorder %s726_s29, %s5715_s15  ;;  %s5722_s4 = scalar_lea.vmem %s726_s29, 32 }
  0x45   : > { %p5723_p9 = scmp.lt.s32.totalorder %s726_s29, %s726_s29  ;;  %p5724_p10 = scmp.lt.s32.totalorder %s5722_s4, %s5715_s15 }
  0x46   : > { %p5718_p5 = pnand %p5716_p2, %p6444_p7 }
  0x47   : > { %p5725_p11 = por %p5724_p10, %p5723_p9 }
  0x48   : > { %p5719_p8 = pneg %p5718_p5 }
  0x49   : > { %5454 = dma.hbm_to_vmem [thread:$0]  (!%p6438_p6), %s7626_s24, 512, %s712_s6, [#allocation6], %s7567_s3, %s7567_s3, %s6230_s11  }
  0x4a   : > { %p5726_p12 = pnand %p5725_p11, %p5719_p8 }
  0x4c   : > { %5729 = shalt.err (!%p5726_p12)
}
  0x4d   : > { %s7627_s10 = sld [smem:[#allocation53_spill]]  ;;  %s5741_s24 = scalar_lea.vmem %s761_s12, 32 }
  0x4e   : > { %p5742_p13 = scmp.ne.s32.totalorder %s761_s12, %s5741_s24  ;;  %p5749_p5 = scmp.lt.s32.totalorder %s761_s12, %s761_s12 }
  0x4f   : > { %p5750_p4 = scmp.lt.s32.totalorder %s5741_s24, %s5741_s24 }
  0x50   : > { %p5744_p0 = pnand %p5742_p13, %p6444_p7 }
  0x51   : > { %p5751_p1 = por %p5750_p4, %p5749_p5 }
  0x52   : > { %p5745_p2 = pneg %p5744_p0 }
  0x53   : > { %5457 = dma.hbm_to_vmem [thread:$0]  (!%p6438_p6), %s7627_s10, 16, %s726_s29, [#allocation9]  }
  0x54   : > { %p5752_p3 = pnand %p5751_p1, %p5745_p2 }
  0x56   : > { %5755 = shalt.err (!%p5752_p3)
}
  0x57   : > { %s6231_s15 = smov 16   ;;  %s6232_s28 = smov 1  }
  0x58   : > { %s7628_s13 = sld [smem:[#allocation59_spill]]  ;;  %s6233_s10 = smov [#allocation14]  }
  0x59   : > { %s792_s0 = sshll.u32 %s6233_s10, 4  ;;  %s6234_s29 = smov [#allocation17]   ;;  %s793_s0 = int_to_ptr.vmem [resolvable:$true] %s792_s0 }
  0x5a   : > { %s818_s7 = sshll.u32 %s6234_s29, 4  ;;  %s5767_s4 = scalar_lea.vmem %s793_s0, 1024  ;;  %s819_s7 = int_to_ptr.vmem [resolvable:$true] %s818_s7 }
  0x5b   : > { %p5768_p1 = scmp.ne.s32.totalorder %s793_s0, %s5767_s4  ;;  %p5775_p8 = scmp.lt.s32.totalorder %s793_s0, %s793_s0 }
  0x5c   : > { %p5776_p9 = scmp.lt.s32.totalorder %s5767_s4, %s5767_s4 }
  0x5d   : > { %p5770_p3 = pnand %p5768_p1, %p6444_p7 }
  0x5e   : > { %5463 = dma.hbm_to_vmem [thread:$0]  (!%p6438_p6), %s7628_s13, 32, %s761_s12, [#allocation12], %s6231_s15, %s6231_s15, %s6232_s28  }
  0x5f   : > { %p5771_p4 = pneg %p5770_p3  ;;  %p5777_p10 = por %p5776_p9, %p5775_p8 }
  0x61   : > { %p5778_p11 = pnand %p5777_p10, %p5771_p4 }
  0x63   : > { %5781 = shalt.err (!%p5778_p11)
}
  0x64   : > { %s7629_s17 = sld [smem:[#allocation63_spill]]  ;;  %s5793_s16 = scalar_lea.vmem %s819_s7, 32 }
  0x65   : > { %p5794_p12 = scmp.ne.s32.totalorder %s819_s7, %s5793_s16  ;;  %p5801_p2 = scmp.lt.s32.totalorder %s819_s7, %s819_s7 }
  0x66   : > { %p5802_p5 = scmp.lt.s32.totalorder %s5793_s16, %s5793_s16 }
  0x67   : > { %p5796_p13 = pnand %p5794_p12, %p6444_p7 }
  0x68   : > { %p5803_p1 = por %p5802_p5, %p5801_p2 }
  0x69   : > { %p5797_p0 = pneg %p5796_p13 }
  0x6a   : > { %5469 = dma.hbm_to_vmem [thread:$0]  (!%p6438_p6), %s7629_s17, 1024, %s793_s0, [#allocation15], %s7567_s3, %s7567_s3, %s6230_s11  }
  0x6b   : > { %p5804_p3 = pnand %p5803_p1, %p5797_p0 }
  0x6d   : > { %5807 = shalt.err (!%p5804_p3)
}
  0x6e   : > { %s7630_s19 = sld [smem:[#allocation65_spill]]  ;;  %s6235_s0 = smov [#allocation20]  }
  0x6f   : > { %s844_s29 = sshll.u32 %s6235_s0, 4  ;;  %s6236_s4 = smov [#allocation23]   ;;  %s845_s29 = int_to_ptr.vmem [resolvable:$true] %s844_s29 }
  0x70   : > { %s870_s12 = sshll.u32 %s6236_s4, 4  ;;  %s5819_s24 = scalar_lea.vmem %s845_s29, 32  ;;  %s871_s12 = int_to_ptr.vmem [resolvable:$true] %s870_s12 }
  0x71   : > { %p5820_p4 = scmp.ne.s32.totalorder %s845_s29, %s5819_s24  ;;  %p5827_p10 = scmp.lt.s32.totalorder %s845_s29, %s845_s29 }
  0x72   : > { %p5828_p11 = scmp.lt.s32.totalorder %s5819_s24, %s5819_s24 }
  0x73   : > { %p5822_p8 = pnand %p5820_p4, %p6444_p7 }
  0x74   : > { %5475 = dma.hbm_to_vmem [thread:$0]  (!%p6438_p6), %s7630_s19, 32, %s819_s7, [#allocation18], %s6231_s15, %s6231_s15, %s6232_s28  }
  0x75   : > { %p5823_p9 = pneg %p5822_p8  ;;  %p5829_p12 = por %p5828_p11, %p5827_p10 }
  0x77   : > { %p5830_p13 = pnand %p5829_p12, %p5823_p9 }
  0x79   : > { %5833 = shalt.err (!%p5830_p13)
}
  0x7a   : > { %s7631_s21 = sld [smem:[#allocation67_spill]]  ;;  %s5845_s6 = scalar_lea.vmem %s871_s12, 32 }
  0x7b   : > { %p5846_p0 = scmp.ne.s32.totalorder %s871_s12, %s5845_s6  ;;  %p5853_p1 = scmp.lt.s32.totalorder %s871_s12, %s871_s12 }
  0x7c   : > { %p5854_p3 = scmp.lt.s32.totalorder %s5845_s6, %s5845_s6 }
  0x7d   : > { %p5848_p2 = pnand %p5846_p0, %p6444_p7 }
  0x7e   : > { %p5855_p4 = por %p5854_p3, %p5853_p1 }
  0x7f   : > { %p5849_p5 = pneg %p5848_p2 }
  0x80   : > { %5481 = dma.hbm_to_vmem [thread:$0]  (!%p6438_p6), %s7631_s21, 32, %s845_s29, [#allocation21], %s6231_s15, %s6231_s15, %s6232_s28  }
  0x81   : > { %p5856_p8 = pnand %p5855_p4, %p5849_p5 }
  0x83   : > { %5859 = shalt.err (!%p5856_p8)
}
  0x84   : > { %s7632_s23 = sld [smem:[#allocation69_spill]]  ;;  %s6237_s29 = smov [#allocation26]  }
  0x85   : > { %s899_s4 = sshll.u32 %s6237_s29, 4  ;;  %s6238_s24 = smov [#allocation10]   ;;  %s900_s4 = int_to_ptr.vmem [resolvable:$true] %s899_s4 }
  0x86   : > { %s747_s7 = sshll.u32 %s6238_s24, 4  ;;  %s5871_s16 = scalar_lea.vmem %s900_s4, 32  ;;  %s748_s7 = int_to_ptr.vmem [resolvable:$true] %s747_s7 }
  0x87   : > { %p5872_p9 = scmp.ne.s32.totalorder %s900_s4, %s5871_s16  ;;  %p5879_p12 = scmp.lt.s32.totalorder %s900_s4, %s900_s4 }
  0x88   : > { %p5880_p13 = scmp.lt.s32.totalorder %s5871_s16, %s5871_s16 }
  0x89   : > { %p5874_p10 = pnand %p5872_p9, %p6444_p7 }
  0x8a   : > { %5487 = dma.hbm_to_vmem [thread:$0]  (!%p6438_p6), %s7632_s23, 32, %s871_s12, [#allocation24], %s6231_s15, %s6231_s15, %s6232_s28  }
  0x8b   : > { %p5875_p11 = pneg %p5874_p10  ;;  %p5881_p0 = por %p5880_p13, %p5879_p12 }
  0x8d   : > { %p5882_p2 = pnand %p5881_p0, %p5875_p11 }
  0x8f   : > { %5885 = shalt.err (!%p5882_p2)
}
  0x90   : > { %s7633_s26 = sld [smem:[#allocation72_spill]]  ;;  %s5897_s10 = scalar_lea.vmem %s748_s7, 32 }
  0x91   : > { %p5898_p5 = scmp.ne.s32.totalorder %s748_s7, %s5897_s10  ;;  %p5905_p4 = scmp.lt.s32.totalorder %s748_s7, %s748_s7 }
  0x92   : > { %p5906_p8 = scmp.lt.s32.totalorder %s5897_s10, %s5897_s10 }
  0x93   : > { %p5900_p1 = pnand %p5898_p5, %p6444_p7 }
  0x94   : > { %p5907_p9 = por %p5906_p8, %p5905_p4 }
  0x95   : > { %p5901_p3 = pneg %p5900_p1 }
  0x96   : > { %5493 = dma.hbm_to_vmem [thread:$0]  (!%p6438_p6), %s7633_s26, 32, %s900_s4, [#allocation27], %s6231_s15, %s6231_s15, %s6232_s28  }
  0x97   : > { %p5908_p10 = pnand %p5907_p9, %p5901_p3 }
  0x99   : > { %5911 = shalt.err (!%p5908_p10)
}
  0x9a   : > { %s7634_s24 = sld [smem:[#allocation58_spill]]  ;;  %s6239_s4 = smov [#allocation13]  }
  0x9b   : > { %s773_s16 = sshll.u32 %s6239_s4, 4  ;;  %s6240_s12 = smov [#allocation16]   ;;  %s774_s16 = int_to_ptr.vmem [resolvable:$true] %s773_s16 }
  0x9c   : > { %s805_s6 = sshll.u32 %s6240_s12, 4  ;;  %s5923_s3 = scalar_lea.vmem %s774_s16, 32  ;;  %s806_s6 = int_to_ptr.vmem [resolvable:$true] %s805_s6 }
  0x9d   : > { %p5924_p11 = scmp.ne.s32.totalorder %s774_s16, %s5923_s3  ;;  %p5931_p0 = scmp.lt.s32.totalorder %s774_s16, %s774_s16 }
  0x9e   : > { %p5932_p2 = scmp.lt.s32.totalorder %s5923_s3, %s5923_s3 }
  0x9f   : > { %p5926_p12 = pnand %p5924_p11, %p6444_p7 }
  0xa0   : > { %5460 = dma.hbm_to_vmem [thread:$0]  (!%p6438_p6), %s7634_s24, 32, %s748_s7, [#allocation9], %s6231_s15, %s6231_s15, %s6232_s28  }
  0xa1   : > { %p5927_p13 = pneg %p5926_p12  ;;  %p5933_p5 = por %p5932_p2, %p5931_p0 }
  0xa3   : > { %p5934_p1 = pnand %p5933_p5, %p5927_p13 }
  0xa5   : > { %5937 = shalt.err (!%p5934_p1)
}
  0xa6   : > { %s7635_s14 = sld [smem:[#allocation60_spill]]  ;;  %s5949_s0 = scalar_lea.vmem %s806_s6, 1024 }
  0xa7   : > { %p5950_p3 = scmp.ne.s32.totalorder %s806_s6, %s5949_s0  ;;  %p5957_p9 = scmp.lt.s32.totalorder %s806_s6, %s806_s6 }
  0xa8   : > { %p5958_p10 = scmp.lt.s32.totalorder %s5949_s0, %s5949_s0 }
  0xa9   : > { %p5952_p4 = pnand %p5950_p3, %p6444_p7 }
  0xaa   : > { %p5959_p11 = por %p5958_p10, %p5957_p9 }
  0xab   : > { %p5953_p8 = pneg %p5952_p4 }
  0xac   : > { %5466 = dma.hbm_to_vmem [thread:$0]  (!%p6438_p6), %s7635_s14, 32, %s774_s16, [#allocation12], %s6231_s15, %s6231_s15, %s6232_s28  }
  0xad   : > { %p5960_p12 = pnand %p5959_p11, %p5953_p8 }
  0xaf   : > { %5963 = shalt.err (!%p5960_p12)
}
  0xb0   : > { %s7636_s3 = smov 128   ;;  %s7637_s18 = sld [smem:[#allocation64_spill]] }
  0xb1   : > { %s6241_s4 = smov [#allocation19]   ;;  %s6242_s12 = smov [#allocation22]  }
  0xb2   : > { %s831_s16 = sshll.u32 %s6241_s4, 4  ;;  %s857_s7 = sshll.u32 %s6242_s12, 4  ;;  %s832_s16 = int_to_ptr.vmem [resolvable:$true] %s831_s16  ;;  %s858_s7 = int_to_ptr.vmem [resolvable:$true] %s857_s7 }
  0xb3   : > { %s5975_s10 = scalar_lea.vmem %s832_s16, 32  ;;  %p5983_p5 = scmp.lt.s32.totalorder %s832_s16, %s832_s16 }
  0xb4   : > { %p5976_p13 = scmp.ne.s32.totalorder %s832_s16, %s5975_s10  ;;  %p5984_p1 = scmp.lt.s32.totalorder %s5975_s10, %s5975_s10 }
  0xb6   : > { %5472 = dma.hbm_to_vmem [thread:$0]  (!%p6438_p6), %s7637_s18, 1024, %s806_s6, [#allocation15], %s7636_s3, %s7636_s3, %s6230_s11  }
  0xb7   : > { %p5978_p0 = pnand %p5976_p13, %p6444_p7  ;;  %p5985_p3 = por %p5984_p1, %p5983_p5 }
  0xb9   : > { %p5979_p2 = pneg %p5978_p0 }
  0xbb   : > { %p5986_p4 = pnand %p5985_p3, %p5979_p2 }
  0xbd   : > { %5989 = shalt.err (!%p5986_p4)
}
  0xbe   : > { %s7638_s20 = sld [smem:[#allocation66_spill]]  ;;  %s6001_s29 = scalar_lea.vmem %s858_s7, 1024 }
  0xbf   : > { %p6002_p8 = scmp.ne.s32.totalorder %s858_s7, %s6001_s29  ;;  %p6009_p11 = scmp.lt.s32.totalorder %s858_s7, %s858_s7 }
  0xc0   : > { %p6010_p12 = scmp.lt.s32.totalorder %s6001_s29, %s6001_s29 }
  0xc1   : > { %p6004_p9 = pnand %p6002_p8, %p6444_p7 }
  0xc2   : > { %p6011_p13 = por %p6010_p12, %p6009_p11 }
  0xc3   : > { %p6005_p10 = pneg %p6004_p9 }
  0xc4   : > { %5478 = dma.hbm_to_vmem [thread:$0]  (!%p6438_p6), %s7638_s20, 32, %s832_s16, [#allocation18], %s6231_s15, %s6231_s15, %s6232_s28  }
  0xc5   : > { %p6012_p0 = pnand %p6011_p13, %p6005_p10 }
  0xc7   : > { %6015 = shalt.err (!%p6012_p0)
}
  0xc8   : > { %s7639_s22 = sld [smem:[#allocation68_spill]]  ;;  %s6243_s16 = smov [#allocation25]  }
  0xc9   : > { %s886_s12 = sshll.u32 %s6243_s16, 4  ;;  %s6244_s10 = smov [#allocation28]   ;;  %s887_s12 = int_to_ptr.vmem [resolvable:$true] %s886_s12 }
  0xca   : > { %s912_s6 = sshll.u32 %s6244_s10, 4  ;;  %s6027_s0 = scalar_lea.vmem %s887_s12, 32  ;;  %s913_s6 = int_to_ptr.vmem [resolvable:$true] %s912_s6 }
  0xcb   : > { %p6028_p2 = scmp.ne.s32.totalorder %s887_s12, %s6027_s0  ;;  %p6035_p3 = scmp.lt.s32.totalorder %s887_s12, %s887_s12 }
  0xcc   : > { %p6036_p4 = scmp.lt.s32.totalorder %s6027_s0, %s6027_s0 }
  0xcd   : > { %p6030_p5 = pnand %p6028_p2, %p6444_p7 }
  0xce   : > { %5484 = dma.hbm_to_vmem [thread:$0]  (!%p6438_p6), %s7639_s22, 1024, %s858_s7, [#allocation21], %s7636_s3, %s7636_s3, %s6230_s11  }
  0xcf   : > { %p6031_p1 = pneg %p6030_p5  ;;  %p6037_p8 = por %p6036_p4, %p6035_p3 }
  0xd1   : > { %p6038_p9 = pnand %p6037_p8, %p6031_p1 }
  0xd3   : > { %6041 = shalt.err (!%p6038_p9)
}
  0xd4   : > { %s7640_s25 = sld [smem:[#allocation71_spill]]  ;;  %s6053_s7 = scalar_lea.vmem %s913_s6, 32 }
  0xd5   : > { %p6054_p10 = scmp.ne.s32.totalorder %s913_s6, %s6053_s7  ;;  %p6061_p13 = scmp.lt.s32.totalorder %s913_s6, %s913_s6 }
  0xd6   : > { %p6062_p0 = scmp.lt.s32.totalorder %s6053_s7, %s6053_s7 }
  0xd7   : > { %p6056_p11 = pnand %p6054_p10, %p6444_p7 }
  0xd8   : > { %p6063_p2 = por %p6062_p0, %p6061_p13 }
  0xd9   : > { %p6057_p12 = pneg %p6056_p11 }
  0xda   : > { %5490 = dma.hbm_to_vmem [thread:$0]  (!%p6438_p6), %s7640_s25, 32, %s887_s12, [#allocation24], %s6231_s15, %s6231_s15, %s6232_s28  }
  0xdb   : > { %p6064_p5 = pnand %p6063_p2, %p6057_p12 }
  0xdd   : > { %6067 = shalt.err (!%p6064_p5)
}
  0xde   : > { %s7641_s27 = sld [smem:[#allocation73_spill]]  ;;  %s4681_s2 = sadd.s32 4294967294, %s6224_s30  }
  0xdf   : > { %s7642_s1 = sld [smem:[#allocation43_spill]]  ;;  %s6597_s4 = sadd.s32 1, %s6224_s30  }
  0xe0   : > { %s134_s16 = sadd.s32 1, %s6220_s9  ;;  %s131_s12 = ssub.s32 %s6224_s30, %s6597_s4 }
  0xe1   : > { %p141_p7 = scmp.ne.s32.totalorder %s6220_s9, %s6216_s5  ;;  %p132_p1 = scmp.eq.s32.totalorder %s131_s12, 0 }
  0xe2   : > { %p142_p3 = scmp.eq.s32.totalorder %s6224_s30, 0  ;;  %p147_p4 = scmp.ne.s32.totalorder %s6216_s5, %s6212_s8 }
  0xe3   : > { %s6609_s10 = scalar_select %p132_p1, %s6220_s9, %s134_s16  }
  0xe4   : > { %5496 = dma.hbm_to_vmem [thread:$0]  (!%p6438_p6), %s7641_s27, 32, %s913_s6, [#allocation27], %s6231_s15, %s6231_s15, %s6232_s28  }
  0xe5   : > { %p680_p8 = scmp.eq.s32.totalorder %s7642_s1, 1  ;;  %7643 = sst [smem:[#allocation45_spill]] %s6609_s10 }
  0xe6   : > { %p143_p9 = por %p142_p3, %p141_p7  ;;  %p7644_p10 = scmp.eq.s32.totalorder %s7642_s1, 0 }
  0xe7   : > { %p6617_p6 = por %p680_p8, %p141_p7  ;;  %p686_p12 = scmp.eq.s32.totalorder %s4681_s2, 1 }
  0xe8   : > { %p6613_p11 = por %p7644_p10, %p147_p4  ;;  %p5523_p13 = scmp.lt.s32.totalorder %s6224_s30, 2 }
  0xe9   : > { %s7646_s28 = scalar_select %p6617_p6, 1, 0 }
  0xea   : > { %s7645_s15 = scalar_select %p6613_p11, 1, 0 }
  0xeb   : > { %s6623_s6 = sand.u32 1, %s6220_s9   ;;  %p6625_p0 = por %p686_p12, %p147_p4 }
  0xec   : > { %s4699_s11 = sshll.u32 %s6623_s6, 3  ;;  %s4700_s3 = sshll.u32 %s6224_s30, 7 }
  0xed   : > { %s7647_s0 = scalar_select %p6625_p0, 1, 0 }
  0xee   : > { %s7648_s24 = sld [smem:[#allocation49_spill]]  ;;  %s944_s2 = scalar_lea.vmem [#allocation2], %s4699_s11 }
  0xef   : > { %s951_s16 = sshll.u32 %s944_s2, 4  ;;  %p6636_p2 = pnand %p5523_p13, %p143_p9  ;;  %s952_s16 = int_to_ptr.vmem [resolvable:$true] %s951_s16 }
  0xf0   : > { %s941_s14 = scalar_lea.sflag [#allocation3], %s6623_s6 }
  0xf1   : > { %p6070_p7 = pneg %p6636_p2 }
  0xf4   : > { %s6634_s1 = scalar_lea.hbm %s7648_s24, %s4700_s3  ;;  %s6073_s7 = scalar_lea.hbm %s7648_s24, 256 }
  0xf5   : > { %s6068_s17 = scalar_lea.hbm %s6634_s1, 128  ;;  %p6074_p4 = scmp.lt.s32.totalorder %s6634_s1, %s7648_s24 }
  0xf6   : > { %p6069_p5 = scmp.ne.s32.totalorder %s6634_s1, %s6068_s17  ;;  %p6075_p8 = scmp.lt.s32.totalorder %s6073_s7, %s6068_s17 }
  0xf8   : > { %p6071_p1 = pnand %p6070_p7, %p6069_p5  ;;  %p6076_p9 = por %p6075_p8, %p6074_p4 }
  0xfa   : > { %p6072_p3 = pneg %p6071_p1 }
  0xfc   : > { %p6077_p10 = pnand %p6076_p9, %p6072_p3 }
  0xfe   : > { %6080 = shalt.err (!%p6077_p10)
}
  0xff   : > { %s6081_s13 = scalar_lea.vmem %s952_s16, 128  ;;  %s6245_s18 = smov [#allocation2]  }
 0x100   : > { %p6082_p12 = scmp.ne.s32.totalorder %s952_s16, %s6081_s13  ;;  %s6086_s19 = sshll.u32 %s6245_s18, 4  ;;  %s6087_s19 = int_to_ptr.vmem [resolvable:$false] %s6086_s19 }
 0x101   : > { %s6088_s3 = scalar_lea.vmem %s6087_s19, 256  ;;  %p6089_p1 = scmp.lt.s32.totalorder %s952_s16, %s6087_s19 }
 0x102   : > { %p6084_p13 = pnand %p6082_p12, %p6070_p7  ;;  %p6090_p0 = scmp.lt.s32.totalorder %s6088_s3, %s6081_s13 }
 0x104   : > { %p6085_p5 = pneg %p6084_p13  ;;  %p6091_p6 = por %p6090_p0, %p6089_p1 }
 0x106   : > { %p6092_p11 = pnand %p6091_p6, %p6085_p5 }
 0x108   : > { %6095 = shalt.err (!%p6092_p11)
}
 0x109   : > { %5500 = dma.hbm_to_vmem [thread:$0]  (!%p6636_p2), %s6634_s1, 128, %s952_s16, %s941_s14  }
 0x10a   : > { %s4701_s17 = sshll.u32 %s6224_s30, 4  ;;  %s7650_s29 = sld [smem:[#allocation50_spill]] }
 0x10b   : > { %s961_s13 = scalar_lea.vmem [#allocation5], %s6623_s6  ;;  %s7651_s2 = sand.u32 1, %s6224_s30  }
 0x10c   : > { %s968_s19 = sshll.u32 %s961_s13, 4  ;;  %s959_s3 = scalar_lea.sflag [#allocation6], %s7651_s2  ;;  %s969_s19 = int_to_ptr.vmem [resolvable:$true] %s968_s19 }
 0x110   : > { %s6666_s18 = scalar_lea.hbm %s7650_s29, %s4701_s17  ;;  %s6101_s16 = scalar_lea.hbm %s7650_s29, 32 }
 0x111   : > { %s6096_s20 = scalar_lea.hbm %s6666_s18, 16  ;;  %p6102_p3 = scmp.lt.s32.totalorder %s6666_s18, %s7650_s29 }
 0x112   : > { %p6097_p11 = scmp.ne.s32.totalorder %s6666_s18, %s6096_s20  ;;  %p6103_p4 = scmp.lt.s32.totalorder %s6101_s16, %s6096_s20 }
 0x114   : > { %p6099_p6 = pnand %p6097_p11, %p6070_p7  ;;  %p6104_p8 = por %p6103_p4, %p6102_p3 }
 0x116   : > { %p6100_p0 = pneg %p6099_p6 }
 0x118   : > { %p6105_p9 = pnand %p6104_p8, %p6100_p0 }
 0x11a   : > { %6108 = shalt.err (!%p6105_p9)
}
 0x11b   : > { %s6109_s6 = scalar_lea.vmem %s969_s19, 16  ;;  %s6246_s7 = smov [#allocation5]  }
 0x11c   : > { %p6110_p10 = scmp.ne.s32.totalorder %s969_s19, %s6109_s6  ;;  %s6114_s13 = sshll.u32 %s6246_s7, 4  ;;  %s6115_s13 = int_to_ptr.vmem [resolvable:$false] %s6114_s13 }
 0x11d   : > { %s6116_s2 = scalar_lea.vmem %s6115_s13, 32  ;;  %p6117_p5 = scmp.lt.s32.totalorder %s969_s19, %s6115_s13 }
 0x11e   : > { %p6112_p12 = pnand %p6110_p10, %p6070_p7  ;;  %p6118_p1 = scmp.lt.s32.totalorder %s6116_s2, %s6109_s6 }
 0x120   : > { %p6113_p13 = pneg %p6112_p12  ;;  %p6119_p11 = por %p6118_p1, %p6117_p5 }
 0x122   : > { %p6120_p6 = pnand %p6119_p11, %p6113_p13 }
 0x124   : > { %6123 = shalt.err (!%p6120_p6)
}
 0x125   : > { %5503 = dma.hbm_to_vmem [thread:$0]  (!%p6636_p2), %s6666_s18, 16, %s969_s19, %s959_s3  }
 0x126   : > { %s7652_s20 = sld [smem:[#allocation44_spill]] }
 0x12c   : > { %p7653_p0 = scmp.ne.s32.totalorder %s7652_s20, 0 }
 0x12d   : > { %s6692_s14 = sand.u32 (!%p7653_p0), 1, %s6216_s5   ;;  %p7654_p7 = scmp.ne.s32.totalorder (!%p7653_p0), %s7645_s15, 0 }
 0x12e   : > { %977 = sbr.rel (%p7653_p0) target bundleno = 9089 (0x2381), region = 132  ;;  %s7571_s1 = sshll.u32 (!%p7653_p0), %s6692_s14, 3 }
 0x12f   : > { %s980_s16 = scalar_lea.sflag (!%p7653_p0), [#allocation3], %s6692_s14  ;;  %s6698_s17 = scalar_lea.vmem (!%p7653_p0), [#allocation2], %s7571_s1 }
 0x133   : > { %6167 = dma.done.wait (%p7654_p7), %s980_s16, 128  }
 0x134   : > { %6169 = vsyncadd (%p7654_p7), %s980_s16, 4294967168  ;;  %s7655_s12 = sld [smem:[#allocation43_spill]]  ;;  %s991_s3 = scalar_lea.vmem [#allocation5], %s6692_s14 }
 0x13a   : > { %s988_s18 = sand.u32 1, %s7655_s12  }
 0x13b   : > { %s989_s19 = scalar_lea.sflag [#allocation6], %s988_s18 }
 0x13c   : > { %6171 = dma.done.wait (%p7654_p7), %s989_s19, 16  }
 0x13d   : > { %6173 = vsyncadd (%p7654_p7), %s989_s19, 4294967280  ;;  %p7656_p2 = scmp.eq.s32.totalorder %s7655_s12, 0 }
 0x13f   : > { %6175 = dma.done.wait (%p7656_p2), [#allocation6], 512   ;;  %p7657_p3 = pmov %p7656_p2 }
 0x140   : > { %p7658_p4 = pmov %p7656_p2 }
 0x141   : > { %6177 = vsyncadd (%p7657_p3), [#allocation6], 4294966784 }
 0x142   : > { %6179 = dma.done.wait (%p7658_p4), [#allocation9], 48   ;;  %p7659_p8 = pmov %p7656_p2 }
 0x143   : > { %p7660_p9 = pmov %p7656_p2 }
 0x144   : > { %6181 = vsyncadd (%p7659_p8), [#allocation9], 4294967248 }
 0x145   : > { %6183 = dma.done.wait (%p7660_p9), [#allocation12], 64   ;;  %p7661_p10 = pmov %p7656_p2 }
 0x146   : > { %p7662_p12 = pmov %p7656_p2 }
 0x147   : > { %6185 = vsyncadd (%p7661_p10), [#allocation12], 4294967232 }
 0x148   : > { %6187 = dma.done.wait (%p7662_p12), [#allocation15], 2048   ;;  %p7663_p13 = pmov %p7656_p2 }
 0x149   : > { %p7664_p5 = pmov %p7656_p2 }
 0x14a   : > { %6189 = vsyncadd (%p7663_p13), [#allocation15], 4294965248 }
 0x14b   : > { %6191 = dma.done.wait (%p7664_p5), [#allocation18], 64   ;;  %p7665_p1 = pmov %p7656_p2 }
 0x14d   : > { %6193 = vsyncadd (%p7665_p1), [#allocation18], 4294967232  ;;  %p7666_p11 = pmov %p7665_p1 }
 0x14e   : > { %p7667_p6 = pmov %p7665_p1 }
 0x14f   : > { %6195 = dma.done.wait (%p7666_p11), [#allocation21], 1056  }
 0x150   : > { %6197 = vsyncadd (%p7667_p6), [#allocation21], 4294966240  ;;  %p7668_p0 = pmov %p7665_p1 }
 0x152   : > { %6199 = dma.done.wait (%p7668_p0), [#allocation24], 64   ;;  %p7669_p7 = pmov %p7668_p0 }
 0x153   : > { %p7670_p2 = pmov %p7668_p0 }
 0x154   : > { %6201 = vsyncadd (%p7669_p7), [#allocation24], 4294967232 }
 0x155   : > { %6203 = dma.done.wait (%p7670_p2), [#allocation27], 64   ;;  %p7671_p3 = pmov %p7668_p0 }
 0x156   : > { %v1146_v0 = vlaneseq  ;;  %p1136_p4 = scmp.lt.s32.totalorder %s7655_s12, 1  ;;  %v6247_v1 = vmov 0   ;;  %v6248_v2 = vmov 0.0   ;;  %vm6249_vm0 = vmmov 0   ;;  %s7672_s13 = sld [smem:[#allocation46_spill]] }
 0x157   : > { %6205 = vsyncadd (%p7671_p3), [#allocation27], 4294967232  ;;  %5601 = vset.pattern.permute.xlu0 %v6247_v1  ;;  %4982 = vmatprep.subr.mxu0 %v6248_v2  ;;  %v1243_v5 = vld [vmem:[%s991_s3] sm:$0x1]  ;;  %s7673_s18 = sld [smem:[#allocation51_spill]]  ;;  %v6250_v30 = vmov 1.0  }
 0x158   : > { %v2145_v3 = vshrl.u32 %v1146_v0, 7  ;;  %s6746_s15 = scalar_select %p1136_p4, %s7655_s12, 1  ;;  %5017 = vmatprep.subr.bf16.mxu1 %v6248_v2  ;;  %5014 = vmatprep.mubr.msk.f32.mxu0 %vm6249_vm0, %v6248_v2  ;;  %vm2142_vm1 = vcmp.gt.f32.partialorder %v1243_v5, 0.0  ;;  %v1147_v28 = vand.u32 127, %v1146_v0  ;;  %vm1264_vm3 = vcmask 261120  }
 0x159   : > { %5021 = vmatprep.mubr.msk.bf16.mxu1 %vm6249_vm0, %v6248_v2  ;;  %v2143_v9 = vsel %vm2142_vm1, 1, %v6247_v1  ;;  %s7674_s20 = sld [smem:[#allocation54_spill]]  ;;  %s7584_s3 = smov 120   ;;  %vm1394_vm4 = vcmask 64512   ;;  %vm1460_vm5 = vcmask 1043456   ;;  %vm1856_vm7 = vcmask 130048  }
 0x15a   : > { %s7572_s11 = sshll.u32 %s6746_s15, 3  ;;  %v2146_v4 = vsub.s32 0, %v2145_v3  ;;  %s7675_s16 = sld [smem:[#allocation47_spill]]  ;;  %vm1858_vm8 = vcmask 195584   ;;  %vm2724_vm10 = vcmask 523264  }
 0x15b   : > { %s7580_s21 = smov 104   ;;  %s7678_s1 = sld [smem:[#allocation57_spill]] }
 0x15c   : > { %s1139_s2 = scalar_lea.vmem %s7672_s13, %s7572_s11  ;;  %v6767_v10 = vrot.slane %v2143_v9, %v2146_v4  ;;  %s7677_s13 = sld [smem:[#allocation56_spill]] }
 0x15d   : > { %v1145_v6 = vld [vmem:[%s1139_s2] sm:$0xff]  ;;  %v1169_v7 = vld [vmem:[%s7673_s18 + $0x78] sm:$0xff]  ;;  %v1168_v8 = vld [vmem:[%s7673_s18 + $0x70] sm:$0xff]  ;;  %s7582_s11 = smov 112   ;;  %s7578_s19 = smov 8  }
 0x15e   : > { %1149 = vperm.xlu0 %5601, %v1145_v6   ;;  %4983 = vmatpush3.msra.mxu0 %v1169_v7  ;;  %v1167_v11 = vld [vmem:[%s7673_s18 + $0x68] sm:$0xff]  ;;  %v1166_v12 = vld [vmem:[%s7673_s18 + $0x60] sm:$0xff]  ;;  %v1165_v15 = vld [vmem:[%s7673_s18 + $0x58] sm:$0xff]  ;;  %s7576_s6 = smov 16   ;;  %s7679_s7 = sshll.u32 %s6746_s15, 3  ;;  %vm2148_vm9 = vcmp.eq.s32.totalorder %v6767_v10, 1 }
 0x15f   : > { %4984 = vmatprep.subr.mxu0 %v6248_v2  ;;  %v1246_v13 = vld [vmem:[%s7674_s20 + $0x10] sm:$0xff]  ;;  %v1247_v14 = vld [vmem:[%s7674_s20 + $0x18] sm:$0xff]  ;;  %v1163_v18 = vld [vmem:[%s7673_s18 + $0x48] sm:$0xff]  ;;  %s7680_s2 = sld [smem:[#allocation48_spill]]  ;;  %s7684_s15 = smov 112  }
 0x160   : > { %4985 = vmatpush3.msra.mxu0 %v1168_v8  ;;  %v1263_v16 = vpack.c.bf16 %v1247_v14, %v1246_v13  ;;  %v1164_v17 = vld [vmem:[%s7673_s18 + $0x50] sm:$0xff]  ;;  %v1162_v19 = vld [vmem:[%s7673_s18 + $0x40] sm:$0xff]  ;;  %v1161_v20 = vld [vmem:[%s7673_s18 + $0x38] sm:$0xff]  ;;  %s7682_s23 = sld [smem:[#allocation61_spill]]  ;;  %s7688_s24 = smov 24  }
 0x161   : > { %4986 = vmatprep.subr.mxu0 %v6248_v2  ;;  %v1160_v21 = vld [vmem:[%s7673_s18 + $0x30] sm:$0xff]  ;;  %v1159_v22 = vld [vmem:[%s7673_s18 + $0x28] sm:$0xff]  ;;  %v1158_v23 = vld [vmem:[%s7673_s18 + $0x20] sm:$0xff]  ;;  %s4831_s29 = sshll.u32 %s7655_s12, 7  ;;  %s4412_s5 = scalar_lea.sflag [#allocation4], %s6692_s14 }
 0x162   : > { %4987 = vmatpush3.msra.mxu0 %v1167_v11  ;;  %5018 = vmatpush3.bf16.msra.mxu1 %v1263_v16  ;;  %v1157_v24 = vld [vmem:[%s7673_s18 + $0x18] sm:$0xff]  ;;  %v1156_v25 = vld [vmem:[%s7673_s18 + $0x10] sm:$0xff]  ;;  %v1155_v26 = vld [vmem:[%s7673_s18 + $0x8] sm:$0xff]  ;;  %p7692_p9 = scmp.ne.s32.totalorder %s7646_s28, 0  ;;  %s6257_s9 = smov [#allocation29]  }
 0x163   : > { %4988 = vmatprep.subr.mxu0 %v6248_v2  ;;  %5019 = vmatprep.subr.bf16.mxu1 %v6248_v2  ;;  %v1154_v27 = vld [vmem:[%s7673_s18] sm:$0xff]  ;;  %v1245_v32 = vld [vmem:[%s7674_s20 + $0x8] sm:$0xff]  ;;  %s7676_s18 = sld [smem:[#allocation55_spill]]  ;;  %v1254_v45 = vld [vmem:[%s7677_s13 + $0x10] sm:$0xff]  ;;  %s6128_s10 = sshll.u32 %s6257_s9, 4  ;;  %s6129_s10 = int_to_ptr.vmem [resolvable:$false] %s6128_s10 }
 0x164   : > { %4989 = vmatpush3.msra.mxu0 %v1166_v12  ;;  %v1244_v31 = vld [vmem:[%s7674_s20] sm:$0xff]  ;;  %v1255_v46 = vld [vmem:[%s7677_s13 + $0x18] sm:$0xff]  ;;  %v1253_v49 = vld [vmem:[%s7677_s13 + $0x8] sm:$0xff] }
 0x165   : > { %4990 = vmatprep.subr.mxu0 %v6248_v2  ;;  %v1262_v33 = vpack.c.bf16 %v1245_v32, %v1244_v31  ;;  %v1170_v34 = vld [vmem:[%s7675_s16] sm:$0xff]  ;;  %v1351_v47 = vpack.c.bf16 %v1255_v46, %v1254_v45  ;;  %s7574_s16 = smov 24  }
 0x166   : > { %4991 = vmatpush3.msra.mxu0 %v1165_v15  ;;  %v1252_v48 = vld [vmem:[%s7677_s13] sm:$0xff] }
 0x167   : > { %4992 = vmatprep.subr.mxu0 %v6248_v2  ;;  %5020 = vmatpush3.bf16.msra.mxu1 %v1262_v33  ;;  %v1350_v50 = vpack.c.bf16 %v1253_v49, %v1252_v48  ;;  %v6920_v15 = vld [vmem:[%s6698_s17] sm:$0xff]  ;;  %s7685_s17 = smov 104  }
 0x168   : > { %4993 = vmatpush3.msra.mxu0 %v1164_v17  ;;  %5025 = vmatprep.subr.bf16.mxu1 %v6248_v2  ;;  %vm1441_vm6 = vcmp.gt.f32.partialorder %v6920_v15, 0.0 }
 0x169   : > { %4994 = vmatprep.subr.mxu0 %v6248_v2  ;;  %v1250_v35 = vld [vmem:[%s7676_s18 + $0x10] sm:$0xff]  ;;  %v1251_v36 = vld [vmem:[%s7676_s18 + $0x18] sm:$0xff]  ;;  %v1248_v42 = vld [vmem:[%s7676_s18] sm:$0xff] }
 0x16a   : > { %4995 = vmatpush3.msra.mxu0 %v1163_v18  ;;  %v1309_v40 = vpack.c.bf16 %v1251_v36, %v1250_v35  ;;  %v1249_v43 = vld [vmem:[%s7676_s18 + $0x8] sm:$0xff] }
 0x16b   : > { %4996 = vmatprep.subr.mxu0 %v6248_v2  ;;  %v1308_v44 = vpack.c.bf16 %v1249_v43, %v1248_v42 }
 0x16c   : > { %4997 = vmatpush3.msra.mxu0 %v1162_v19 }
 0x16d   : > { %4998 = vmatprep.subr.mxu0 %v6248_v2 }
 0x16e   : > { %4999 = vmatpush3.msra.mxu0 %v1161_v20 }
 0x16f   : > { %5000 = vmatprep.subr.mxu0 %v6248_v2 }
 0x170   : > { %5001 = vmatpush3.msra.mxu0 %v1160_v21 }
 0x171   : > { %5002 = vmatprep.subr.mxu0 %v6248_v2 }
 0x172   : > { %5003 = vmatpush3.msra.mxu0 %v1159_v22 }
 0x173   : > { %5004 = vmatprep.subr.mxu0 %v6248_v2 }
 0x174   : > { %5005 = vmatpush3.msra.mxu0 %v1158_v23 }
 0x175   : > { %5006 = vmatprep.subr.mxu0 %v6248_v2 }
 0x176   : > { %5007 = vmatpush3.msra.mxu0 %v1157_v24 }
 0x177   : > { %5008 = vmatprep.subr.mxu0 %v6248_v2 }
 0x178   : > { %5009 = vmatpush3.msra.mxu0 %v1156_v25 }
 0x179   : > { %5010 = vmatprep.subr.mxu0 %v6248_v2 }
 0x17a   : > { %5011 = vmatpush3.msra.mxu0 %v1155_v26 }
 0x17b   : > { %5012 = vmatprep.subr.mxu0 %v6248_v2 }
 0x17c   : > { %5013 = vmatpush3.msra.mxu0 %v1154_v27 }
 0x17d   : > { %5047 = vmatprep.subr.bf16.mxu0 %v6248_v2 }
 0x1d9   : > { %v1150_v29 = vpop.permute.xlu0 %1149 }
 0x1da   : > { %vm1151_vm2 = vcmp.eq.s32.totalorder %v1147_v28, %v1150_v29 }
 0x1db   : > { %5015 = vmatmul.mubr.msk.f32.vlgmr.msra.gmra.mxu0 %vm1151_vm2, %v6250_v30 }
 0x1dc   : > { %5049 = vmatprep.mubr.msk.bf16.mxu0 %vm6249_vm0, %v6248_v2 }
 0x29b   : > { %v1237_v37 = vpop.f32.mrf.mxu0 }
 0x29c   : > { %v6853_v38 = vadd.f32 %v1237_v37, %v1170_v34 }
 0x29d   : > { %v5016_v39 = vpop.f32.mrf.mxu0 }
 0x29e   : > { %v1261_v41 = vpack.c.bf16 %v6853_v38, %v6853_v38 }
 0x2a0   : > { %5022 = vmatmul.mubr.msk.bf16.vlgmr.msra.gmra.mxu1 %vm1264_vm3, %v1261_v41 }
 0x2a1   : > { %5026 = vmatpush3.bf16.msra.mxu1 %v1309_v40  ;;  %5029 = vmatprep.mubr.msk.bf16.mxu1 %vm6249_vm0, %v6248_v2 }
 0x2a2   : > { %5027 = vmatprep.subr.bf16.mxu1 %v6248_v2 }
 0x2a5   : > { %5028 = vmatpush3.bf16.msra.mxu1 %v1308_v44 }
 0x2a6   : > { %5033 = vmatprep.subr.bf16.mxu1 %v6248_v2 }
 0x2a8   : > { %5030 = vmatmul.mubr.msk.bf16.vlgmr.msra.gmra.mxu1 %vm1264_vm3, %v1261_v41 }
 0x2a9   : > { %5034 = vmatpush3.bf16.msra.mxu1 %v1351_v47  ;;  %5037 = vmatprep.mubr.msk.bf16.mxu1 %vm6249_vm0, %v6248_v2 }
 0x2aa   : > { %5035 = vmatprep.subr.bf16.mxu1 %v6248_v2 }
 0x2ad   : > { %5036 = vmatpush3.bf16.msra.mxu1 %v1350_v50 }
 0x2ae   : > { %5041 = vmatprep.subr.bf16.mxu1 %v6248_v2 }
 0x2b0   : > { %5038 = vmatmul.mubr.msk.bf16.vlgmr.msra.gmra.mxu1 %vm1264_vm3, %v1261_v41 }
 0x2b1   : > { %5043 = vmatprep.mubr.msk.bf16.mxu1 %vm6249_vm0, %v6248_v2 }
 0x360   : > { %v1302_v51 = vpop.f32.mrf.mxu1 }
 0x361   : > { %v1392_v52 = vpack.c.bf16 %v1302_v51, %v1302_v51 }
 0x362   : > { %v5023_v53 = vpop.f32.mrf.mxu1 }
 0x363   : > { %1505 = vrot.lane.b32.xlu1 %v1392_v52, %s7584_s3 }
 0x364   : > { %v1305_v54 = vpop.f32.mrf.mxu1 }
 0x366   : > { %v5024_v55 = vpop.f32.mrf.mxu1 }
 0x368   : > { %v1344_v56 = vpop.f32.mrf.mxu1 }
 0x369   : > { %v1393_v57 = vpack.c.bf16 %v1344_v56, %v1344_v56 }
 0x36a   : > { %v5031_v58 = vpop.f32.mrf.mxu1 }
 0x36b   : > { %1621 = vrot.lane.b32.xlu1 %v1393_v57, %s7582_s11  ;;  %1508 = vrot.lane.b32.xlu0 %v1393_v57, %s7584_s3  ;;  %v1399_v59 = vsel %vm1394_vm4, %v1393_v57, 0 }
 0x36c   : > { %v1347_v60 = vpop.f32.mrf.mxu1  ;;  %5042 = vmatpush3.bf16.xpose.msra.mxu1 %v1399_v59 }
 0x36d   : > { %5053 = vmatprep.subr.bf16.mxu1 %v6248_v2 }
 0x36e   : > { %v5032_v61 = vpop.f32.mrf.mxu1 }
 0x36f   : > { %1733 = vrot.lane.b32.xlu1 %v1393_v57, %s7580_s21  ;;  %1619 = vrot.lane.b32.xlu0 %v1392_v52, %s7582_s11 }
 0x370   : > { %v1386_v62 = vpop.f32.mrf.mxu1 }
 0x371   : > { %v6895_v63 = vpack.c.bf16 %v1386_v62, %v1386_v62 }
 0x372   : > { %v5039_v0 = vpop.f32.mrf.mxu1 }
 0x373   : > { %1731 = vrot.lane.b32.xlu0 %v1392_v52, %s7580_s21  ;;  %5044 = vmatmul.mubr.msk.bf16.vlgmr.msra.gmra.mxu1 %vm1394_vm4, %v1392_v52  ;;  %v1462_v1 = vsel %vm1460_vm5, %v6895_v63, 0 }
 0x374   : > { %v1389_v3 = vpop.f32.mrf.mxu1  ;;  %5048 = vmatpush3.bf16.msra.mxu0 %v1462_v1  ;;  %5055 = vmatprep.mubr.msk.bf16.mxu1 %vm6249_vm0, %v6248_v2 }
 0x375   : > { %5059 = vmatprep.subr.bf16.mxu0 %v6248_v2 }
 0x376   : > { %v5040_v4 = vpop.f32.mrf.mxu1 }
 0x3d5   : > { %v1506_v7 = vpop.permute.xlu1 %1505 }
 0x3dd   : > { %v1509_v5 = vpop.permute.xlu0 %1508  ;;  %v1622_v8 = vpop.permute.xlu1 %1621 }
 0x3de   : > { %v1514_v6 = vsel %vm1394_vm4, %v1509_v5, 0  ;;  %v1627_v9 = vsel %vm1394_vm4, %v1622_v8, 0 }
 0x3df   : > { %5054 = vmatpush3.bf16.xpose.msra.mxu1 %v1514_v6 }
 0x3e0   : > { %5065 = vmatprep.subr.bf16.mxu1 %v6248_v2 }
 0x3e1   : > { %v1734_v11 = vpop.permute.xlu1 %1733  ;;  %v1620_v12 = vpop.permute.xlu0 %1619 }
 0x3e2   : > { %v1739_v13 = vsel %vm1394_vm4, %v1734_v11, 0 }
 0x3e5   : > { %v1732_v14 = vpop.permute.xlu0 %1731 }
 0x3e6   : > { %5056 = vmatmul.mubr.msk.bf16.vlgmr.msra.gmra.mxu1 %vm1394_vm4, %v1506_v7 }
 0x3e7   : > { %5066 = vmatpush3.bf16.xpose.msra.mxu1 %v1627_v9  ;;  %5067 = vmatprep.mubr.msk.bf16.mxu1 %vm6249_vm0, %v6248_v2 }
 0x3e8   : > { %5077 = vmatprep.subr.bf16.mxu1 %v6248_v2 }
 0x3ee   : > { %5068 = vmatmul.mubr.msk.bf16.vlgmr.msra.gmra.mxu1 %vm1394_vm4, %v1620_v12 }
 0x3ef   : > { %5078 = vmatpush3.bf16.xpose.msra.mxu1 %v1739_v13  ;;  %5079 = vmatprep.mubr.msk.bf16.mxu1 %vm6249_vm0, %v6248_v2 }
 0x3f0   : > { %5089 = vmatprep.subr.bf16.mxu1 %v6248_v2 }
 0x3f6   : > { %5080 = vmatmul.mubr.msk.bf16.vlgmr.msra.gmra.mxu1 %vm1394_vm4, %v1732_v14 }
 0x3f7   : > { %5093 = vmatprep.mubr.msk.bf16.mxu1 %vm6249_vm0, %v6248_v2 }
 0x433   : > { %v1435_v16 = vpop.f32.mrf.mxu1 }
 0x434   : > { %v1442_v17 = vsel %vm1441_vm6, %v1435_v16, -1e+20 }
 0x435   : > { %v1443_v18 = vmul.f32 0.17677669, %v1442_v17  ;;  %v5045_v19 = vpop.f32.mrf.mxu1 }
 0x437   : > { %v1438_v20 = vpop.f32.mrf.mxu1  ;;  %v1444_v21 = vsel %vm1394_vm4, %v1443_v18, -inf }
 0x438   : > { %1445 = vmax.xlane.f32.xlu1 %v1444_v21 }
 0x439   : > { %v5046_v22 = vpop.f32.mrf.mxu1 }
 0x4a6   : > { %v1550_v23 = vpop.f32.mrf.mxu1 }
 0x4a7   : > { %v1556_v24 = vsel %vm1441_vm6, %v1550_v23, -1e+20 }
 0x4a8   : > { %v1557_v25 = vmul.f32 0.17677669, %v1556_v24  ;;  %v5057_v26 = vpop.f32.mrf.mxu1 }
 0x4aa   : > { %v1553_v27 = vpop.f32.mrf.mxu1  ;;  %v1558_v28 = vsel %vm1394_vm4, %v1557_v25, -inf }
 0x4ab   : > { %1559 = vmax.xlane.f32.xlu0 %v1558_v28 }
 0x4ac   : > { %v5058_v29 = vpop.f32.mrf.mxu1 }
 0x4ae   : > { %v1663_v30 = vpop.f32.mrf.mxu1 }
 0x4af   : > { %v1669_v31 = vsel %vm1441_vm6, %v1663_v30, -1e+20  ;;  %v1258_v30 = vld [vmem:[%s7678_s1 + $0x10] sm:$0xff] }
 0x4b0   : > { %v1670_v32 = vmul.f32 0.17677669, %v1669_v31  ;;  %v5069_v33 = vpop.f32.mrf.mxu1  ;;  %v1259_v31 = vld [vmem:[%s7678_s1 + $0x18] sm:$0xff] }
 0x4b2   : > { %v1666_v34 = vpop.f32.mrf.mxu1  ;;  %v1671_v35 = vsel %vm1394_vm4, %v1670_v32, -inf }
 0x4b3   : > { %1672 = vmax.xlane.f32.xlu0 %v1671_v35 }
 0x4b4   : > { %v5070_v36 = vpop.f32.mrf.mxu1 }
 0x4b6   : > { %v1775_v37 = vpop.f32.mrf.mxu1 }
 0x4b7   : > { %v1781_v39 = vsel %vm1441_vm6, %v1775_v37, -1e+20 }
 0x4b8   : > { %v1782_v40 = vmul.f32 0.17677669, %v1781_v39  ;;  %v5081_v41 = vpop.f32.mrf.mxu1 }
 0x4ba   : > { %v1778_v42 = vpop.f32.mrf.mxu1  ;;  %v1783_v43 = vsel %vm1394_vm4, %v1782_v40, -inf }
 0x4bb   : > { %1784 = vmax.xlane.f32.xlu1 %v1783_v43  ;;  %v1256_v42 = vld [vmem:[%s7678_s1] sm:$0xff]  ;;  %v1257_v43 = vld [vmem:[%s7678_s1 + $0x8] sm:$0xff] }
 0x4bc   : > { %v5082_v44 = vpop.f32.mrf.mxu1 }
 0x4bd   : > { %v1861_v44 = vpack.c.bf16 %v1257_v43, %v1256_v42 }
 0x4c1   : > { %v1446_v45 = vpop.xlane.xlu1 %1445 }
 0x4c2   : > { %v1447_v46 = vsub.f32 %v1443_v18, %v1446_v45 }
 0x4c4   : > { %v1448_v47 = vmul.f32 1.442695, %v1447_v46 }
 0x4c6   : > { %5602 = vpow2.f32 %v1448_v47 }
 0x4d3   : > { %v5603_v48 = vpop.eup %5602 }
 0x4d4   : > { %v1450_v49 = vsel %vm1394_vm4, %v5603_v48, 0.0 }
 0x4d5   : > { %1451 = vadd.xlane.f32.xlu0 %v1450_v49 }
 0x534   : > { %v1560_v50 = vpop.xlane.xlu0 %1559 }
 0x535   : > { %v1561_v51 = vsub.f32 %v1557_v25, %v1560_v50 }
 0x537   : > { %v1562_v52 = vmul.f32 1.442695, %v1561_v51 }
 0x539   : > { %5604 = vpow2.f32 %v1562_v52 }
 0x53c   : > { %v1673_v53 = vpop.xlane.xlu0 %1672 }
 0x53d   : > { %v1674_v54 = vsub.f32 %v1670_v32, %v1673_v53  ;;  %v1862_v32 = vpack.c.bf16 %v1259_v31, %v1258_v30 }
 0x53f   : > { %v1675_v55 = vmul.f32 1.442695, %v1674_v54  ;;  %5090 = vmatpush3.bf16.msra.mxu1 %v1862_v32 }
 0x540   : > { %5091 = vmatprep.subr.bf16.mxu1 %v6248_v2 }
 0x541   : > { %5606 = vpow2.f32 %v1675_v55 }
 0x543   : > { %5092 = vmatpush3.bf16.msra.mxu1 %v1861_v44 }
 0x544   : > { %v1785_v61 = vpop.xlane.xlu1 %1784  ;;  %5105 = vmatprep.subr.bf16.mxu1 %v6248_v2 }
 0x545   : > { %v1786_v62 = vsub.f32 %v1782_v40, %v1785_v61 }
 0x546   : > { %v5605_v56 = vpop.eup %5604 }
 0x547   : > { %v1564_v57 = vsel %vm1394_vm4, %v5605_v56, 0.0  ;;  %v1787_v0 = vmul.f32 1.442695, %v1786_v62 }
 0x548   : > { %1565 = vadd.xlane.f32.xlu1 %v1564_v57 }
 0x54e   : > { %v5607_v58 = vpop.eup %5606 }
 0x54f   : > { %v1677_v59 = vsel %vm1394_vm4, %v5607_v58, 0.0 }
 0x550   : > { %1678 = vadd.xlane.f32.xlu0 %v1677_v59 }
 0x559   : > { %1683 = vrot.lane.b32.xlu1 %v6895_v63, %s7582_s11  ;;  %s7687_s11 = smov 16  }
 0x55e   : > { %v1452_v60 = vpop.xlane.xlu0 %1451 }
 0x55f   : > { %5608 = vrcp.f32 %v1452_v60 }
 0x560   : > { %5610 = vpow2.f32 %v1787_v0 }
 0x566   : > { %1571 = vrot.lane.b32.xlu0 %v6895_v63, %s7584_s3  ;;  %s7686_s3 = smov 8  }
 0x56c   : > { %v5609_v1 = vpop.eup %5608 }
 0x56d   : > { %v1454_v3 = vmul.f32 %v5609_v1, %v5603_v48  ;;  %v5611_v5 = vpop.eup %5610 }
 0x56e   : > { %v1789_v6 = vsel %vm1394_vm4, %v5611_v5, 0.0 }
 0x56f   : > { %v1455_v4 = vpack.c.bf16 %v1454_v3, %v1454_v3 }
 0x571   : > { %5050 = vmatmul.mubr.msk.bf16.vlgmr.msra.gmra.mxu0 %vm1394_vm4, %v1455_v4 }
 0x572   : > { %5061 = vmatprep.mubr.msk.bf16.mxu0 %vm6249_vm0, %v6248_v2 }
 0x57d   : > { %1790 = vadd.xlane.f32.xlu1 %v1789_v6 }
 0x58e   : > { %1795 = vrot.lane.b32.xlu1 %v6895_v63, %s7580_s21  ;;  %s7681_s21 = sld [smem:[#allocation62_spill]] }
 0x5d1   : > { %v1566_v7 = vpop.xlane.xlu1 %1565 }
 0x5d2   : > { %5612 = vrcp.f32 %v1566_v7  ;;  %v1950_v7 = vld [vmem:[%s7681_s21 + $0x18] sm:$0xff] }
 0x5d5   : > { %v1684_v14 = vpop.permute.xlu1 %1683 }
 0x5d6   : > { %v1689_v17 = vsel %vm1460_vm5, %v1684_v14, 0 }
 0x5d9   : > { %v1679_v8 = vpop.xlane.xlu0 %1678 }
 0x5da   : > { %5614 = vrcp.f32 %v1679_v8 }
 0x5dd   : > { %v1572_v9 = vpop.permute.xlu0 %1571 }
 0x5de   : > { %v1577_v11 = vsel %vm1460_vm5, %v1572_v9, 0 }
 0x5df   : > { %v5613_v12 = vpop.eup %5612  ;;  %5060 = vmatpush3.bf16.msra.mxu0 %v1577_v11  ;;  %v1947_v11 = vld [vmem:[%s7681_s21] sm:$0xff] }
 0x5e0   : > { %5071 = vmatprep.subr.bf16.mxu0 %v6248_v2  ;;  %v1568_v13 = vmul.f32 %v5613_v12, %v5605_v56  ;;  %v4735_v56 = vld [vmem:[#allocation10] ss:$0 sm:$0xff]  ;;  %v1948_v12 = vld [vmem:[%s7681_s21 + $0x8] sm:$0xff] }
 0x5e2   : > { %v1569_v16 = vpack.c.bf16 %v1568_v13, %v1568_v13  ;;  %v2007_v13 = vpack.c.bf16 %v1948_v12, %v1947_v11 }
 0x5e4   : > { %5062 = vmatmul.mubr.msk.bf16.vlgmr.msra.gmra.mxu0 %vm1394_vm4, %v1569_v16  ;;  %v1945_v16 = vld [vmem:[%s7682_s23 + $0x10] sm:$0xff] }
 0x5e5   : > { %5072 = vmatpush3.bf16.msra.mxu0 %v1689_v17  ;;  %5073 = vmatprep.mubr.msk.bf16.mxu0 %vm6249_vm0, %v6248_v2  ;;  %v1946_v17 = vld [vmem:[%s7682_s23 + $0x18] sm:$0xff] }
 0x5e6   : > { %5083 = vmatprep.subr.bf16.mxu0 %v6248_v2 }
 0x5e7   : > { %v5615_v63 = vpop.eup %5614 }
 0x5e8   : > { %v1681_v18 = vmul.f32 %v5615_v63, %v5607_v58  ;;  %v1962_v63 = vpack.c.bf16 %v1946_v17, %v1945_v16 }
 0x5ea   : > { %v1682_v19 = vpack.c.bf16 %v1681_v18, %v1681_v18  ;;  %v1943_v18 = vld [vmem:[%s7682_s23] sm:$0xff] }
 0x5ec   : > { %5074 = vmatmul.mubr.msk.bf16.vlgmr.msra.gmra.mxu0 %vm1394_vm4, %v1682_v19  ;;  %v1944_v19 = vld [vmem:[%s7682_s23 + $0x8] sm:$0xff] }
 0x5ed   : > { %5085 = vmatprep.mubr.msk.bf16.mxu0 %vm6249_vm0, %v6248_v2 }
 0x606   : > { %v1791_v20 = vpop.xlane.xlu1 %1790 }
 0x607   : > { %5616 = vrcp.f32 %v1791_v20  ;;  %v1961_v20 = vpack.c.bf16 %v1944_v19, %v1943_v18 }
 0x60a   : > { %v1796_v21 = vpop.permute.xlu1 %1795 }
 0x60b   : > { %v1801_v22 = vsel %vm1460_vm5, %v1796_v21, 0 }
 0x60c   : > { %5084 = vmatpush3.bf16.msra.mxu0 %v1801_v22 }
 0x60d   : > { %5097 = vmatprep.subr.bf16.mxu0 %v6248_v2 }
 0x614   : > { %v5617_v23 = vpop.eup %5616 }
 0x615   : > { %v1793_v24 = vmul.f32 %v5617_v23, %v5611_v5 }
 0x617   : > { %v1794_v25 = vpack.c.bf16 %v1793_v24, %v1793_v24 }
 0x619   : > { %5086 = vmatmul.mubr.msk.bf16.vlgmr.msra.gmra.mxu0 %vm1394_vm4, %v1794_v25  ;;  %v4737_v25 = vld [vmem:[#allocation11] ss:$0 sm:$0xff] }
 0x61a   : > { %5101 = vmatprep.mubr.msk.bf16.mxu0 %vm6249_vm0, %v6248_v2  ;;  %5098 = vmatpush3.bf16.msra.mxu0 %v1962_v63 }
 0x61b   : > { %5099 = vmatprep.subr.bf16.mxu0 %v6248_v2 }
 0x61e   : > { %5100 = vmatpush3.bf16.msra.mxu0 %v1961_v20 }
 0x61f   : > { %5113 = vmatprep.subr.bf16.mxu0 %v6248_v2 }
 0x631   : > { %v1498_v26 = vpop.f32.mrf.mxu0 }
 0x633   : > { %v5051_v27 = vpop.f32.mrf.mxu0 }
 0x634   : > { %v4738_v27 = vld [vmem:[#allocation13] ss:$0 sm:$0xff] }
 0x635   : > { %v1501_v28 = vpop.f32.mrf.mxu0 }
 0x637   : > { %v5052_v29 = vpop.f32.mrf.mxu0 }
 0x6a4   : > { %v1613_v33 = vpop.f32.mrf.mxu0 }
 0x6a5   : > { %1844 = vrot.lane.b32.xlu0 %v1613_v33, %s7578_s19 }
 0x6a6   : > { %v5063_v34 = vpop.f32.mrf.mxu0 }
 0x6a8   : > { %v1616_v35 = vpop.f32.mrf.mxu0 }
 0x6aa   : > { %v5064_v36 = vpop.f32.mrf.mxu0 }
 0x6ac   : > { %v1725_v37 = vpop.f32.mrf.mxu0 }
 0x6ad   : > { %1848 = vrot.lane.b32.xlu1 %v1725_v37, %s7576_s6  ;;  %s6130_s6 = scalar_lea.vmem %s6129_s10, 256 }
 0x6ae   : > { %v5075_v39 = vpop.f32.mrf.mxu0 }
 0x6b0   : > { %v1728_v40 = vpop.f32.mrf.mxu0 }
 0x6b2   : > { %v5076_v41 = vpop.f32.mrf.mxu0 }
 0x6d9   : > { %v1837_v45 = vpop.f32.mrf.mxu0 }
 0x6da   : > { %1852 = vrot.lane.b32.xlu0 %v1837_v45, %s7574_s16  ;;  %s1143_s16 = scalar_lea.vmem %s7680_s2, %s7679_s7  ;;  %s7683_s2 = smov 120   ;;  %v1953_v45 = vld [vmem:[#allocation14 + $0x10] sm:$0xff] }
 0x6db   : > { %v5087_v46 = vpop.f32.mrf.mxu0  ;;  %v1241_v9 = vld [vmem:[%s1143_s16] sm:$0xff]  ;;  %s7689_s16 = sld [smem:[#allocation70_spill]] }
 0x6dc   : > { %v7007_v14 = vpack.c.bf16 %v1241_v9, %v1241_v9  ;;  %v1954_v46 = vld [vmem:[#allocation14 + $0x18] sm:$0xff] }
 0x6dd   : > { %v1840_v47 = vpop.f32.mrf.mxu0 }
 0x6de   : > { %v1951_v47 = vld [vmem:[#allocation14] sm:$0xff] }
 0x6df   : > { %v5088_v48 = vpop.f32.mrf.mxu0 }
 0x6e0   : > { %v2053_v48 = vpack.c.bf16 %v1954_v46, %v1953_v45 }
 0x717   : > { %v1845_v49 = vpop.permute.xlu0 %1844 }
 0x718   : > { %v1855_v51 = vsel %vm1394_vm4, %v1498_v26, %v1845_v49  ;;  %v1952_v49 = vld [vmem:[#allocation14 + $0x8] sm:$0xff] }
 0x71f   : > { %v1849_v50 = vpop.permute.xlu1 %1848 }
 0x720   : > { %v1857_v52 = vsel %vm1856_vm7, %v1855_v51, %v1849_v50  ;;  %v2052_v50 = vpack.c.bf16 %v1952_v49, %v1951_v47 }
 0x74c   : > { %v1853_v53 = vpop.permute.xlu0 %1852 }
 0x74d   : > { %v1859_v54 = vsel %vm1858_vm8, %v1857_v52, %v1853_v53 }
 0x74e   : > { %v1860_v55 = vpack.c.bf16 %v1859_v54, %v1859_v54 }
 0x750   : > { %5094 = vmatmul.mubr.msk.bf16.vlgmr.msra.gmra.mxu1 %vm1264_vm3, %v1860_v55 }
 0x751   : > { %5109 = vmatprep.mubr.msk.bf16.mxu1 %vm6249_vm0, %v6248_v2 }
 0x810   : > { %v1906_v57 = vpop.f32.mrf.mxu1 }
 0x811   : > { %v1907_v58 = vadd.f32 %v4735_v56, %v1906_v57 }
 0x812   : > { %v5095_v59 = vpop.f32.mrf.mxu1 }
 0x813   : > { %v1914_v60 = vadd.f32 %v1907_v58, %v6853_v38  ;;  %v1949_v38 = vld [vmem:[%s7681_s21 + $0x10] sm:$0xff] }
 0x814   : > { %v1909_v61 = vpop.f32.mrf.mxu1  ;;  %v2008_v8 = vpack.c.bf16 %v1950_v7, %v1949_v38 }
 0x815   : > { %v1915_v62 = vsel %vm1264_vm3, %v1914_v60, 0.0 }
 0x816   : > { %1916 = vadd.xlane.f32.xlu1 %v1915_v62  ;;  %v5096_v0 = vpop.f32.mrf.mxu1  ;;  %5106 = vmatpush3.bf16.msra.mxu1 %v2008_v8 }
 0x817   : > { %5107 = vmatprep.subr.bf16.mxu1 %v6248_v2 }
 0x81a   : > { %5108 = vmatpush3.bf16.msra.mxu1 %v2007_v13 }
 0x81b   : > { %5121 = vmatprep.subr.bf16.mxu1 %v6248_v2 }
 0x81d   : > { %5110 = vmatmul.mubr.msk.bf16.vlgmr.msra.gmra.mxu1 %vm1264_vm3, %v7007_v14 }
 0x81e   : > { %5123 = vmatprep.mubr.msk.bf16.mxu1 %vm6249_vm0, %v6248_v2 }
 0x89f   : > { %v1917_v1 = vpop.xlane.xlu1 %1916 }
 0x8a0   : > { %v1919_v3 = vmul.f32 0.03125, %v1917_v1 }
 0x8a2   : > { %v1920_v4 = vsub.f32 %v1914_v60, %v1919_v3 }
 0x8a4   : > { %v1921_v5 = vmul.f32 %v1920_v4, %v1920_v4 }
 0x8a6   : > { %v1922_v6 = vsel %vm1264_vm3, %v1921_v5, 0.0 }
 0x8a7   : > { %1923 = vadd.xlane.f32.xlu0 %v1922_v6 }
 0x8dd   : > { %v2046_v31 = vpop.f32.mrf.mxu1 }
 0x8de   : > { %v2095_v32 = vpack.c.bf16 %v2046_v31, %v2046_v31 }
 0x8df   : > { %v5111_v33 = vpop.f32.mrf.mxu1 }
 0x8e0   : > { %2214 = vrot.lane.b32.xlu0 %v2095_v32, %s7683_s2  ;;  %v2100_v34 = vsel %vm1394_vm4, %v2095_v32, 0 }
 0x8e1   : > { %v2049_v35 = vpop.f32.mrf.mxu1  ;;  %5122 = vmatpush3.bf16.xpose.msra.mxu1 %v2100_v34 }
 0x8e2   : > { %5133 = vmatprep.subr.bf16.mxu1 %v6248_v2 }
 0x8e3   : > { %v5112_v36 = vpop.f32.mrf.mxu1 }
 0x930   : > { %v1924_v21 = vpop.xlane.xlu0 %1923 }
 0x931   : > { %v1925_v22 = vmul.f32 0.03125, %v1924_v21 }
 0x933   : > { %v1926_v23 = vadd.f32 1e-05, %v1925_v22 }
 0x935   : > { %5618 = vrsqrt.f32 %v1926_v23 }
 0x942   : > { %v5619_v24 = vpop.eup %5618 }
 0x943   : > { %v1928_v26 = vmul.f32 %v5619_v24, %v1920_v4 }
 0x945   : > { %v1935_v28 = vmul.f32 %v4737_v25, %v1928_v26 }
 0x947   : > { %v7028_v29 = vadd.f32 %v4738_v27, %v1935_v28 }
 0x949   : > { %v1960_v30 = vpack.c.bf16 %v7028_v29, %v7028_v29 }
 0x94b   : > { %5102 = vmatmul.mubr.msk.bf16.vlgmr.msra.gmra.mxu0 %vm1264_vm3, %v1960_v30 }
 0x94c   : > { %5117 = vmatprep.mubr.msk.bf16.mxu0 %vm6249_vm0, %v6248_v2  ;;  %5114 = vmatpush3.bf16.msra.mxu0 %v2053_v48 }
 0x94d   : > { %5115 = vmatprep.subr.bf16.mxu0 %v6248_v2 }
 0x950   : > { %5116 = vmatpush3.bf16.msra.mxu0 %v2052_v50 }
 0x951   : > { %5127 = vmatprep.subr.bf16.mxu0 %v6248_v2 }
 0x952   : > { %v2215_v37 = vpop.permute.xlu0 %2214 }
 0x953   : > { %v2220_v42 = vsel %vm1394_vm4, %v2215_v37, 0  ;;  %5118 = vmatmul.mubr.msk.bf16.vlgmr.msra.gmra.mxu0 %vm1264_vm3, %v7007_v14 }
 0x954   : > { %5129 = vmatprep.mubr.msk.bf16.mxu0 %vm6249_vm0, %v6248_v2 }
 0xa0b   : > { %v2000_v39 = vpop.f32.mrf.mxu0 }
 0xa0c   : > { %v2094_v40 = vpack.c.bf16 %v2000_v39, %v2000_v39 }
 0xa0d   : > { %v5103_v41 = vpop.f32.mrf.mxu0 }
 0xa0e   : > { %2325 = vrot.lane.b32.xlu0 %v2094_v40, %s7684_s15  ;;  %2211 = vrot.lane.b32.xlu1 %v2094_v40, %s7683_s2 }
 0xa0f   : > { %5124 = vmatmul.mubr.msk.bf16.vlgmr.msra.gmra.mxu1 %vm1394_vm4, %v2094_v40  ;;  %v2003_v43 = vpop.f32.mrf.mxu0 }
 0xa10   : > { %5134 = vmatpush3.bf16.xpose.msra.mxu1 %v2220_v42  ;;  %5135 = vmatprep.mubr.msk.bf16.mxu1 %vm6249_vm0, %v6248_v2 }
 0xa11   : > { %v5104_v44 = vpop.f32.mrf.mxu0  ;;  %5145 = vmatprep.subr.bf16.mxu1 %v6248_v2 }
 0xa12   : > { %2437 = vrot.lane.b32.xlu0 %v2094_v40, %s7685_s17  ;;  %2327 = vrot.lane.b32.xlu1 %v2095_v32, %s7684_s15 }
 0xa13   : > { %v2088_v28 = vpop.f32.mrf.mxu0 }
 0xa14   : > { %v2163_v35 = vpack.c.bf16 %v2088_v28, %v2088_v28 }
 0xa15   : > { %v5119_v30 = vpop.f32.mrf.mxu0 }
 0xa16   : > { %2439 = vrot.lane.b32.xlu1 %v2095_v32, %s7685_s17  ;;  %v2168_v36 = vsel %vm1460_vm5, %v2163_v35, 0  ;;  %v1955_v30 = vld [vmem:[#allocation16] sm:$0xff] }
 0xa17   : > { %v2091_v31 = vpop.f32.mrf.mxu0  ;;  %5128 = vmatpush3.bf16.msra.mxu0 %v2168_v36 }
 0xa18   : > { %5139 = vmatprep.subr.bf16.mxu0 %v6248_v2  ;;  %v1956_v31 = vld [vmem:[#allocation16 + $0x8] sm:$0xff] }
 0xa19   : > { %v5120_v32 = vpop.f32.mrf.mxu0 }
 0xa1a   : > { %v2565_v32 = vpack.c.bf16 %v1956_v31, %v1955_v30 }
 0xa80   : > { %v2212_v51 = vpop.permute.xlu1 %2211  ;;  %v2326_v55 = vpop.permute.xlu0 %2325 }
 0xa81   : > { %5136 = vmatmul.mubr.msk.bf16.vlgmr.msra.gmra.mxu1 %vm1394_vm4, %v2212_v51 }
 0xa82   : > { %5147 = vmatprep.mubr.msk.bf16.mxu1 %vm6249_vm0, %v6248_v2 }
 0xa84   : > { %v2328_v52 = vpop.permute.xlu1 %2327  ;;  %v2438_v57 = vpop.permute.xlu0 %2437 }
 0xa85   : > { %v2333_v53 = vsel %vm1394_vm4, %v2328_v52, 0 }
 0xa86   : > { %5146 = vmatpush3.bf16.xpose.msra.mxu1 %v2333_v53 }
 0xa87   : > { %5157 = vmatprep.subr.bf16.mxu1 %v6248_v2 }
 0xa88   : > { %v2440_v54 = vpop.permute.xlu1 %2439 }
 0xa89   : > { %v2445_v56 = vsel %vm1394_vm4, %v2440_v54, 0 }
 0xa8d   : > { %5148 = vmatmul.mubr.msk.bf16.vlgmr.msra.gmra.mxu1 %vm1394_vm4, %v2326_v55 }
 0xa8e   : > { %5158 = vmatpush3.bf16.xpose.msra.mxu1 %v2445_v56  ;;  %5159 = vmatprep.mubr.msk.bf16.mxu1 %vm6249_vm0, %v6248_v2 }
 0xa8f   : > { %5169 = vmatprep.subr.bf16.mxu1 %v6248_v2 }
 0xa95   : > { %5160 = vmatmul.mubr.msk.bf16.vlgmr.msra.gmra.mxu1 %vm1394_vm4, %v2438_v57 }
 0xa96   : > { %5173 = vmatprep.mubr.msk.bf16.mxu1 %vm6249_vm0, %v6248_v2 }
 0xacf   : > { %v2136_v58 = vpop.f32.mrf.mxu1 }
 0xad0   : > { %v2149_v59 = vsel %vm2148_vm9, %v2136_v58, -1e+20 }
 0xad1   : > { %v2150_v60 = vmul.f32 0.17677669, %v2149_v59  ;;  %v5125_v61 = vpop.f32.mrf.mxu1 }
 0xad3   : > { %v2139_v62 = vpop.f32.mrf.mxu1  ;;  %v2151_v0 = vsel %vm1394_vm4, %v2150_v60, -inf }
 0xad4   : > { %2152 = vmax.xlane.f32.xlu1 %v2151_v0 }
 0xad5   : > { %v5126_v1 = vpop.f32.mrf.mxu1 }
 0xb41   : > { %v2256_v3 = vpop.f32.mrf.mxu1 }
 0xb42   : > { %v2262_v4 = vsel %vm2148_vm9, %v2256_v3, -1e+20 }
 0xb43   : > { %v2263_v5 = vmul.f32 0.17677669, %v2262_v4  ;;  %v5137_v6 = vpop.f32.mrf.mxu1 }
 0xb45   : > { %v2259_v38 = vpop.f32.mrf.mxu1  ;;  %v2264_v7 = vsel %vm1394_vm4, %v2263_v5, -inf }
 0xb46   : > { %2265 = vmax.xlane.f32.xlu0 %v2264_v7 }
 0xb47   : > { %v5138_v8 = vpop.f32.mrf.mxu1 }
 0xb4d   : > { %v2369_v9 = vpop.f32.mrf.mxu1 }
 0xb4e   : > { %v2375_v11 = vsel %vm2148_vm9, %v2369_v9, -1e+20 }
 0xb4f   : > { %v2376_v12 = vmul.f32 0.17677669, %v2375_v11  ;;  %v5149_v13 = vpop.f32.mrf.mxu1 }
 0xb51   : > { %v2372_v16 = vpop.f32.mrf.mxu1  ;;  %v2377_v17 = vsel %vm1394_vm4, %v2376_v12, -inf }
 0xb52   : > { %2378 = vmax.xlane.f32.xlu0 %v2377_v17 }
 0xb53   : > { %v5150_v63 = vpop.f32.mrf.mxu1 }
 0xb55   : > { %v2481_v18 = vpop.f32.mrf.mxu1 }
 0xb56   : > { %v2487_v19 = vsel %vm2148_vm9, %v2481_v18, -1e+20  ;;  %v1957_v18 = vld [vmem:[#allocation16 + $0x10] sm:$0xff] }
 0xb57   : > { %v2488_v20 = vmul.f32 0.17677669, %v2487_v19  ;;  %v5161_v21 = vpop.f32.mrf.mxu1  ;;  %v1958_v19 = vld [vmem:[#allocation16 + $0x18] sm:$0xff] }
 0xb59   : > { %v2484_v22 = vpop.f32.mrf.mxu1  ;;  %v2489_v23 = vsel %vm1394_vm4, %v2488_v20, -inf }
 0xb5a   : > { %2490 = vmax.xlane.f32.xlu1 %v2489_v23 }
 0xb5b   : > { %v5162_v24 = vpop.f32.mrf.mxu1 }
 0xb5d   : > { %v2153_v25 = vpop.xlane.xlu1 %2152 }
 0xb5e   : > { %v2154_v26 = vsub.f32 %v2150_v60, %v2153_v25 }
 0xb60   : > { %v2155_v27 = vmul.f32 1.442695, %v2154_v26 }
 0xb62   : > { %5620 = vpow2.f32 %v2155_v27 }
 0xb6f   : > { %v5621_v33 = vpop.eup %5620 }
 0xb70   : > { %v2157_v34 = vsel %vm1394_vm4, %v5621_v33, 0.0 }
 0xb71   : > { %2158 = vadd.xlane.f32.xlu0 %v2157_v34 }
 0xbcf   : > { %v2266_v37 = vpop.xlane.xlu0 %2265 }
 0xbd0   : > { %v2267_v39 = vsub.f32 %v2263_v5, %v2266_v37 }
 0xbd2   : > { %v2268_v40 = vmul.f32 1.442695, %v2267_v39 }
 0xbd4   : > { %5622 = vpow2.f32 %v2268_v40 }
 0xbdb   : > { %v2379_v41 = vpop.xlane.xlu0 %2378 }
 0xbdc   : > { %v2380_v42 = vsub.f32 %v2376_v12, %v2379_v41 }
 0xbde   : > { %v2381_v43 = vmul.f32 1.442695, %v2380_v42 }
 0xbe0   : > { %5624 = vpow2.f32 %v2381_v43 }
 0xbe1   : > { %v5623_v44 = vpop.eup %5622 }
 0xbe2   : > { %v2270_v45 = vsel %vm1394_vm4, %v5623_v44, 0.0 }
 0xbe3   : > { %2271 = vadd.xlane.f32.xlu1 %v2270_v45  ;;  %v2491_v49 = vpop.xlane.xlu1 %2490  ;;  %v4750_v45 = vld [vmem:[#allocation17] ss:$0 sm:$0xff] }
 0xbe4   : > { %v2492_v50 = vsub.f32 %v2488_v20, %v2491_v49  ;;  %v2566_v20 = vpack.c.bf16 %v1958_v19, %v1957_v18  ;;  %v2706_v18 = vld [vmem:[%s7689_s16 + $0x10] sm:$0xff]  ;;  %v2707_v19 = vld [vmem:[%s7689_s16 + $0x18] sm:$0xff] }
 0xbe6   : > { %v2493_v51 = vmul.f32 1.442695, %v2492_v50  ;;  %5170 = vmatpush3.bf16.msra.mxu1 %v2566_v20  ;;  %v2714_v20 = vpack.c.bf16 %v2707_v19, %v2706_v18 }
 0xbe7   : > { %5171 = vmatprep.subr.bf16.mxu1 %v6248_v2 }
 0xbea   : > { %5172 = vmatpush3.bf16.msra.mxu1 %v2565_v32 }
 0xbeb   : > { %5185 = vmatprep.subr.bf16.mxu1 %v6248_v2 }
 0xbed   : > { %v5625_v46 = vpop.eup %5624 }
 0xbee   : > { %v2383_v47 = vsel %vm1394_vm4, %v5625_v46, 0.0 }
 0xbef   : > { %2384 = vadd.xlane.f32.xlu0 %v2383_v47 }
 0xbf4   : > { %2389 = vrot.lane.b32.xlu1 %v2163_v35, %s7684_s15 }
 0xbfa   : > { %v2159_v48 = vpop.xlane.xlu0 %2158 }
 0xbfb   : > { %5626 = vrcp.f32 %v2159_v48 }
 0xbfc   : > { %5628 = vpow2.f32 %v2493_v51 }
 0xc05   : > { %2277 = vrot.lane.b32.xlu0 %v2163_v35, %s7683_s2 }
 0xc08   : > { %v5627_v52 = vpop.eup %5626 }
 0xc09   : > { %v2161_v53 = vmul.f32 %v5627_v52, %v5621_v33  ;;  %v5629_v55 = vpop.eup %5628 }
 0xc0a   : > { %v2495_v56 = vsel %vm1394_vm4, %v5629_v55, 0.0 }
 0xc0b   : > { %v2162_v54 = vpack.c.bf16 %v2161_v53, %v2161_v53 }
 0xc0d   : > { %5130 = vmatmul.mubr.msk.bf16.vlgmr.msra.gmra.mxu0 %vm1394_vm4, %v2162_v54 }
 0xc0e   : > { %5141 = vmatprep.mubr.msk.bf16.mxu0 %vm6249_vm0, %v6248_v2 }
 0xc18   : > { %2496 = vadd.xlane.f32.xlu1 %v2495_v56 }
 0xc29   : > { %2501 = vrot.lane.b32.xlu1 %v2163_v35, %s7685_s17 }
 0xc6c   : > { %v2272_v57 = vpop.xlane.xlu1 %2271 }
 0xc6d   : > { %5630 = vrcp.f32 %v2272_v57 }
 0xc70   : > { %v2390_v0 = vpop.permute.xlu1 %2389 }
 0xc71   : > { %v2395_v3 = vsel %vm1460_vm5, %v2390_v0, 0 }
 0xc78   : > { %v2385_v58 = vpop.xlane.xlu0 %2384 }
 0xc79   : > { %5632 = vrcp.f32 %v2385_v58  ;;  %v2648_v58 = vld [vmem:[#allocation22 + $0x10] sm:$0xff] }
 0xc7a   : > { %v5631_v59 = vpop.eup %5630 }
 0xc7b   : > { %v2274_v60 = vmul.f32 %v5631_v59, %v5623_v44  ;;  %v2649_v59 = vld [vmem:[#allocation22 + $0x18] sm:$0xff] }
 0xc7c   : > { %v2278_v61 = vpop.permute.xlu0 %2277 }
 0xc7d   : > { %v2283_v62 = vsel %vm1460_vm5, %v2278_v61, 0  ;;  %v2275_v1 = vpack.c.bf16 %v2274_v60, %v2274_v60  ;;  %v2652_v60 = vpack.c.bf16 %v2649_v59, %v2648_v58  ;;  %v2646_v61 = vld [vmem:[#allocation22] sm:$0xff] }
 0xc7e   : > { %5140 = vmatpush3.bf16.msra.mxu0 %v2283_v62  ;;  %v2647_v62 = vld [vmem:[#allocation22 + $0x8] sm:$0xff] }
 0xc7f   : > { %5151 = vmatprep.subr.bf16.mxu0 %v6248_v2  ;;  %v2651_v0 = vpack.c.bf16 %v2647_v62, %v2646_v61 }
 0xc81   : > { %5142 = vmatmul.mubr.msk.bf16.vlgmr.msra.gmra.mxu0 %vm1394_vm4, %v2275_v1  ;;  %v2711_v1 = vld [vmem:[%s7689_s16 + $0x38] sm:$0xff] }
 0xc82   : > { %5152 = vmatpush3.bf16.msra.mxu0 %v2395_v3  ;;  %5153 = vmatprep.mubr.msk.bf16.mxu0 %vm6249_vm0, %v6248_v2  ;;  %v2708_v3 = vld [vmem:[%s7689_s16 + $0x20] sm:$0xff] }
 0xc83   : > { %5163 = vmatprep.subr.bf16.mxu0 %v6248_v2 }
 0xc86   : > { %v5633_v4 = vpop.eup %5632 }
 0xc87   : > { %v2387_v5 = vmul.f32 %v5633_v4, %v5625_v46 }
 0xc89   : > { %v2388_v6 = vpack.c.bf16 %v2387_v5, %v2387_v5  ;;  %v2709_v5 = vld [vmem:[%s7689_s16 + $0x28] sm:$0xff] }
 0xc8b   : > { %5154 = vmatmul.mubr.msk.bf16.vlgmr.msra.gmra.mxu0 %vm1394_vm4, %v2388_v6  ;;  %v2715_v6 = vpack.c.bf16 %v2709_v5, %v2708_v3  ;;  %v4767_v5 = vld [vmem:[%s7676_s18 + $0x38] sm:$0xff] }
 0xc8c   : > { %5165 = vmatprep.mubr.msk.bf16.mxu0 %vm6249_vm0, %v6248_v2 }
 0xca1   : > { %v2497_v38 = vpop.xlane.xlu1 %2496 }
 0xca2   : > { %5634 = vrcp.f32 %v2497_v38 }
 0xca5   : > { %v2502_v7 = vpop.permute.xlu1 %2501 }
 0xca6   : > { %v2507_v8 = vsel %vm1460_vm5, %v2502_v7, 0 }
 0xca7   : > { %5164 = vmatpush3.bf16.msra.mxu0 %v2507_v8 }
 0xca8   : > { %5177 = vmatprep.subr.bf16.mxu0 %v6248_v2 }
 0xcaf   : > { %v5635_v9 = vpop.eup %5634 }
 0xcb0   : > { %v2499_v11 = vmul.f32 %v5635_v9, %v5629_v55 }
 0xcb2   : > { %v2500_v12 = vpack.c.bf16 %v2499_v11, %v2499_v11  ;;  %v4752_v11 = vld [vmem:[#allocation19] ss:$0 sm:$0xff] }
 0xcb4   : > { %5166 = vmatmul.mubr.msk.bf16.vlgmr.msra.gmra.mxu0 %vm1394_vm4, %v2500_v12 }
 0xcb5   : > { %5181 = vmatprep.mubr.msk.bf16.mxu0 %vm6249_vm0, %v6248_v2  ;;  %5178 = vmatpush3.bf16.msra.mxu0 %v2652_v60 }
 0xcb6   : > { %5179 = vmatprep.subr.bf16.mxu0 %v6248_v2 }
 0xcb9   : > { %5180 = vmatpush3.bf16.msra.mxu0 %v2651_v0  ;;  %v4758_v0 = vld [vmem:[#allocation26] ss:$0 sm:$0xff] }
 0xcba   : > { %5197 = vmatprep.subr.bf16.mxu0 %v6248_v2 }
 0xccd   : > { %v2204_v13 = vpop.f32.mrf.mxu0 }
 0xccf   : > { %v5131_v16 = vpop.f32.mrf.mxu0 }
 0xcd1   : > { %v2207_v17 = vpop.f32.mrf.mxu0 }
 0xcd3   : > { %v5132_v63 = vpop.f32.mrf.mxu0 }
 0xd41   : > { %v2319_v21 = vpop.f32.mrf.mxu0 }
 0xd42   : > { %2550 = vrot.lane.b32.xlu0 %v2319_v21, %s7686_s3  ;;  %v2704_v21 = vld [vmem:[%s7689_s16] sm:$0xff] }
 0xd43   : > { %v5143_v22 = vpop.f32.mrf.mxu0 }
 0xd44   : > { %v2705_v22 = vld [vmem:[%s7689_s16 + $0x8] sm:$0xff] }
 0xd45   : > { %v2322_v23 = vpop.f32.mrf.mxu0 }
 0xd46   : > { %v2713_v23 = vpack.c.bf16 %v2705_v22, %v2704_v21 }
 0xd47   : > { %v5144_v24 = vpop.f32.mrf.mxu0 }
 0xd48   : > { %v4754_v24 = vld [vmem:[#allocation23] ss:$0 sm:$0xff] }
 0xd4b   : > { %v2431_v25 = vpop.f32.mrf.mxu0 }
 0xd4c   : > { %2554 = vrot.lane.b32.xlu1 %v2431_v25, %s7687_s11 }
 0xd4d   : > { %v5155_v26 = vpop.f32.mrf.mxu0 }
 0xd4f   : > { %v2434_v27 = vpop.f32.mrf.mxu0 }
 0xd51   : > { %v5156_v28 = vpop.f32.mrf.mxu0 }
 0xd74   : > { %v2543_v33 = vpop.f32.mrf.mxu0 }
 0xd75   : > { %2558 = vrot.lane.b32.xlu0 %v2543_v33, %s7688_s24  ;;  %v4756_v33 = vld [vmem:[#allocation25] ss:$0 sm:$0xff] }
 0xd76   : > { %v5167_v34 = vpop.f32.mrf.mxu0 }
 0xd78   : > { %v2546_v35 = vpop.f32.mrf.mxu0 }
 0xd7a   : > { %v5168_v36 = vpop.f32.mrf.mxu0 }
 0xdb4   : > { %v2551_v37 = vpop.permute.xlu0 %2550 }
 0xdb5   : > { %v2561_v40 = vsel %vm1394_vm4, %v2204_v13, %v2551_v37  ;;  %v4753_v13 = vld [vmem:[#allocation20] ss:$0 sm:$0xff] }
 0xdbe   : > { %v2555_v39 = vpop.permute.xlu1 %2554 }
 0xdbf   : > { %v2562_v41 = vsel %vm1856_vm7, %v2561_v40, %v2555_v39 }
 0xde7   : > { %v2559_v42 = vpop.permute.xlu0 %2558 }
 0xde8   : > { %v2563_v43 = vsel %vm1858_vm8, %v2562_v41, %v2559_v42 }
 0xde9   : > { %v2564_v44 = vpack.c.bf16 %v2563_v43, %v2563_v43 }
 0xdeb   : > { %5174 = vmatmul.mubr.msk.bf16.vlgmr.msra.gmra.mxu1 %vm1264_vm3, %v2564_v44 }
 0xdec   : > { %5193 = vmatprep.mubr.msk.bf16.mxu1 %vm6249_vm0, %v6248_v2 }
 0xeab   : > { %v2610_v46 = vpop.f32.mrf.mxu1 }
 0xeac   : > { %v2611_v47 = vadd.f32 %v4750_v45, %v2610_v46 }
 0xead   : > { %v5175_v48 = vpop.f32.mrf.mxu1 }
 0xeae   : > { %v2618_v49 = vadd.f32 %v2611_v47, %v7028_v29  ;;  %v2710_v29 = vld [vmem:[%s7689_s16 + $0x30] sm:$0xff]  ;;  %v4763_v48 = vld [vmem:[%s7674_s20 + $0x38] sm:$0xff] }
 0xeaf   : > { %v2613_v50 = vpop.f32.mrf.mxu1  ;;  %v2716_v4 = vpack.c.bf16 %v2711_v1, %v2710_v29  ;;  %v4762_v47 = vld [vmem:[%s7674_s20 + $0x30] sm:$0xff]  ;;  %v4759_v1 = vld [vmem:[#allocation28] ss:$0 sm:$0xff] }
 0xeb0   : > { %v2619_v51 = vsel %vm1264_vm3, %v2618_v49, 0.0  ;;  %v2822_v50 = vpack.c.bf16 %v4763_v48, %v4762_v47 }
 0xeb1   : > { %2620 = vadd.xlane.f32.xlu1 %v2619_v51  ;;  %v5176_v52 = vpop.f32.mrf.mxu1  ;;  %5186 = vmatpush3.bf16.msra.mxu1 %v2716_v4  ;;  %v4771_v51 = vld [vmem:[%s7677_s13 + $0x38] sm:$0xff]  ;;  %v4766_v4 = vld [vmem:[%s7676_s18 + $0x30] sm:$0xff] }
 0xeb2   : > { %5187 = vmatprep.subr.bf16.mxu1 %v6248_v2  ;;  %v4760_v52 = vld [vmem:[%s7674_s20 + $0x20] sm:$0xff] }
 0xeb5   : > { %5188 = vmatpush3.bf16.msra.mxu1 %v2715_v6 }
 0xeb6   : > { %5189 = vmatprep.subr.bf16.mxu1 %v6248_v2 }
 0xeb9   : > { %5190 = vmatpush3.bf16.msra.mxu1 %v2714_v20 }
 0xeba   : > { %5191 = vmatprep.subr.bf16.mxu1 %v6248_v2 }
 0xebd   : > { %5192 = vmatpush3.bf16.msra.mxu1 %v2713_v23 }
 0xebe   : > { %5213 = vmatprep.subr.bf16.mxu1 %v6248_v2 }
 0xf3a   : > { %v2621_v53 = vpop.xlane.xlu1 %2620 }
 0xf3b   : > { %v2622_v54 = vmul.f32 0.03125, %v2621_v53  ;;  %v4761_v53 = vld [vmem:[%s7674_s20 + $0x28] sm:$0xff] }
 0xf3d   : > { %v2623_v55 = vsub.f32 %v2618_v49, %v2622_v54  ;;  %v4770_v49 = vld [vmem:[%s7677_s13 + $0x30] sm:$0xff] }
 0xf3e   : > { %v2909_v54 = vpack.c.bf16 %v4771_v51, %v4770_v49 }
 0xf3f   : > { %v2624_v56 = vmul.f32 %v2623_v55, %v2623_v55 }
 0xf41   : > { %v2625_v57 = vsel %vm1264_vm3, %v2624_v56, 0.0  ;;  %v4769_v56 = vld [vmem:[%s7677_s13 + $0x28] sm:$0xff] }
 0xf42   : > { %2626 = vadd.xlane.f32.xlu0 %v2625_v57  ;;  %v2821_v57 = vpack.c.bf16 %v4761_v53, %v4760_v52 }
 0xfcb   : > { %v2627_v38 = vpop.xlane.xlu0 %2626 }
 0xfcc   : > { %v2628_v7 = vmul.f32 0.03125, %v2627_v38  ;;  %v2867_v38 = vpack.c.bf16 %v4767_v5, %v4766_v4 }
 0xfce   : > { %v2629_v8 = vadd.f32 1e-05, %v2628_v7 }
 0xfd0   : > { %5636 = vrsqrt.f32 %v2629_v8  ;;  %v4764_v8 = vld [vmem:[%s7676_s18 + $0x20] sm:$0xff] }
 0xfdd   : > { %v5637_v9 = vpop.eup %5636 }
 0xfde   : > { %v2631_v12 = vmul.f32 %v5637_v9, %v2623_v55  ;;  %v4768_v55 = vld [vmem:[%s7677_s13 + $0x20] sm:$0xff]  ;;  %v4765_v9 = vld [vmem:[%s7676_s18 + $0x28] sm:$0xff] }
 0xfdf   : > { %v2908_v58 = vpack.c.bf16 %v4769_v56, %v4768_v55 }
 0xfe0   : > { %v2638_v16 = vmul.f32 %v4752_v11, %v2631_v12  ;;  %v2866_v11 = vpack.c.bf16 %v4765_v9, %v4764_v8 }
 0xfe2   : > { %v2645_v17 = vadd.f32 %v4753_v13, %v2638_v16 }
 0xfe4   : > { %v2650_v63 = vpack.c.bf16 %v2645_v17, %v2645_v17 }
 0xfe6   : > { %5182 = vmatmul.mubr.msk.bf16.vlgmr.msra.gmra.mxu0 %vm1264_vm3, %v2650_v63 }
 0xfe7   : > { %5201 = vmatprep.mubr.msk.bf16.mxu0 %vm6249_vm0, %v6248_v2  ;;  %5198 = vmatpush3.bf16.msra.mxu0 %v2822_v50 }
 0xfe8   : > { %5199 = vmatprep.subr.bf16.mxu0 %v6248_v2 }
 0xfeb   : > { %5200 = vmatpush3.bf16.msra.mxu0 %v2821_v57 }
 0xfec   : > { %5205 = vmatprep.subr.bf16.mxu0 %v6248_v2 }
0x10a6   : > { %v2697_v25 = vpop.f32.mrf.mxu0 }
0x10a7   : > { %v2698_v26 = vadd.f32 %v4754_v24, %v2697_v25 }
0x10a8   : > { %v5183_v27 = vpop.f32.mrf.mxu0 }
0x10a9   : > { %v2703_v28 = vmax.f32 %v2698_v26, 0.0 }
0x10aa   : > { %v2700_v30 = vpop.f32.mrf.mxu0 }
0x10ab   : > { %v2712_v31 = vpack.c.bf16 %v2703_v28, %v2703_v28 }
0x10ac   : > { %v5184_v32 = vpop.f32.mrf.mxu0 }
0x10ad   : > { %5194 = vmatmul.mubr.msk.bf16.vlgmr.msra.gmra.mxu1 %vm2724_vm10, %v2712_v31 }
0x10ae   : > { %5217 = vmatprep.mubr.msk.bf16.mxu1 %vm6249_vm0, %v6248_v2  ;;  %5214 = vmatpush3.bf16.msra.mxu1 %v2909_v54 }
0x10af   : > { %5215 = vmatprep.subr.bf16.mxu1 %v6248_v2 }
0x10b2   : > { %5216 = vmatpush3.bf16.msra.mxu1 %v2908_v58 }
0x10b3   : > { %5227 = vmatprep.subr.bf16.mxu1 %v6248_v2 }
0x116d   : > { %v2762_v34 = vpop.f32.mrf.mxu1 }
0x116e   : > { %v2763_v35 = vadd.f32 %v4756_v33, %v2762_v34 }
0x116f   : > { %v5195_v36 = vpop.f32.mrf.mxu1 }
0x1170   : > { %v2770_v37 = vadd.f32 %v2763_v35, %v2645_v17 }
0x1171   : > { %v2765_v39 = vpop.f32.mrf.mxu1 }
0x1172   : > { %v2771_v40 = vsel %vm1264_vm3, %v2770_v37, 0.0 }
0x1173   : > { %2772 = vadd.xlane.f32.xlu0 %v2771_v40  ;;  %v5196_v41 = vpop.f32.mrf.mxu1 }
0x11fc   : > { %v2773_v42 = vpop.xlane.xlu0 %2772 }
0x11fd   : > { %v2774_v43 = vmul.f32 0.03125, %v2773_v42 }
0x11ff   : > { %v2775_v44 = vsub.f32 %v2770_v37, %v2774_v43 }
0x1201   : > { %v2776_v45 = vmul.f32 %v2775_v44, %v2775_v44 }
0x1203   : > { %v2777_v46 = vsel %vm1264_vm3, %v2776_v45, 0.0 }
0x1204   : > { %2778 = vadd.xlane.f32.xlu1 %v2777_v46 }
0x128d   : > { %v2779_v59 = vpop.xlane.xlu1 %2778 }
0x128e   : > { %v2780_v60 = vmul.f32 0.03125, %v2779_v59 }
0x1290   : > { %v2781_v61 = vadd.f32 1e-05, %v2780_v60 }
0x1292   : > { %5638 = vrsqrt.f32 %v2781_v61 }
0x129f   : > { %v5639_v62 = vpop.eup %5638 }
0x12a0   : > { %v2783_v29 = vmul.f32 %v5639_v62, %v2775_v44 }
0x12a2   : > { %v2790_v3 = vmul.f32 %v4758_v0, %v2783_v29 }
0x12a4   : > { %v7193_v6 = vadd.f32 %v4759_v1, %v2790_v3 }
0x12a6   : > { %v2820_v7 = vpack.c.bf16 %v7193_v6, %v7193_v6 }
0x12a8   : > { %5202 = vmatmul.mubr.msk.bf16.vlgmr.msra.gmra.mxu0 %vm1264_vm3, %v2820_v7  ;;  %5218 = vmatmul.mubr.msk.bf16.vlgmr.msra.gmra.mxu1 %vm1264_vm3, %v2820_v7 }
0x12a9   : > { %5206 = vmatpush3.bf16.msra.mxu0 %v2867_v38  ;;  %5209 = vmatprep.mubr.msk.bf16.mxu0 %vm6249_vm0, %v6248_v2 }
0x12aa   : > { %5207 = vmatprep.subr.bf16.mxu0 %v6248_v2  ;;  %5229 = vmatprep.mubr.msk.bf16.mxu1 %vm6249_vm0, %v6248_v2 }
0x12ad   : > { %5208 = vmatpush3.bf16.msra.mxu0 %v2866_v11 }
0x12ae   : > { %5221 = vmatprep.subr.bf16.mxu0 %v6248_v2 }
0x12b0   : > { %5210 = vmatmul.mubr.msk.bf16.vlgmr.msra.gmra.mxu0 %vm1264_vm3, %v2820_v7 }
0x12b1   : > { %5223 = vmatprep.mubr.msk.bf16.mxu0 %vm6249_vm0, %v6248_v2 }
0x1368   : > { %v2860_v12 = vpop.f32.mrf.mxu0  ;;  %v2944_v13 = vpop.f32.mrf.mxu1 }
0x1369   : > { %v2950_v16 = vpack.c.bf16 %v2860_v12, %v2860_v12  ;;  %v7214_v17 = vpack.c.bf16 %v2944_v13, %v2944_v13 }
0x136a   : > { %v5203_v63 = vpop.f32.mrf.mxu0  ;;  %v5219_v18 = vpop.f32.mrf.mxu1 }
0x136b   : > { %3060 = vrot.lane.b32.xlu1 %v2950_v16, %s7683_s2  ;;  %v3017_v19 = vsel %vm1460_vm5, %v7214_v17, 0 }
0x136c   : > { %v2863_v20 = vpop.f32.mrf.mxu0  ;;  %v2947_v21 = vpop.f32.mrf.mxu1  ;;  %5228 = vmatpush3.bf16.msra.mxu1 %v3017_v19 }
0x136d   : > { %5239 = vmatprep.subr.bf16.mxu1 %v6248_v2 }
0x136e   : > { %v5204_v22 = vpop.f32.mrf.mxu0  ;;  %v5220_v23 = vpop.f32.mrf.mxu1 }
0x1370   : > { %v2902_v24 = vpop.f32.mrf.mxu0 }
0x1371   : > { %v2951_v25 = vpack.c.bf16 %v2902_v24, %v2902_v24 }
0x1372   : > { %v5211_v26 = vpop.f32.mrf.mxu0 }
0x1373   : > { %3176 = vrot.lane.b32.xlu1 %v2951_v25, %s7684_s15  ;;  %3063 = vrot.lane.b32.xlu0 %v2951_v25, %s7683_s2  ;;  %v2956_v27 = vsel %vm1394_vm4, %v2951_v25, 0 }
0x1374   : > { %v2905_v28 = vpop.f32.mrf.mxu0  ;;  %5222 = vmatpush3.bf16.xpose.msra.mxu0 %v2956_v27 }
0x1375   : > { %5233 = vmatprep.subr.bf16.mxu0 %v6248_v2 }
0x1376   : > { %v5212_v30 = vpop.f32.mrf.mxu0 }
0x1377   : > { %3288 = vrot.lane.b32.xlu1 %v2951_v25, %s7685_s17  ;;  %3174 = vrot.lane.b32.xlu0 %v2950_v16, %s7684_s15 }
0x137b   : > { %3286 = vrot.lane.b32.xlu0 %v2950_v16, %s7685_s17  ;;  %5224 = vmatmul.mubr.msk.bf16.vlgmr.msra.gmra.mxu0 %vm1394_vm4, %v2950_v16 }
0x137c   : > { %5235 = vmatprep.mubr.msk.bf16.mxu0 %vm6249_vm0, %v6248_v2 }
0x13dd   : > { %v3061_v33 = vpop.permute.xlu1 %3060 }
0x13e5   : > { %v3064_v31 = vpop.permute.xlu0 %3063  ;;  %v3177_v34 = vpop.permute.xlu1 %3176 }
0x13e6   : > { %v3069_v32 = vsel %vm1394_vm4, %v3064_v31, 0  ;;  %v3182_v35 = vsel %vm1394_vm4, %v3177_v34, 0 }
0x13e7   : > { %5234 = vmatpush3.bf16.xpose.msra.mxu0 %v3069_v32 }
0x13e8   : > { %5245 = vmatprep.subr.bf16.mxu0 %v6248_v2 }
0x13e9   : > { %v3289_v36 = vpop.permute.xlu1 %3288  ;;  %v3175_v37 = vpop.permute.xlu0 %3174 }
0x13ea   : > { %v3294_v39 = vsel %vm1394_vm4, %v3289_v36, 0 }
0x13ed   : > { %v3287_v40 = vpop.permute.xlu0 %3286 }
0x13ee   : > { %5236 = vmatmul.mubr.msk.bf16.vlgmr.msra.gmra.mxu0 %vm1394_vm4, %v3061_v33 }
0x13ef   : > { %5246 = vmatpush3.bf16.xpose.msra.mxu0 %v3182_v35  ;;  %5247 = vmatprep.mubr.msk.bf16.mxu0 %vm6249_vm0, %v6248_v2 }
0x13f0   : > { %5257 = vmatprep.subr.bf16.mxu0 %v6248_v2 }
0x13f6   : > { %5248 = vmatmul.mubr.msk.bf16.vlgmr.msra.gmra.mxu0 %vm1394_vm4, %v3175_v37 }
0x13f7   : > { %5258 = vmatpush3.bf16.xpose.msra.mxu0 %v3294_v39  ;;  %5259 = vmatprep.mubr.msk.bf16.mxu0 %vm6249_vm0, %v6248_v2 }
0x13f8   : > { %5269 = vmatprep.subr.bf16.mxu0 %v6248_v2 }
0x13fe   : > { %5260 = vmatmul.mubr.msk.bf16.vlgmr.msra.gmra.mxu0 %vm1394_vm4, %v3287_v40 }
0x13ff   : > { %5273 = vmatprep.mubr.msk.bf16.mxu0 %vm6249_vm0, %v6248_v2 }
0x143b   : > { %v2992_v41 = vpop.f32.mrf.mxu0 }
0x143c   : > { %v2998_v42 = vsel %vm1441_vm6, %v2992_v41, -1e+20 }
0x143d   : > { %v2999_v43 = vmul.f32 0.17677669, %v2998_v42  ;;  %v5225_v44 = vpop.f32.mrf.mxu0 }
0x143f   : > { %v2995_v45 = vpop.f32.mrf.mxu0  ;;  %v3000_v46 = vsel %vm1394_vm4, %v2999_v43, -inf }
0x1440   : > { %3001 = vmax.xlane.f32.xlu1 %v3000_v46 }
0x1441   : > { %v5226_v47 = vpop.f32.mrf.mxu0 }
0x14ae   : > { %v3105_v48 = vpop.f32.mrf.mxu0 }
0x14af   : > { %v3111_v49 = vsel %vm1441_vm6, %v3105_v48, -1e+20 }
0x14b0   : > { %v3112_v50 = vmul.f32 0.17677669, %v3111_v49  ;;  %v5237_v51 = vpop.f32.mrf.mxu0 }
0x14b2   : > { %v3108_v52 = vpop.f32.mrf.mxu0  ;;  %v3113_v53 = vsel %vm1394_vm4, %v3112_v50, -inf }
0x14b3   : > { %3114 = vmax.xlane.f32.xlu0 %v3113_v53 }
0x14b4   : > { %v5238_v54 = vpop.f32.mrf.mxu0 }
0x14b6   : > { %v3218_v55 = vpop.f32.mrf.mxu0 }
0x14b7   : > { %v3224_v56 = vsel %vm1441_vm6, %v3218_v55, -1e+20  ;;  %v4774_v55 = vld [vmem:[%s7678_s1 + $0x30] sm:$0xff] }
0x14b8   : > { %v3225_v57 = vmul.f32 0.17677669, %v3224_v56  ;;  %v5249_v58 = vpop.f32.mrf.mxu0  ;;  %v4775_v56 = vld [vmem:[%s7678_s1 + $0x38] sm:$0xff] }
0x14ba   : > { %v3221_v59 = vpop.f32.mrf.mxu0  ;;  %v3226_v60 = vsel %vm1394_vm4, %v3225_v57, -inf }
0x14bb   : > { %3227 = vmax.xlane.f32.xlu0 %v3226_v60 }
0x14bc   : > { %v5250_v61 = vpop.f32.mrf.mxu0 }
0x14be   : > { %v3330_v62 = vpop.f32.mrf.mxu0 }
0x14bf   : > { %v3336_v0 = vsel %vm1441_vm6, %v3330_v62, -1e+20 }
0x14c0   : > { %v3337_v29 = vmul.f32 0.17677669, %v3336_v0  ;;  %v5261_v1 = vpop.f32.mrf.mxu0 }
0x14c2   : > { %v3333_v3 = vpop.f32.mrf.mxu0  ;;  %v3338_v4 = vsel %vm1394_vm4, %v3337_v29, -inf }
0x14c3   : > { %3339 = vmax.xlane.f32.xlu1 %v3338_v4  ;;  %v4772_v3 = vld [vmem:[%s7678_s1 + $0x20] sm:$0xff]  ;;  %v4773_v4 = vld [vmem:[%s7678_s1 + $0x28] sm:$0xff] }
0x14c4   : > { %v5262_v5 = vpop.f32.mrf.mxu0 }
0x14c5   : > { %v3414_v5 = vpack.c.bf16 %v4773_v4, %v4772_v3  ;;  %v3510_v4 = vld [vmem:[#allocation14 + $0x30] sm:$0xff] }
0x14c9   : > { %v3002_v38 = vpop.xlane.xlu1 %3001 }
0x14ca   : > { %v3003_v7 = vsub.f32 %v2999_v43, %v3002_v38 }
0x14cc   : > { %v3004_v8 = vmul.f32 1.442695, %v3003_v7 }
0x14ce   : > { %5640 = vpow2.f32 %v3004_v8 }
0x14db   : > { %v5641_v9 = vpop.eup %5640 }
0x14dc   : > { %v3006_v11 = vsel %vm1394_vm4, %v5641_v9, 0.0 }
0x14dd   : > { %3007 = vadd.xlane.f32.xlu0 %v3006_v11 }
0x153c   : > { %v3115_v12 = vpop.xlane.xlu0 %3114 }
0x153d   : > { %v3116_v13 = vsub.f32 %v3112_v50, %v3115_v12 }
0x153f   : > { %v3117_v16 = vmul.f32 1.442695, %v3116_v13 }
0x1541   : > { %5642 = vpow2.f32 %v3117_v16 }
0x1544   : > { %v3228_v15 = vpop.xlane.xlu0 %3227 }
0x1545   : > { %v3229_v63 = vsub.f32 %v3225_v57, %v3228_v15  ;;  %v3415_v57 = vpack.c.bf16 %v4775_v56, %v4774_v55 }
0x1547   : > { %v3230_v18 = vmul.f32 1.442695, %v3229_v63  ;;  %5270 = vmatpush3.bf16.msra.mxu0 %v3415_v57 }
0x1548   : > { %5271 = vmatprep.subr.bf16.mxu0 %v6248_v2 }
0x1549   : > { %5644 = vpow2.f32 %v3230_v18 }
0x154b   : > { %5272 = vmatpush3.bf16.msra.mxu0 %v3414_v5  ;;  %v3511_v5 = vld [vmem:[#allocation14 + $0x38] sm:$0xff] }
0x154c   : > { %v3340_v24 = vpop.xlane.xlu1 %3339  ;;  %5285 = vmatprep.subr.bf16.mxu0 %v6248_v2 }
0x154d   : > { %v3341_v25 = vsub.f32 %v3337_v29, %v3340_v24 }
0x154e   : > { %v5643_v19 = vpop.eup %5642 }
0x154f   : > { %v3119_v20 = vsel %vm1394_vm4, %v5643_v19, 0.0  ;;  %v3342_v26 = vmul.f32 1.442695, %v3341_v25 }
0x1550   : > { %3120 = vadd.xlane.f32.xlu1 %v3119_v20 }
0x1556   : > { %v5645_v21 = vpop.eup %5644 }
0x1557   : > { %v3232_v22 = vsel %vm1394_vm4, %v5645_v21, 0.0 }
0x1558   : > { %3233 = vadd.xlane.f32.xlu0 %v3232_v22 }
0x1561   : > { %3238 = vrot.lane.b32.xlu1 %v7214_v17, %s7684_s15 }
0x1566   : > { %v3008_v23 = vpop.xlane.xlu0 %3007 }
0x1567   : > { %5646 = vrcp.f32 %v3008_v23 }
0x1568   : > { %5648 = vpow2.f32 %v3342_v26 }
0x156e   : > { %3126 = vrot.lane.b32.xlu0 %v7214_v17, %s7683_s2 }
0x1574   : > { %v5647_v27 = vpop.eup %5646 }
0x1575   : > { %v3010_v28 = vmul.f32 %v5647_v27, %v5641_v9  ;;  %v5649_v31 = vpop.eup %5648 }
0x1576   : > { %v3344_v32 = vsel %vm1394_vm4, %v5649_v31, 0.0 }
0x1577   : > { %v3011_v30 = vpack.c.bf16 %v3010_v28, %v3010_v28 }
0x1579   : > { %5230 = vmatmul.mubr.msk.bf16.vlgmr.msra.gmra.mxu1 %vm1394_vm4, %v3011_v30 }
0x157a   : > { %5241 = vmatprep.mubr.msk.bf16.mxu1 %vm6249_vm0, %v6248_v2 }
0x1585   : > { %3345 = vadd.xlane.f32.xlu1 %v3344_v32 }
0x1596   : > { %3350 = vrot.lane.b32.xlu1 %v7214_v17, %s7685_s17 }
0x15d9   : > { %v3121_v33 = vpop.xlane.xlu1 %3120 }
0x15da   : > { %5650 = vrcp.f32 %v3121_v33  ;;  %v4797_v33 = vld [vmem:[%s7681_s21 + $0x30] sm:$0xff] }
0x15dd   : > { %v3239_v40 = vpop.permute.xlu1 %3238 }
0x15de   : > { %v3244_v42 = vsel %vm1460_vm5, %v3239_v40, 0  ;;  %v4794_v40 = vld [vmem:[%s7682_s23 + $0x38] sm:$0xff] }
0x15e1   : > { %v3234_v34 = vpop.xlane.xlu0 %3233 }
0x15e2   : > { %5652 = vrcp.f32 %v3234_v34 }
0x15e5   : > { %v3127_v35 = vpop.permute.xlu0 %3126 }
0x15e6   : > { %v3132_v36 = vsel %vm1460_vm5, %v3127_v35, 0  ;;  %v4795_v35 = vld [vmem:[%s7681_s21 + $0x20] sm:$0xff] }
0x15e7   : > { %v5651_v37 = vpop.eup %5650  ;;  %5240 = vmatpush3.bf16.msra.mxu1 %v3132_v36  ;;  %v4796_v36 = vld [vmem:[%s7681_s21 + $0x28] sm:$0xff] }
0x15e8   : > { %5251 = vmatprep.subr.bf16.mxu1 %v6248_v2  ;;  %v3123_v39 = vmul.f32 %v5651_v37, %v5643_v19  ;;  %v4787_v19 = vld [vmem:[#allocation10 + $0x1] ss:$0 sm:$0xff]  ;;  %v3565_v37 = vpack.c.bf16 %v4796_v36, %v4795_v35 }
0x15ea   : > { %v3124_v41 = vpack.c.bf16 %v3123_v39, %v3123_v39  ;;  %v4793_v39 = vld [vmem:[%s7682_s23 + $0x30] sm:$0xff] }
0x15ec   : > { %5242 = vmatmul.mubr.msk.bf16.vlgmr.msra.gmra.mxu1 %vm1394_vm4, %v3124_v41  ;;  %v3521_v41 = vpack.c.bf16 %v4794_v40, %v4793_v39 }
0x15ed   : > { %5252 = vmatpush3.bf16.msra.mxu1 %v3244_v42  ;;  %5253 = vmatprep.mubr.msk.bf16.mxu1 %vm6249_vm0, %v6248_v2  ;;  %v4791_v42 = vld [vmem:[%s7682_s23 + $0x20] sm:$0xff] }
0x15ee   : > { %5263 = vmatprep.subr.bf16.mxu1 %v6248_v2 }
0x15ef   : > { %v5653_v17 = vpop.eup %5652 }
0x15f0   : > { %v3236_v43 = vmul.f32 %v5653_v17, %v5645_v21  ;;  %v4792_v17 = vld [vmem:[%s7682_s23 + $0x28] sm:$0xff] }
0x15f2   : > { %v3237_v44 = vpack.c.bf16 %v3236_v43, %v3236_v43  ;;  %v3520_v43 = vpack.c.bf16 %v4792_v17, %v4791_v42 }
0x15f4   : > { %5254 = vmatmul.mubr.msk.bf16.vlgmr.msra.gmra.mxu1 %vm1394_vm4, %v3237_v44 }
0x15f5   : > { %5265 = vmatprep.mubr.msk.bf16.mxu1 %vm6249_vm0, %v6248_v2 }
0x160e   : > { %v3346_v45 = vpop.xlane.xlu1 %3345 }
0x160f   : > { %5654 = vrcp.f32 %v3346_v45 }
0x1612   : > { %v3351_v46 = vpop.permute.xlu1 %3350 }
0x1613   : > { %v3356_v47 = vsel %vm1460_vm5, %v3351_v46, 0 }
0x1614   : > { %5264 = vmatpush3.bf16.msra.mxu1 %v3356_v47 }
0x1615   : > { %5277 = vmatprep.subr.bf16.mxu1 %v6248_v2 }
0x161c   : > { %v5655_v48 = vpop.eup %5654 }
0x161d   : > { %v3348_v49 = vmul.f32 %v5655_v48, %v5649_v31  ;;  %v4789_v48 = vld [vmem:[#allocation11 + $0x1] ss:$0 sm:$0xff] }
0x161f   : > { %v3349_v50 = vpack.c.bf16 %v3348_v49, %v3348_v49 }
0x1621   : > { %5266 = vmatmul.mubr.msk.bf16.vlgmr.msra.gmra.mxu1 %vm1394_vm4, %v3349_v50  ;;  %v4790_v50 = vld [vmem:[#allocation13 + $0x1] ss:$0 sm:$0xff] }
0x1622   : > { %5281 = vmatprep.mubr.msk.bf16.mxu1 %vm6249_vm0, %v6248_v2  ;;  %5278 = vmatpush3.bf16.msra.mxu1 %v3521_v41 }
0x1623   : > { %5279 = vmatprep.subr.bf16.mxu1 %v6248_v2 }
0x1626   : > { %5280 = vmatpush3.bf16.msra.mxu1 %v3520_v43 }
0x1627   : > { %5293 = vmatprep.subr.bf16.mxu1 %v6248_v2 }
0x1639   : > { %v3053_v51 = vpop.f32.mrf.mxu1 }
0x163b   : > { %v5231_v52 = vpop.f32.mrf.mxu1 }
0x163d   : > { %v3056_v53 = vpop.f32.mrf.mxu1 }
0x163f   : > { %v5232_v54 = vpop.f32.mrf.mxu1 }
0x16ac   : > { %v3168_v58 = vpop.f32.mrf.mxu1 }
0x16ad   : > { %3399 = vrot.lane.b32.xlu0 %v3168_v58, %s7686_s3 }
0x16ae   : > { %v5243_v59 = vpop.f32.mrf.mxu1 }
0x16b0   : > { %v3171_v60 = vpop.f32.mrf.mxu1 }
0x16b2   : > { %v5244_v61 = vpop.f32.mrf.mxu1 }
0x16b4   : > { %v3280_v62 = vpop.f32.mrf.mxu1 }
0x16b5   : > { %3403 = vrot.lane.b32.xlu1 %v3280_v62, %s7687_s11 }
0x16b6   : > { %v5255_v0 = vpop.f32.mrf.mxu1 }
0x16b8   : > { %v3283_v29 = vpop.f32.mrf.mxu1 }
0x16ba   : > { %v5256_v1 = vpop.f32.mrf.mxu1 }
0x16e1   : > { %v3392_v38 = vpop.f32.mrf.mxu1 }
0x16e2   : > { %3407 = vrot.lane.b32.xlu0 %v3392_v38, %s7688_s24  ;;  %v3508_v38 = vld [vmem:[#allocation14 + $0x20] sm:$0xff] }
0x16e3   : > { %v5267_v7 = vpop.f32.mrf.mxu1 }
0x16e4   : > { %v3608_v7 = vpack.c.bf16 %v3511_v5, %v3510_v4 }
0x16e5   : > { %v3395_v8 = vpop.f32.mrf.mxu1 }
0x16e6   : > { %v3509_v8 = vld [vmem:[#allocation14 + $0x28] sm:$0xff] }
0x16e7   : > { %v5268_v9 = vpop.f32.mrf.mxu1 }
0x16e8   : > { %v3607_v9 = vpack.c.bf16 %v3509_v8, %v3508_v38 }
0x171f   : > { %v3400_v11 = vpop.permute.xlu0 %3399 }
0x1720   : > { %v3410_v13 = vsel %vm1394_vm4, %v3053_v51, %v3400_v11 }
0x1727   : > { %v3404_v12 = vpop.permute.xlu1 %3403 }
0x1728   : > { %v3411_v16 = vsel %vm1856_vm7, %v3410_v13, %v3404_v12 }
0x1754   : > { %v3408_v15 = vpop.permute.xlu0 %3407 }
0x1755   : > { %v3412_v63 = vsel %vm1858_vm8, %v3411_v16, %v3408_v15 }
0x1756   : > { %v3413_v18 = vpack.c.bf16 %v3412_v63, %v3412_v63 }
0x1758   : > { %5274 = vmatmul.mubr.msk.bf16.vlgmr.msra.gmra.mxu0 %vm1264_vm3, %v3413_v18 }
0x1759   : > { %5289 = vmatprep.mubr.msk.bf16.mxu0 %vm6249_vm0, %v6248_v2 }
0x1818   : > { %v3459_v20 = vpop.f32.mrf.mxu0 }
0x1819   : > { %v3460_v21 = vadd.f32 %v4787_v19, %v3459_v20 }
0x181a   : > { %v5275_v22 = vpop.f32.mrf.mxu0 }
0x181b   : > { %v3469_v23 = vadd.f32 %v3460_v21, %v7193_v6  ;;  %v4798_v6 = vld [vmem:[%s7681_s21 + $0x38] sm:$0xff] }
0x181c   : > { %v3462_v24 = vpop.f32.mrf.mxu0  ;;  %v3566_v34 = vpack.c.bf16 %v4798_v6, %v4797_v33 }
0x181d   : > { %v3470_v25 = vsel %vm1264_vm3, %v3469_v23, 0.0 }
0x181e   : > { %3471 = vadd.xlane.f32.xlu1 %v3470_v25  ;;  %v5276_v26 = vpop.f32.mrf.mxu0  ;;  %5286 = vmatpush3.bf16.msra.mxu0 %v3566_v34 }
0x181f   : > { %5287 = vmatprep.subr.bf16.mxu0 %v6248_v2 }
0x1822   : > { %5288 = vmatpush3.bf16.msra.mxu0 %v3565_v37 }
0x1823   : > { %5301 = vmatprep.subr.bf16.mxu0 %v6248_v2 }
0x1825   : > { %5290 = vmatmul.mubr.msk.bf16.vlgmr.msra.gmra.mxu0 %vm1264_vm3, %v7007_v14 }
0x1826   : > { %5303 = vmatprep.mubr.msk.bf16.mxu0 %vm6249_vm0, %v6248_v2 }
0x18a7   : > { %v3472_v27 = vpop.xlane.xlu1 %3471 }
0x18a8   : > { %v3473_v28 = vmul.f32 0.03125, %v3472_v27 }
0x18aa   : > { %v3474_v30 = vsub.f32 %v3469_v23, %v3473_v28 }
0x18ac   : > { %v3475_v31 = vmul.f32 %v3474_v30, %v3474_v30 }
0x18ae   : > { %v3476_v32 = vsel %vm1264_vm3, %v3475_v31, 0.0 }
0x18af   : > { %3477 = vadd.xlane.f32.xlu0 %v3476_v32 }
0x18e5   : > { %v3601_v54 = vpop.f32.mrf.mxu0 }
0x18e6   : > { %v3650_v55 = vpack.c.bf16 %v3601_v54, %v3601_v54 }
0x18e7   : > { %v5291_v56 = vpop.f32.mrf.mxu0 }
0x18e8   : > { %3762 = vrot.lane.b32.xlu0 %v3650_v55, %s7683_s2  ;;  %v3655_v57 = vsel %vm1394_vm4, %v3650_v55, 0 }
0x18e9   : > { %v3604_v58 = vpop.f32.mrf.mxu0  ;;  %5302 = vmatpush3.bf16.xpose.msra.mxu0 %v3655_v57 }
0x18ea   : > { %5313 = vmatprep.subr.bf16.mxu0 %v6248_v2 }
0x18eb   : > { %v5292_v59 = vpop.f32.mrf.mxu0 }
0x1938   : > { %v3478_v44 = vpop.xlane.xlu0 %3477 }
0x1939   : > { %v3479_v45 = vmul.f32 0.03125, %v3478_v44 }
0x193b   : > { %v3480_v46 = vadd.f32 1e-05, %v3479_v45 }
0x193d   : > { %5656 = vrsqrt.f32 %v3480_v46 }
0x194a   : > { %v5657_v47 = vpop.eup %5656 }
0x194b   : > { %v3482_v49 = vmul.f32 %v5657_v47, %v3474_v30 }
0x194d   : > { %v3489_v51 = vmul.f32 %v4789_v48, %v3482_v49 }
0x194f   : > { %v7343_v52 = vadd.f32 %v4790_v50, %v3489_v51 }
0x1951   : > { %v3519_v53 = vpack.c.bf16 %v7343_v52, %v7343_v52 }
0x1953   : > { %5282 = vmatmul.mubr.msk.bf16.vlgmr.msra.gmra.mxu1 %vm1264_vm3, %v3519_v53 }
0x1954   : > { %5297 = vmatprep.mubr.msk.bf16.mxu1 %vm6249_vm0, %v6248_v2  ;;  %5294 = vmatpush3.bf16.msra.mxu1 %v3608_v7 }
0x1955   : > { %5295 = vmatprep.subr.bf16.mxu1 %v6248_v2 }
0x1958   : > { %5296 = vmatpush3.bf16.msra.mxu1 %v3607_v9 }
0x1959   : > { %5307 = vmatprep.subr.bf16.mxu1 %v6248_v2 }
0x195a   : > { %v3763_v60 = vpop.permute.xlu0 %3762 }
0x195b   : > { %v3768_v29 = vsel %vm1394_vm4, %v3763_v60, 0  ;;  %5298 = vmatmul.mubr.msk.bf16.vlgmr.msra.gmra.mxu1 %vm1264_vm3, %v7007_v14 }
0x195c   : > { %5309 = vmatprep.mubr.msk.bf16.mxu1 %vm6249_vm0, %v6248_v2 }
0x1a13   : > { %v3559_v61 = vpop.f32.mrf.mxu1 }
0x1a14   : > { %v3649_v62 = vpack.c.bf16 %v3559_v61, %v3559_v61 }
0x1a15   : > { %v5283_v0 = vpop.f32.mrf.mxu1 }
0x1a16   : > { %3759 = vrot.lane.b32.xlu1 %v3649_v62, %s7683_s2  ;;  %3873 = vrot.lane.b32.xlu0 %v3649_v62, %s7684_s15 }
0x1a17   : > { %5304 = vmatmul.mubr.msk.bf16.vlgmr.msra.gmra.mxu0 %vm1394_vm4, %v3649_v62  ;;  %v3562_v1 = vpop.f32.mrf.mxu1 }
0x1a18   : > { %5314 = vmatpush3.bf16.xpose.msra.mxu0 %v3768_v29  ;;  %5315 = vmatprep.mubr.msk.bf16.mxu0 %vm6249_vm0, %v6248_v2 }
0x1a19   : > { %v5284_v3 = vpop.f32.mrf.mxu1  ;;  %5325 = vmatprep.subr.bf16.mxu0 %v6248_v2 }
0x1a1a   : > { %3875 = vrot.lane.b32.xlu1 %v3650_v55, %s7684_s15  ;;  %3985 = vrot.lane.b32.xlu0 %v3649_v62, %s7685_s17 }
0x1a1b   : > { %v3643_v49 = vpop.f32.mrf.mxu1 }
0x1a1c   : > { %v3711_v10 = vpack.c.bf16 %v3643_v49, %v3643_v49 }
0x1a1d   : > { %v5299_v50 = vpop.f32.mrf.mxu1 }
0x1a1e   : > { %3987 = vrot.lane.b32.xlu1 %v3650_v55, %s7685_s17  ;;  %v3716_v56 = vsel %vm1460_vm5, %v3711_v10, 0 }
0x1a1f   : > { %v3646_v51 = vpop.f32.mrf.mxu1  ;;  %5308 = vmatpush3.bf16.msra.mxu1 %v3716_v56 }
0x1a20   : > { %5319 = vmatprep.subr.bf16.mxu1 %v6248_v2 }
0x1a21   : > { %v5300_v53 = vpop.f32.mrf.mxu1 }
0x1a88   : > { %v3760_v11 = vpop.permute.xlu1 %3759  ;;  %v3874_v15 = vpop.permute.xlu0 %3873 }
0x1a89   : > { %5316 = vmatmul.mubr.msk.bf16.vlgmr.msra.gmra.mxu0 %vm1394_vm4, %v3760_v11 }
0x1a8a   : > { %5327 = vmatprep.mubr.msk.bf16.mxu0 %vm6249_vm0, %v6248_v2 }
0x1a8c   : > { %v3876_v12 = vpop.permute.xlu1 %3875  ;;  %v3986_v14 = vpop.permute.xlu0 %3985 }
0x1a8d   : > { %v3881_v13 = vsel %vm1394_vm4, %v3876_v12, 0 }
0x1a8e   : > { %5326 = vmatpush3.bf16.xpose.msra.mxu0 %v3881_v13 }
0x1a8f   : > { %5337 = vmatprep.subr.bf16.mxu0 %v6248_v2 }
0x1a90   : > { %v3988_v16 = vpop.permute.xlu1 %3987 }
0x1a91   : > { %v3993_v63 = vsel %vm1394_vm4, %v3988_v16, 0 }
0x1a95   : > { %5328 = vmatmul.mubr.msk.bf16.vlgmr.msra.gmra.mxu0 %vm1394_vm4, %v3874_v15 }
0x1a96   : > { %5338 = vmatpush3.bf16.xpose.msra.mxu0 %v3993_v63  ;;  %5339 = vmatprep.mubr.msk.bf16.mxu0 %vm6249_vm0, %v6248_v2 }
0x1a97   : > { %5349 = vmatprep.subr.bf16.mxu0 %v6248_v2 }
0x1a9d   : > { %5340 = vmatmul.mubr.msk.bf16.vlgmr.msra.gmra.mxu0 %vm1394_vm4, %v3986_v14 }
0x1a9e   : > { %5353 = vmatprep.mubr.msk.bf16.mxu0 %vm6249_vm0, %v6248_v2 }
0x1ad7   : > { %v3691_v18 = vpop.f32.mrf.mxu0 }
0x1ad8   : > { %v3697_v19 = vsel %vm2148_vm9, %v3691_v18, -1e+20 }
0x1ad9   : > { %v3698_v20 = vmul.f32 0.17677669, %v3697_v19  ;;  %v5305_v21 = vpop.f32.mrf.mxu0 }
0x1adb   : > { %v3694_v22 = vpop.f32.mrf.mxu0  ;;  %v3699_v23 = vsel %vm1394_vm4, %v3698_v20, -inf }
0x1adc   : > { %3700 = vmax.xlane.f32.xlu1 %v3699_v23 }
0x1add   : > { %v5306_v24 = vpop.f32.mrf.mxu0 }
0x1b49   : > { %v3804_v25 = vpop.f32.mrf.mxu0 }
0x1b4a   : > { %v3810_v26 = vsel %vm2148_vm9, %v3804_v25, -1e+20 }
0x1b4b   : > { %v3811_v27 = vmul.f32 0.17677669, %v3810_v26  ;;  %v5317_v28 = vpop.f32.mrf.mxu0 }
0x1b4d   : > { %v3807_v30 = vpop.f32.mrf.mxu0  ;;  %v3812_v31 = vsel %vm1394_vm4, %v3811_v27, -inf }
0x1b4e   : > { %3813 = vmax.xlane.f32.xlu0 %v3812_v31 }
0x1b4f   : > { %v5318_v32 = vpop.f32.mrf.mxu0 }
0x1b55   : > { %v3917_v33 = vpop.f32.mrf.mxu0 }
0x1b56   : > { %v3923_v6 = vsel %vm2148_vm9, %v3917_v33, -1e+20 }
0x1b57   : > { %v3924_v34 = vmul.f32 0.17677669, %v3923_v6  ;;  %v5329_v35 = vpop.f32.mrf.mxu0 }
0x1b59   : > { %v3920_v36 = vpop.f32.mrf.mxu0  ;;  %v3925_v37 = vsel %vm1394_vm4, %v3924_v34, -inf }
0x1b5a   : > { %3926 = vmax.xlane.f32.xlu0 %v3925_v37  ;;  %v3515_v36 = vld [vmem:[#allocation16 + $0x30] sm:$0xff]  ;;  %v3516_v37 = vld [vmem:[#allocation16 + $0x38] sm:$0xff] }
0x1b5b   : > { %v5330_v39 = vpop.f32.mrf.mxu0 }
0x1b5c   : > { %v4114_v39 = vpack.c.bf16 %v3516_v37, %v3515_v36  ;;  %v4816_v36 = vld [vmem:[%s7689_s16 + $0x40] sm:$0xff]  ;;  %v4817_v37 = vld [vmem:[%s7689_s16 + $0x48] sm:$0xff] }
0x1b5d   : > { %v4029_v40 = vpop.f32.mrf.mxu0 }
0x1b5e   : > { %v4035_v41 = vsel %vm2148_vm9, %v4029_v40, -1e+20  ;;  %5350 = vmatpush3.bf16.msra.mxu0 %v4114_v39  ;;  %v4266_v39 = vpack.c.bf16 %v4817_v37, %v4816_v36 }
0x1b5f   : > { %v4036_v42 = vmul.f32 0.17677669, %v4035_v41  ;;  %v5341_v17 = vpop.f32.mrf.mxu0  ;;  %5351 = vmatprep.subr.bf16.mxu0 %v6248_v2 }
0x1b61   : > { %v4032_v43 = vpop.f32.mrf.mxu0  ;;  %v4037_v44 = vsel %vm1394_vm4, %v4036_v42, -inf }
0x1b62   : > { %4038 = vmax.xlane.f32.xlu1 %v4037_v44 }
0x1b63   : > { %v5342_v45 = vpop.f32.mrf.mxu0 }
0x1b65   : > { %v3701_v46 = vpop.xlane.xlu1 %3700 }
0x1b66   : > { %v3702_v47 = vsub.f32 %v3698_v20, %v3701_v46 }
0x1b68   : > { %v3703_v48 = vmul.f32 1.442695, %v3702_v47  ;;  %v3513_v47 = vld [vmem:[#allocation16 + $0x20] sm:$0xff] }
0x1b6a   : > { %5658 = vpow2.f32 %v3703_v48  ;;  %v3514_v48 = vld [vmem:[#allocation16 + $0x28] sm:$0xff] }
0x1b6b   : > { %v4113_v49 = vpack.c.bf16 %v3514_v48, %v3513_v47  ;;  %v4824_v47 = vld [vmem:[#allocation25 + $0x1] ss:$0 sm:$0xff] }
0x1b6d   : > { %5352 = vmatpush3.bf16.msra.mxu0 %v4113_v49 }
0x1b6e   : > { %5365 = vmatprep.subr.bf16.mxu0 %v6248_v2 }
0x1b77   : > { %v5659_v54 = vpop.eup %5658 }
0x1b78   : > { %v3705_v55 = vsel %vm1394_vm4, %v5659_v54, 0.0 }
0x1b79   : > { %3706 = vadd.xlane.f32.xlu0 %v3705_v55 }
0x1bd7   : > { %v3814_v57 = vpop.xlane.xlu0 %3813 }
0x1bd8   : > { %v3815_v58 = vsub.f32 %v3811_v27, %v3814_v57 }
0x1bda   : > { %v3816_v59 = vmul.f32 1.442695, %v3815_v58 }
0x1bdc   : > { %5660 = vpow2.f32 %v3816_v59 }
0x1be3   : > { %v3927_v60 = vpop.xlane.xlu0 %3926 }
0x1be4   : > { %v3928_v61 = vsub.f32 %v3924_v34, %v3927_v60 }
0x1be6   : > { %v3929_v62 = vmul.f32 1.442695, %v3928_v61  ;;  %v4810_v61 = vld [vmem:[#allocation17 + $0x1] ss:$0 sm:$0xff] }
0x1be8   : > { %5662 = vpow2.f32 %v3929_v62 }
0x1be9   : > { %v5661_v0 = vpop.eup %5660 }
0x1bea   : > { %v3818_v29 = vsel %vm1394_vm4, %v5661_v0, 0.0 }
0x1beb   : > { %3819 = vadd.xlane.f32.xlu1 %v3818_v29  ;;  %v4039_v5 = vpop.xlane.xlu1 %4038 }
0x1bec   : > { %v4040_v38 = vsub.f32 %v4036_v42, %v4039_v5 }
0x1bee   : > { %v4041_v7 = vmul.f32 1.442695, %v4040_v38 }
0x1bf5   : > { %v5663_v1 = vpop.eup %5662 }
0x1bf6   : > { %v3931_v3 = vsel %vm1394_vm4, %v5663_v1, 0.0 }
0x1bf7   : > { %3932 = vadd.xlane.f32.xlu0 %v3931_v3 }
0x1bfc   : > { %3937 = vrot.lane.b32.xlu1 %v3711_v10, %s7684_s15 }
0x1c02   : > { %v3707_v4 = vpop.xlane.xlu0 %3706 }
0x1c03   : > { %5664 = vrcp.f32 %v3707_v4 }
0x1c04   : > { %5666 = vpow2.f32 %v4041_v7 }
0x1c0d   : > { %3825 = vrot.lane.b32.xlu0 %v3711_v10, %s7683_s2  ;;  %s7690_s2 = sshll.u32 %s6692_s14, 3 }
0x1c0e   : > { %s1135_s15 = scalar_lea.vmem [#allocation29], %s7690_s2 }
0x1c10   : > { %v5665_v8 = vpop.eup %5664 }
0x1c11   : > { %v3709_v9 = vmul.f32 %v5665_v8, %v5659_v54  ;;  %v5667_v12 = vpop.eup %5666 }
0x1c12   : > { %v4043_v13 = vsel %vm1394_vm4, %v5667_v12, 0.0 }
0x1c13   : > { %v3710_v11 = vpack.c.bf16 %v3709_v9, %v3709_v9 }
0x1c15   : > { %5310 = vmatmul.mubr.msk.bf16.vlgmr.msra.gmra.mxu1 %vm1394_vm4, %v3710_v11 }
0x1c16   : > { %5321 = vmatprep.mubr.msk.bf16.mxu1 %vm6249_vm0, %v6248_v2 }
0x1c20   : > { %4044 = vadd.xlane.f32.xlu1 %v4043_v13  ;;  %v4200_v13 = vld [vmem:[#allocation22 + $0x38] sm:$0xff] }
0x1c31   : > { %4049 = vrot.lane.b32.xlu1 %v3711_v10, %s7685_s17  ;;  %s4425_s17 = sshll.u32 %s1135_s15, 4  ;;  %s7480_s17 = int_to_ptr.vmem [resolvable:$true] %s4425_s17 }
0x1c32   : > { %s6124_s12 = scalar_lea.vmem %s7480_s17, 128  ;;  %p6131_p13 = scmp.lt.s32.totalorder %s7480_s17, %s6129_s10 }
0x1c33   : > { %p6125_p8 = scmp.ne.s32.totalorder %s7480_s17, %s6124_s12  ;;  %p6132_p5 = scmp.lt.s32.totalorder %s6130_s6, %s6124_s12 }
0x1c35   : > { %p6126_p10 = pnand %p6125_p8, %p7692_p9  ;;  %p6133_p1 = por %p6132_p5, %p6131_p13 }
0x1c37   : > { %p6127_p12 = pneg %p6126_p10 }
0x1c39   : > { %p6134_p11 = pnand %p6133_p1, %p6127_p12 }
0x1c74   : > { %v3820_v16 = vpop.xlane.xlu1 %3819 }
0x1c75   : > { %5668 = vrcp.f32 %v3820_v16 }
0x1c78   : > { %v3938_v20 = vpop.permute.xlu1 %3937 }
0x1c79   : > { %v3943_v22 = vsel %vm1460_vm5, %v3938_v20, 0 }
0x1c80   : > { %v3933_v15 = vpop.xlane.xlu0 %3932 }
0x1c81   : > { %5670 = vrcp.f32 %v3933_v15  ;;  %v4197_v15 = vld [vmem:[#allocation22 + $0x20] sm:$0xff] }
0x1c82   : > { %v5669_v63 = vpop.eup %5668 }
0x1c83   : > { %v3822_v14 = vmul.f32 %v5669_v63, %v5661_v0  ;;  %v4198_v63 = vld [vmem:[#allocation22 + $0x28] sm:$0xff] }
0x1c84   : > { %v3826_v18 = vpop.permute.xlu0 %3825 }
0x1c85   : > { %v3831_v19 = vsel %vm1460_vm5, %v3826_v18, 0  ;;  %v3823_v21 = vpack.c.bf16 %v3822_v14, %v3822_v14  ;;  %v4202_v14 = vpack.c.bf16 %v4198_v63, %v4197_v15  ;;  %v4823_v18 = vld [vmem:[%s7689_s16 + $0x78] sm:$0xff] }
0x1c86   : > { %5320 = vmatpush3.bf16.msra.mxu1 %v3831_v19  ;;  %v4820_v19 = vld [vmem:[%s7689_s16 + $0x60] sm:$0xff] }
0x1c87   : > { %5331 = vmatprep.subr.bf16.mxu1 %v6248_v2 }
0x1c89   : > { %5322 = vmatmul.mubr.msk.bf16.vlgmr.msra.gmra.mxu1 %vm1394_vm4, %v3823_v21  ;;  %v4821_v21 = vld [vmem:[%s7689_s16 + $0x68] sm:$0xff] }
0x1c8a   : > { %5332 = vmatpush3.bf16.msra.mxu1 %v3943_v22  ;;  %5333 = vmatprep.mubr.msk.bf16.mxu1 %vm6249_vm0, %v6248_v2  ;;  %v4268_v22 = vpack.c.bf16 %v4821_v21, %v4820_v19 }
0x1c8b   : > { %5343 = vmatprep.subr.bf16.mxu1 %v6248_v2 }
0x1c8e   : > { %v5671_v23 = vpop.eup %5670 }
0x1c8f   : > { %v3935_v24 = vmul.f32 %v5671_v23, %v5663_v1 }
0x1c91   : > { %v3936_v25 = vpack.c.bf16 %v3935_v24, %v3935_v24 }
0x1c93   : > { %5334 = vmatmul.mubr.msk.bf16.vlgmr.msra.gmra.mxu1 %vm1394_vm4, %v3936_v25 }
0x1c94   : > { %5345 = vmatprep.mubr.msk.bf16.mxu1 %vm6249_vm0, %v6248_v2 }
0x1ca9   : > { %v4045_v26 = vpop.xlane.xlu1 %4044 }
0x1caa   : > { %5672 = vrcp.f32 %v4045_v26 }
0x1cad   : > { %v4050_v27 = vpop.permute.xlu1 %4049 }
0x1cae   : > { %v4055_v28 = vsel %vm1460_vm5, %v4050_v27, 0  ;;  %v4812_v27 = vld [vmem:[#allocation19 + $0x1] ss:$0 sm:$0xff] }
0x1caf   : > { %5344 = vmatpush3.bf16.msra.mxu1 %v4055_v28 }
0x1cb0   : > { %5357 = vmatprep.subr.bf16.mxu1 %v6248_v2 }
0x1cb7   : > { %v5673_v30 = vpop.eup %5672 }
0x1cb8   : > { %v4047_v31 = vmul.f32 %v5673_v30, %v5667_v12  ;;  %v4199_v12 = vld [vmem:[#allocation22 + $0x30] sm:$0xff]  ;;  %v4813_v30 = vld [vmem:[#allocation20 + $0x1] ss:$0 sm:$0xff] }
0x1cb9   : > { %v4203_v16 = vpack.c.bf16 %v4200_v13, %v4199_v12 }
0x1cba   : > { %v4048_v32 = vpack.c.bf16 %v4047_v31, %v4047_v31 }
0x1cbc   : > { %5346 = vmatmul.mubr.msk.bf16.vlgmr.msra.gmra.mxu1 %vm1394_vm4, %v4048_v32 }
0x1cbd   : > { %5361 = vmatprep.mubr.msk.bf16.mxu1 %vm6249_vm0, %v6248_v2  ;;  %5358 = vmatpush3.bf16.msra.mxu1 %v4203_v16  ;;  %v4828_v16 = vld [vmem:[#allocation8] ss:$0 sm:$0xff] }
0x1cbe   : > { %5359 = vmatprep.subr.bf16.mxu1 %v6248_v2 }
0x1cc1   : > { %5360 = vmatpush3.bf16.msra.mxu1 %v4202_v14 }
0x1cc2   : > { %5377 = vmatprep.subr.bf16.mxu1 %v6248_v2 }
0x1cd5   : > { %v3752_v33 = vpop.f32.mrf.mxu1 }
0x1cd7   : > { %v5311_v6 = vpop.f32.mrf.mxu1 }
0x1cd8   : > { %v4818_v6 = vld [vmem:[%s7689_s16 + $0x50] sm:$0xff] }
0x1cd9   : > { %v3755_v34 = vpop.f32.mrf.mxu1 }
0x1cda   : > { %v4819_v34 = vld [vmem:[%s7689_s16 + $0x58] sm:$0xff] }
0x1cdb   : > { %v5312_v35 = vpop.f32.mrf.mxu1 }
0x1cdc   : > { %v4267_v35 = vpack.c.bf16 %v4819_v34, %v4818_v6 }
0x1d49   : > { %v3867_v40 = vpop.f32.mrf.mxu1 }
0x1d4a   : > { %4098 = vrot.lane.b32.xlu0 %v3867_v40, %s7686_s3  ;;  %v4814_v40 = vld [vmem:[#allocation23 + $0x1] ss:$0 sm:$0xff] }
0x1d4b   : > { %v5323_v41 = vpop.f32.mrf.mxu1 }
0x1d4d   : > { %v3870_v42 = vpop.f32.mrf.mxu1 }
0x1d4f   : > { %v5324_v17 = vpop.f32.mrf.mxu1 }
0x1d53   : > { %v3979_v43 = vpop.f32.mrf.mxu1 }
0x1d54   : > { %4102 = vrot.lane.b32.xlu1 %v3979_v43, %s7687_s11 }
0x1d55   : > { %v5335_v44 = vpop.f32.mrf.mxu1 }
0x1d57   : > { %v3982_v45 = vpop.f32.mrf.mxu1 }
0x1d59   : > { %v5336_v46 = vpop.f32.mrf.mxu1 }
0x1d7c   : > { %v4091_v50 = vpop.f32.mrf.mxu1 }
0x1d7d   : > { %4106 = vrot.lane.b32.xlu0 %v4091_v50, %s7688_s24  ;;  %s7691_s24 = sld [smem:[#allocation74_spill]] }
0x1d7e   : > { %v5347_v51 = vpop.f32.mrf.mxu1 }
0x1d80   : > { %v4094_v53 = vpop.f32.mrf.mxu1 }
0x1d82   : > { %v5348_v54 = vpop.f32.mrf.mxu1 }
0x1d83   : > { %s7478_s19 = scalar_lea.hbm %s7691_s24, %s4831_s29 }
0x1dbc   : > { %v4099_v55 = vpop.permute.xlu0 %4098 }
0x1dbd   : > { %v4109_v56 = vsel %vm1394_vm4, %v3752_v33, %v4099_v55 }
0x1dc6   : > { %v4103_v10 = vpop.permute.xlu1 %4102 }
0x1dc7   : > { %v4110_v57 = vsel %vm1856_vm7, %v4109_v56, %v4103_v10 }
0x1def   : > { %v4107_v58 = vpop.permute.xlu0 %4106 }
0x1df0   : > { %v4111_v59 = vsel %vm1858_vm8, %v4110_v57, %v4107_v58 }
0x1df1   : > { %v4112_v60 = vpack.c.bf16 %v4111_v59, %v4111_v59 }
0x1df3   : > { %5354 = vmatmul.mubr.msk.bf16.vlgmr.msra.gmra.mxu0 %vm1264_vm3, %v4112_v60  ;;  %v4355_v60 = vld [vmem:[#allocation7 + $0x10] sm:$0xff] }
0x1df4   : > { %5373 = vmatprep.mubr.msk.bf16.mxu0 %vm6249_vm0, %v6248_v2 }
0x1eb3   : > { %v4158_v62 = vpop.f32.mrf.mxu0 }
0x1eb4   : > { %v4159_v0 = vadd.f32 %v4810_v61, %v4158_v62  ;;  %v4356_v61 = vld [vmem:[#allocation7 + $0x18] sm:$0xff] }
0x1eb5   : > { %v5355_v29 = vpop.f32.mrf.mxu0  ;;  %v4359_v62 = vpack.c.bf16 %v4356_v61, %v4355_v60 }
0x1eb6   : > { %v4168_v1 = vadd.f32 %v4159_v0, %v7343_v52  ;;  %v4822_v52 = vld [vmem:[%s7689_s16 + $0x70] sm:$0xff]  ;;  %v4354_v29 = vld [vmem:[#allocation7 + $0x8] sm:$0xff] }
0x1eb7   : > { %v4161_v3 = vpop.f32.mrf.mxu0  ;;  %v4269_v20 = vpack.c.bf16 %v4823_v18, %v4822_v52  ;;  %v4353_v0 = vld [vmem:[#allocation7] sm:$0xff] }
0x1eb8   : > { %v4169_v4 = vsel %vm1264_vm3, %v4168_v1, 0.0 }
0x1eb9   : > { %4170 = vadd.xlane.f32.xlu1 %v4169_v4  ;;  %v5356_v5 = vpop.f32.mrf.mxu0  ;;  %5366 = vmatpush3.bf16.msra.mxu0 %v4269_v20 }
0x1eba   : > { %5367 = vmatprep.subr.bf16.mxu0 %v6248_v2 }
0x1ebd   : > { %5368 = vmatpush3.bf16.msra.mxu0 %v4268_v22 }
0x1ebe   : > { %5369 = vmatprep.subr.bf16.mxu0 %v6248_v2 }
0x1ec1   : > { %5370 = vmatpush3.bf16.msra.mxu0 %v4267_v35 }
0x1ec2   : > { %5371 = vmatprep.subr.bf16.mxu0 %v6248_v2 }
0x1ec5   : > { %5372 = vmatpush3.bf16.msra.mxu0 %v4266_v39 }
0x1f42   : > { %v4171_v38 = vpop.xlane.xlu1 %4170 }
0x1f43   : > { %v4172_v7 = vmul.f32 0.03125, %v4171_v38 }
0x1f45   : > { %v4173_v8 = vsub.f32 %v4168_v1, %v4172_v7  ;;  %v4358_v1 = vpack.c.bf16 %v4354_v29, %v4353_v0  ;;  %v4826_v7 = vld [vmem:[#allocation26 + $0x1] ss:$0 sm:$0xff] }
0x1f47   : > { %v4174_v9 = vmul.f32 %v4173_v8, %v4173_v8 }
0x1f49   : > { %v4175_v11 = vsel %vm1264_vm3, %v4174_v9, 0.0  ;;  %v4827_v9 = vld [vmem:[#allocation28 + $0x1] ss:$0 sm:$0xff] }
0x1f4a   : > { %4176 = vadd.xlane.f32.xlu0 %v4175_v11 }
0x1fd3   : > { %v4177_v23 = vpop.xlane.xlu0 %4176 }
0x1fd4   : > { %v4178_v24 = vmul.f32 0.03125, %v4177_v23 }
0x1fd6   : > { %v4179_v25 = vadd.f32 1e-05, %v4178_v24 }
0x1fd8   : > { %5674 = vrsqrt.f32 %v4179_v25 }
0x1fe5   : > { %v5675_v26 = vpop.eup %5674 }
0x1fe6   : > { %v4181_v28 = vmul.f32 %v5675_v26, %v4173_v8 }
0x1fe8   : > { %v4188_v31 = vmul.f32 %v4812_v27, %v4181_v28 }
0x1fea   : > { %v4195_v32 = vadd.f32 %v4813_v30, %v4188_v31 }
0x1fec   : > { %v4201_v33 = vpack.c.bf16 %v4195_v32, %v4195_v32 }
0x1fee   : > { %5362 = vmatmul.mubr.msk.bf16.vlgmr.msra.gmra.mxu1 %vm1264_vm3, %v4201_v33 }
0x1fef   : > { %5381 = vmatprep.mubr.msk.bf16.mxu1 %vm6249_vm0, %v6248_v2  ;;  %5378 = vmatpush3.bf16.msra.mxu1 %v4359_v62 }
0x1ff0   : > { %5379 = vmatprep.subr.bf16.mxu1 %v6248_v2 }
0x1ff3   : > { %5380 = vmatpush3.bf16.msra.mxu1 %v4358_v1 }
0x20ae   : > { %v4249_v41 = vpop.f32.mrf.mxu1 }
0x20af   : > { %v4250_v42 = vadd.f32 %v4814_v40, %v4249_v41 }
0x20b0   : > { %v5363_v17 = vpop.f32.mrf.mxu1 }
0x20b1   : > { %v4255_v43 = vmax.f32 %v4250_v42, 0.0 }
0x20b2   : > { %v4252_v44 = vpop.f32.mrf.mxu1 }
0x20b3   : > { %v4265_v45 = vpack.c.bf16 %v4255_v43, %v4255_v43 }
0x20b4   : > { %v5364_v46 = vpop.f32.mrf.mxu1 }
0x20b5   : > { %5374 = vmatmul.mubr.msk.bf16.vlgmr.msra.gmra.mxu0 %vm2724_vm10, %v4265_v45 }
0x2175   : > { %v4315_v48 = vpop.f32.mrf.mxu0 }
0x2176   : > { %v4316_v49 = vadd.f32 %v4824_v47, %v4315_v48 }
0x2177   : > { %v5375_v50 = vpop.f32.mrf.mxu0 }
0x2178   : > { %v4325_v51 = vadd.f32 %v4316_v49, %v4195_v32 }
0x2179   : > { %v4318_v53 = vpop.f32.mrf.mxu0 }
0x217a   : > { %v4326_v54 = vsel %vm1264_vm3, %v4325_v51, 0.0 }
0x217b   : > { %4327 = vadd.xlane.f32.xlu0 %v4326_v54  ;;  %v5376_v55 = vpop.f32.mrf.mxu0 }
0x2204   : > { %v4328_v10 = vpop.xlane.xlu0 %4327 }
0x2205   : > { %v4329_v56 = vmul.f32 0.03125, %v4328_v10 }
0x2207   : > { %v4330_v57 = vsub.f32 %v4325_v51, %v4329_v56 }
0x2209   : > { %v4331_v58 = vmul.f32 %v4330_v57, %v4330_v57 }
0x220b   : > { %v4332_v59 = vsel %vm1264_vm3, %v4331_v58, 0.0 }
0x220c   : > { %4333 = vadd.xlane.f32.xlu1 %v4332_v59 }
0x2295   : > { %v4334_v3 = vpop.xlane.xlu1 %4333 }
0x2296   : > { %v4335_v4 = vmul.f32 0.03125, %v4334_v3 }
0x2298   : > { %v4336_v5 = vadd.f32 1e-05, %v4335_v4 }
0x229a   : > { %5676 = vrsqrt.f32 %v4336_v5 }
0x22a7   : > { %v5677_v38 = vpop.eup %5676 }
0x22a8   : > { %v4338_v8 = vmul.f32 %v5677_v38, %v4330_v57 }
0x22aa   : > { %v4345_v11 = vmul.f32 %v4826_v7, %v4338_v8 }
0x22ac   : > { %v4352_v12 = vadd.f32 %v4827_v9, %v4345_v11 }
0x22ae   : > { %v4357_v13 = vpack.c.bf16 %v4352_v12, %v4352_v12 }
0x22b0   : > { %5382 = vmatmul.mubr.msk.bf16.vlgmr.msra.gmra.mxu1 %vm1264_vm3, %v4357_v13 }
0x2370   : > { %v4404_v2 = vpop.f32.mrf.mxu1 }
0x2371   : > { %v4405_v15 = vadd.f32 %v4828_v16, %v4404_v2 }
0x2372   : > { %v5383_v63 = vpop.f32.mrf.mxu1 }
0x2373   : > { %4410 = vst [vmem:[%s1135_s15] sm:$0xff] %v4405_v15 }
0x2374   : > { %v4407_v14 = vpop.f32.mrf.mxu1 }
0x2375   : > { %6137 = shalt.err (!%p6134_p11)
}
0x2376   : > { %s6138_s7 = scalar_lea.hbm %s7478_s19, 128  ;;  %s6142_s25 = scalar_lea.hbm %s7691_s24, 256 }
0x2377   : > { %p6139_p6 = scmp.ne.s32.totalorder %s7478_s19, %s6138_s7  ;;  %p6143_p2 = scmp.lt.s32.totalorder %s7478_s19, %s7691_s24 }
0x2378   : > { %p6144_p3 = scmp.lt.s32.totalorder %s6142_s25, %s6138_s7 }
0x2379   : > { %p6140_p0 = pnand %p6139_p6, %p7692_p9 }
0x237a   : > { %p6145_p4 = por %p6144_p3, %p6143_p2 }
0x237b   : > { %p6141_p7 = pneg %p6140_p0 }
0x237d   : > { %p6146_p8 = pnand %p6145_p4, %p6141_p7 }
0x237f   : > { %6149 = shalt.err (!%p6146_p8)
}
0x2380   : > { %5449 = dma.vmem_to_hbm [thread:$0]  (%p7692_p9), %s7480_s17, 128, %s7478_s19, %s4412_s5   ;;  %v5384_v52 = vpop.f32.mrf.mxu1 }
0x2381 PF: > { %s4437_s29 = sand.u32 1, %s6212_s8   ;;  %p7693_p10 = scmp.ne.s32.totalorder %s7647_s0, 0 }
0x2382   : > { %p7694_p12 = scmp.ge.s32.totalorder %s6224_s30, 2  ;;  %s4438_s2 = scalar_lea.sflag [#allocation4], %s4437_s29 }
0x2384   : > { %p5505_p13 = pnand %p7694_p12, %p7693_p10 }
0x2386   : > { %p5506_p5 = pneg %p5505_p13 }
0x2388   : > { %6207 = dma.done.wait (%p5506_p5), %s4438_s2, 128  }
0x2389   : > { %6209 = vsyncadd (%p5506_p5), %s4438_s2, 4294967168  ;;  %s7695_s8 = sld [smem:[#allocation41_spill]]  ;;  %p51_p1 = scmp.ge.s32.totalorder %s6597_s4, 4  }
0x238a   : > { %s7696_s5 = sld [smem:[#allocation42_spill]]  ;;  %s7698_s30 = smov %s6597_s4 }
0x238b   : > { %s7697_s9 = sld [smem:[#allocation45_spill]]  ;;  %53 = sbr.rel (!%p51_p1) target bundleno = 44 (0x2c), region = 276 }
0x2390   :  { %4443 = vsyncpa [#allocation3], 1 }
0x2391   :  { %4445 = vsyncpa [#allocation3 + $0x1], 1 }
0x2392   :  { %4446 = vsyncpa [#allocation6], 1 }
0x2393   :  { %4448 = vsyncpa [#allocation6 + $0x1], 1 }
0x2394   :  { %4449 = vsyncpa [#allocation9], 1 }
0x2395   :  { %4450 = vsyncpa [#allocation12], 1 }
0x2396   :  { %4451 = vsyncpa [#allocation15], 1 }
0x2397   :  { %4452 = vsyncpa [#allocation18], 1 }
0x2398   :  { %4453 = vsyncpa [#allocation21], 1 }
0x2399   :  { %4454 = vsyncpa [#allocation24], 1 }
0x239a   :  { %4455 = vsyncpa [#allocation27], 1 }
0x239b   :  { %4456 = vsyncpa [#allocation4], 1 }
0x239c   :  { %4458 = vsyncpa [#allocation4 + $0x1], 1 }

</bundles_post_ra>
